<compile_context>
chip_gen: v5e
topology: v5e:2x2
jax: 0.10.0
libtpu: 0.0.40
codegen_flags: <defaults>
</compile_context>

<pallas_src>
import functools

import jax
import jax.numpy as jnp
from jax.experimental import pallas as pl
from jax.experimental.pallas import tpu as pltpu

K = 3       # conv kernel size of the synthetic backbone stem
LANE = 128  # TPU lane width; class dim padded to a multiple of this


def net_kernel(n_classes, row_tile,
               x_ref, cw_ref, cb_ref, hw_ref, hb_ref, tgt_ref,
               logits_ref, loss_ref):
    """Fused conv-stem + ReLU + GAP + linear head + per-sample BCEWithLogits.

    One grid step == one block of B_blk batch elements ("parallel" axis).

    x_ref     : (B_blk, H+2, W+2, C)  bf16  zero-padded NHWC images
    cw_ref    : (K*K*C, F)            bf16  conv weight, im2col (tap-major) layout
    cb_ref    : (1, F)                f32   conv bias
    hw_ref    : (F, NCp)              f32   head weight, classes zero-padded to NCp
    hb_ref    : (1, NCp)              f32   head bias, zero-padded
    tgt_ref   : (B_blk, 1, NCp)       f32   BCE targets, zero-padded
    logits_ref: (B_blk, 1, NCp)       f32   lane-dense logits slab
    loss_ref  : (B_blk, 1, 1)         f32   per-sample mean BCE
    """
    Bb, Hp, Wp, C = x_ref.shape
    H, W = Hp - (K - 1), Wp - (K - 1)
    F = cw_ref.shape[1]
    NCp = hw_ref.shape[1]

    # ---- conv stem + ReLU + fused global-average-pool, row-band tiled ----
    # Only a (Bb*row_tile*W, F) band activation is ever live (bounds VMEM at
    # any resolution); GAP keeps a running (Bb, F) accumulator in registers.
    feat = jnp.zeros((Bb, F), jnp.float32)
    for r0 in range(0, H, row_tile):                     # static unroll
        rows = min(row_tile, H - r0)
        m = Bb * rows * W
        # in-register im2col: K*K shifted windows concatenated along lanes
        # -> ONE MXU call per band with contraction depth K*K*C (not C).
        cols = []
        for t in range(K * K):
            dy, dx = divmod(t, K)
            cols.append(
                x_ref[:, r0 + dy:r0 + dy + rows, dx:dx + W, :].reshape(m, C))
        xcol = jnp.concatenate(cols, axis=-1)            # (m, K*K*C) bf16
        acc = jnp.dot(xcol, cw_ref[...],
                      preferred_element_type=jnp.float32)  # (m, F) f32, registers
        h = jnp.maximum(acc + cb_ref[...], 0.0)            # bias + ReLU, f32
        # fused GAP: per-sample partial spatial sums for this band
        psum = [jnp.sum(h[b * rows * W:(b + 1) * rows * W, :],
                        axis=0, keepdims=True) for b in range(Bb)]
        feat = feat + (psum[0] if Bb == 1 else jnp.concatenate(psum, axis=0))
    feat = feat * (1.0 / (H * W))                         # (Bb, F) pooled features

    # dropout: identity (eval / deterministic forward)

    # ---- linear head: feat stays f32 (no extra bf16 rounding) ----
    logits = jnp.dot(feat, hw_ref[...],
                     preferred_element_type=jnp.float32) + hb_ref[...]  # (Bb, NCp)
    logits_ref[...] = logits.reshape(Bb, 1, NCp)          # lane-dense store

    # ---- BCEWithLogitsLoss (stable form), masked to the NC real classes ----
    # per-sample mean over NC; wrapper mean over B equals torch's global
    # 'mean' reduction because every sample has the same NC.
    tgt = tgt_ref[...].reshape(Bb, NCp)
    bce = (jnp.maximum(logits, 0.0) - logits * tgt
           + jnp.log1p(jnp.exp(-jnp.abs(logits))))
    lane_id = jax.lax.broadcasted_iota(jnp.int32, (Bb, NCp), 1)
    bce = jnp.where(lane_id < n_classes, bce, 0.0)
    loss_ref[...] = (jnp.sum(bce, axis=-1, keepdims=True)
                     * (1.0 / n_classes)).reshape(Bb, 1, 1)


def net_forward(x_nchw, target, params, *, b_blk=None, row_tile=8):
    """Equivalent of Net.forward({'input': x, 'target': target})."""
    conv_w, conv_b, head_w, head_b = params               # f32 "model" params
    B, C, H, W = x_nchw.shape
    F = conv_w.shape[-1]
    NC = head_w.shape[-1]
    NCp = ((NC + LANE - 1) // LANE) * LANE                # lane-dense class pad
    pad = K // 2
    Hp, Wp = H + 2 * pad, W + 2 * pad
    row_tile = max(1, min(row_tile, H))

    # Batch block: amortizes per-step overhead while keeping >= 2 grid steps
    # so v7x's two TensorCores both get work on the "parallel" batch axis.
    if b_blk is None:
        b_blk = 1
        for cand in range(min(8, max(1, B // 2)), 0, -1):
            if B % cand == 0:
                b_blk = cand
                break
    assert B % b_blk == 0, "batch must be divisible by the batch block"
    grid = (B // b_blk,)

    # NCHW -> NHWC, 'same' zero padding, bf16 for MXU inputs (XLA fuses the
    # transpose + pad + cast into one HBM pass).
    # TODO(synk): padding could move in-kernel (masked border taps) to shave
    # the wrapper-side HBM round trip entirely.
    x = jnp.transpose(x_nchw, (0, 2, 3, 1)).astype(jnp.bfloat16)
    xpad = jnp.pad(x, ((0, 0), (pad, pad), (pad, pad), (0, 0)))

    cw = conv_w.reshape(K * K * C, F).astype(jnp.bfloat16)      # im2col layout
    cb = conv_b.reshape(1, F).astype(jnp.float32)
    hw = jnp.pad(head_w.astype(jnp.float32), ((0, 0), (0, NCp - NC)))
    hb = jnp.pad(head_b.astype(jnp.float32), (0, NCp - NC)).reshape(1, NCp)
    tgt = jnp.pad(target.astype(jnp.float32),
                  ((0, 0), (0, NCp - NC))).reshape(B, 1, NCp)

    # Explicit scoped-VMEM budget from the actual working set (double-buffered
    # image block + resident params + band tiles), with headroom; stays well
    # under the 16/32 MiB scoped defaults and v7x's 64 MiB physical VMEM.
    est = (2 * b_blk * Hp * Wp * C * 2                           # image, 2 bufs
           + 2 * (K * K * C * F * 2 + F * 4 + F * NCp * 4 + NCp * 4)
           + 2 * b_blk * NCp * 4 + 2 * b_blk * 4 + 2 * b_blk * NCp * 4
           + b_blk * row_tile * W * (K * K * C * 2 + 2 * F * 4))  # band tiles
    vmem_limit = int(min(max(4 * est, 16 << 20), 32 << 20))

    kernel = functools.partial(net_kernel, NC, row_tile)

    logits3, loss3 = pl.pallas_call(
        kernel,
        out_shape=(jax.ShapeDtypeStruct((B, 1, NCp), jnp.float32),
                   jax.ShapeDtypeStruct((B, 1, 1), jnp.float32)),
        grid_spec=pltpu.PrefetchScalarGridSpec(
            num_scalar_prefetch=0,
            grid=grid,
            in_specs=[
                pl.BlockSpec((b_blk, Hp, Wp, C), lambda b: (b, 0, 0, 0)),  # images
                pl.BlockSpec((K * K * C, F), lambda b: (0, 0)),   # conv w (resident)
                pl.BlockSpec((1, F), lambda b: (0, 0)),           # conv b (resident)
                pl.BlockSpec((F, NCp), lambda b: (0, 0)),         # head w (resident)
                pl.BlockSpec((1, NCp), lambda b: (0, 0)),         # head b (resident)
                pl.BlockSpec((b_blk, 1, NCp), lambda b: (b, 0, 0)),        # targets
            ],
            out_specs=(
                pl.BlockSpec((b_blk, 1, NCp), lambda b: (b, 0, 0)),  # logits slab
                pl.BlockSpec((b_blk, 1, 1), lambda b: (b, 0, 0)),    # per-sample loss
            ),
        ),
        compiler_params=pltpu.CompilerParams(
            dimension_semantics=("parallel",),        # v7x: batch over both TCs
            vmem_limit_bytes=vmem_limit),
    )(xpad, cw, cb, hw, hb, tgt)

    logits = logits3.reshape(B, NCp)[:, :NC]
    loss = jnp.mean(loss3)     # mean of per-sample means == global BCE mean
    return {"logits": logits, "loss": loss}


def net_reference(x_nchw, target, params):
    """Pure-JAX f32 reference of the same synthetic forward (for checking)."""
    conv_w, conv_b, head_w, head_b = params
    B, C, H, W = x_nchw.shape
    x = jnp.transpose(x_nchw, (0, 2, 3, 1))
    xp = jnp.pad(x, ((0, 0), (1, 1), (1, 1), (0, 0)))
    acc = jnp.zeros((B, H, W, conv_w.shape[-1]), jnp.float32)
    for t in range(K * K):
        dy, dx = divmod(t, K)
        acc = acc + jnp.einsum('bhwc,cf->bhwf',
                               xp[:, dy:dy + H, dx:dx + W, :], conv_w[t])
    h = jnp.maximum(acc + conv_b, 0.0)
    feat = h.mean(axis=(1, 2))
    logits = feat @ head_w + head_b
    bce = (jnp.maximum(logits, 0.0) - logits * target
           + jnp.log1p(jnp.exp(-jnp.abs(logits))))
    return logits, bce.mean()


def init_params(key, in_chans, backbone_out, n_classes):
    k1, k2, k3, k4 = jax.random.split(key, 4)
    conv_w = 0.1 * jax.random.normal(k1, (K * K, in_chans, backbone_out),
                                     jnp.float32)
    conv_b = 0.01 * jax.random.normal(k2, (backbone_out,), jnp.float32)
    head_w = 0.1 * jax.random.normal(k3, (backbone_out, n_classes),
                                     jnp.float32)
    head_b = 0.01 * jax.random.normal(k4, (n_classes,), jnp.float32)
    return conv_w, conv_b, head_w, head_b


if __name__ == "__main__":
    # small shapes consistent with the module's forward
    B, C, H, W = 2, 4, 16, 16      # batch, in_chans (len(cfg.channels)), spatial
    BACKBONE_OUT = 32              # head_in_units
    N_CLASSES = 3                  # len(cfg.label_cols)

    key = jax.random.PRNGKey(0)
    kx, kt, kp = jax.random.split(key, 3)

    x = jax.random.normal(kx, (B, C, H, W), jnp.float32)
    target = jax.random.bernoulli(kt, 0.5, (B, N_CLASSES)).astype(jnp.float32)
    params = init_params(kp, C, BACKBONE_OUT, N_CLASSES)

    out = jax.jit(net_forward)(x, target, params)
    out = jax.tree_util.tree_map(jax.block_until_ready, out)

    assert out["logits"].shape == (B, N_CLASSES)
    assert out["loss"].shape == ()
    assert bool(jnp.isfinite(out["loss"]))

    # loose tolerance: kernel uses bf16 conv inputs/weights with f32 accumulation
    ref_logits, ref_loss = net_reference(x, target, params)
    assert bool(jnp.allclose(out["logits"], ref_logits, rtol=5e-2, atol=5e-2))
    assert bool(jnp.allclose(out["loss"], ref_loss, rtol=5e-2, atol=5e-2))

    print("KERNEL_OK")
</pallas_src>

<mosaic_0001>
module attributes {stable_mosaic.version = 11 : i64} {
  func.func @net_kernel(%arg0: i32, %arg1: memref<1x18x18x4xbf16, #tpu.memory_space<vmem>>, %arg2: memref<36x32xbf16, #tpu.memory_space<vmem>>, %arg3: memref<1x32xf32, #tpu.memory_space<vmem>>, %arg4: memref<32x128xf32, #tpu.memory_space<vmem>>, %arg5: memref<1x128xf32, #tpu.memory_space<vmem>>, %arg6: memref<1x1x128xf32, #tpu.memory_space<vmem>>, %arg7: memref<1x1x128xf32, #tpu.memory_space<vmem>>, %arg8: memref<1x1x1xf32, #tpu.memory_space<vmem>>) attributes {dimension_semantics = [#tpu.dimension_semantics<parallel>], iteration_bounds = array<i64: 2>, scalar_prefetch = 0 : i64, scratch_operands = 0 : i64, tpu.core_type = #tpu.core_type<tc>, window_params = [{transform_indices = @transform_0, window_bounds = array<i64: 1, 18, 18, 4>}, {pipeline_mode = #tpu.pipeline_mode<synchronous>, transform_indices = @transform_1, window_bounds = array<i64: 36, 32>}, {pipeline_mode = #tpu.pipeline_mode<synchronous>, transform_indices = @transform_2, window_bounds = array<i64: 1, 32>}, {pipeline_mode = #tpu.pipeline_mode<synchronous>, transform_indices = @transform_3, window_bounds = array<i64: 32, 128>}, {pipeline_mode = #tpu.pipeline_mode<synchronous>, transform_indices = @transform_4, window_bounds = array<i64: 1, 128>}, {transform_indices = @transform_5, window_bounds = array<i64: 1, 1, 128>}, {transform_indices = @transform_6, window_bounds = array<i64: 1, 1, 128>}, {transform_indices = @transform_7, window_bounds = array<i64: 1, 1, 1>}]} {
    %cst = arith.constant 0.000000e+00 : f32
    %0 = vector.broadcast %cst : f32 to vector<1x32xf32>
    %c0 = arith.constant 0 : index
    %c0_0 = arith.constant 0 : index
    %c0_1 = arith.constant 0 : index
    %c0_2 = arith.constant 0 : index
    %1 = vector.load %arg1[%c0, %c0_0, %c0_1, %c0_2] : memref<1x18x18x4xbf16, #tpu.memory_space<vmem>>, vector<1x8x16x4xbf16>
    %2 = vector.shape_cast %1 : vector<1x8x16x4xbf16> to vector<128x4xbf16>
    %c0_3 = arith.constant 0 : index
    %c0_4 = arith.constant 0 : index
    %c1 = arith.constant 1 : index
    %c0_5 = arith.constant 0 : index
    %3 = vector.load %arg1[%c0_3, %c0_4, %c1, %c0_5] : memref<1x18x18x4xbf16, #tpu.memory_space<vmem>>, vector<1x8x16x4xbf16>
    %4 = vector.shape_cast %3 : vector<1x8x16x4xbf16> to vector<128x4xbf16>
    %c0_6 = arith.constant 0 : index
    %c0_7 = arith.constant 0 : index
    %c2 = arith.constant 2 : index
    %c0_8 = arith.constant 0 : index
    %5 = vector.load %arg1[%c0_6, %c0_7, %c2, %c0_8] : memref<1x18x18x4xbf16, #tpu.memory_space<vmem>>, vector<1x8x16x4xbf16>
    %6 = vector.shape_cast %5 : vector<1x8x16x4xbf16> to vector<128x4xbf16>
    %c0_9 = arith.constant 0 : index
    %c1_10 = arith.constant 1 : index
    %c0_11 = arith.constant 0 : index
    %c0_12 = arith.constant 0 : index
    %7 = vector.load %arg1[%c0_9, %c1_10, %c0_11, %c0_12] : memref<1x18x18x4xbf16, #tpu.memory_space<vmem>>, vector<1x8x16x4xbf16>
    %8 = vector.shape_cast %7 : vector<1x8x16x4xbf16> to vector<128x4xbf16>
    %c0_13 = arith.constant 0 : index
    %c1_14 = arith.constant 1 : index
    %c1_15 = arith.constant 1 : index
    %c0_16 = arith.constant 0 : index
    %9 = vector.load %arg1[%c0_13, %c1_14, %c1_15, %c0_16] : memref<1x18x18x4xbf16, #tpu.memory_space<vmem>>, vector<1x8x16x4xbf16>
    %10 = vector.shape_cast %9 : vector<1x8x16x4xbf16> to vector<128x4xbf16>
    %c0_17 = arith.constant 0 : index
    %c1_18 = arith.constant 1 : index
    %c2_19 = arith.constant 2 : index
    %c0_20 = arith.constant 0 : index
    %11 = vector.load %arg1[%c0_17, %c1_18, %c2_19, %c0_20] : memref<1x18x18x4xbf16, #tpu.memory_space<vmem>>, vector<1x8x16x4xbf16>
    %12 = vector.shape_cast %11 : vector<1x8x16x4xbf16> to vector<128x4xbf16>
    %c0_21 = arith.constant 0 : index
    %c2_22 = arith.constant 2 : index
    %c0_23 = arith.constant 0 : index
    %c0_24 = arith.constant 0 : index
    %13 = vector.load %arg1[%c0_21, %c2_22, %c0_23, %c0_24] : memref<1x18x18x4xbf16, #tpu.memory_space<vmem>>, vector<1x8x16x4xbf16>
    %14 = vector.shape_cast %13 : vector<1x8x16x4xbf16> to vector<128x4xbf16>
    %c0_25 = arith.constant 0 : index
    %c2_26 = arith.constant 2 : index
    %c1_27 = arith.constant 1 : index
    %c0_28 = arith.constant 0 : index
    %15 = vector.load %arg1[%c0_25, %c2_26, %c1_27, %c0_28] : memref<1x18x18x4xbf16, #tpu.memory_space<vmem>>, vector<1x8x16x4xbf16>
    %16 = vector.shape_cast %15 : vector<1x8x16x4xbf16> to vector<128x4xbf16>
    %c0_29 = arith.constant 0 : index
    %c2_30 = arith.constant 2 : index
    %c2_31 = arith.constant 2 : index
    %c0_32 = arith.constant 0 : index
    %17 = vector.load %arg1[%c0_29, %c2_30, %c2_31, %c0_32] : memref<1x18x18x4xbf16, #tpu.memory_space<vmem>>, vector<1x8x16x4xbf16>
    %18 = vector.shape_cast %17 : vector<1x8x16x4xbf16> to vector<128x4xbf16>
    %19 = tpu.concatenate %2, %4, %6, %8, %10, %12, %14, %16, %18 in 1 : vector<128x4xbf16>, vector<128x4xbf16>, vector<128x4xbf16>, vector<128x4xbf16>, vector<128x4xbf16>, vector<128x4xbf16>, vector<128x4xbf16>, vector<128x4xbf16>, vector<128x4xbf16> -> vector<128x36xbf16>
    %c0_33 = arith.constant 0 : index
    %c0_34 = arith.constant 0 : index
    %20 = vector.load %arg2[%c0_33, %c0_34] : memref<36x32xbf16, #tpu.memory_space<vmem>>, vector<36x32xbf16>
    %cst_35 = arith.constant dense<0.000000e+00> : vector<128x32xf32>
    %21 = tpu.matmul %19, %20, %cst_35 {dimension_numbers = #tpu.dot_dimension_numbers<[1], [0], [0], [1], [0, 0, 1, 1], [], []>} : vector<128x36xbf16>, vector<36x32xbf16>, vector<128x32xf32> -> vector<128x32xf32>
    %c0_36 = arith.constant 0 : index
    %c0_37 = arith.constant 0 : index
    %22 = vector.load %arg3[%c0_36, %c0_37] : memref<1x32xf32, #tpu.memory_space<vmem>>, vector<1x32xf32>
    %23 = vector.broadcast %22 : vector<1x32xf32> to vector<128x32xf32>
    %24 = arith.addf %21, %23 : vector<128x32xf32>
    %cst_38 = arith.constant 0.000000e+00 : f32
    %25 = vector.broadcast %cst_38 : f32 to vector<128x32xf32>
    %26 = arith.maximumf %24, %25 : vector<128x32xf32>
    %cst_39 = arith.constant dense<0.000000e+00> : vector<32xf32>
    %27 = vector.multi_reduction <add>, %26, %cst_39 [0] : vector<128x32xf32> to vector<32xf32>
    %28 = vector.shape_cast %27 : vector<32xf32> to vector<1x32xf32>
    %29 = arith.addf %0, %28 : vector<1x32xf32>
    %c0_40 = arith.constant 0 : index
    %c8 = arith.constant 8 : index
    %c0_41 = arith.constant 0 : index
    %c0_42 = arith.constant 0 : index
    %30 = vector.load %arg1[%c0_40, %c8, %c0_41, %c0_42] : memref<1x18x18x4xbf16, #tpu.memory_space<vmem>>, vector<1x8x16x4xbf16>
    %31 = vector.shape_cast %30 : vector<1x8x16x4xbf16> to vector<128x4xbf16>
    %c0_43 = arith.constant 0 : index
    %c8_44 = arith.constant 8 : index
    %c1_45 = arith.constant 1 : index
    %c0_46 = arith.constant 0 : index
    %32 = vector.load %arg1[%c0_43, %c8_44, %c1_45, %c0_46] : memref<1x18x18x4xbf16, #tpu.memory_space<vmem>>, vector<1x8x16x4xbf16>
    %33 = vector.shape_cast %32 : vector<1x8x16x4xbf16> to vector<128x4xbf16>
    %c0_47 = arith.constant 0 : index
    %c8_48 = arith.constant 8 : index
    %c2_49 = arith.constant 2 : index
    %c0_50 = arith.constant 0 : index
    %34 = vector.load %arg1[%c0_47, %c8_48, %c2_49, %c0_50] : memref<1x18x18x4xbf16, #tpu.memory_space<vmem>>, vector<1x8x16x4xbf16>
    %35 = vector.shape_cast %34 : vector<1x8x16x4xbf16> to vector<128x4xbf16>
    %c0_51 = arith.constant 0 : index
    %c9 = arith.constant 9 : index
    %c0_52 = arith.constant 0 : index
    %c0_53 = arith.constant 0 : index
    %36 = vector.load %arg1[%c0_51, %c9, %c0_52, %c0_53] : memref<1x18x18x4xbf16, #tpu.memory_space<vmem>>, vector<1x8x16x4xbf16>
    %37 = vector.shape_cast %36 : vector<1x8x16x4xbf16> to vector<128x4xbf16>
    %c0_54 = arith.constant 0 : index
    %c9_55 = arith.constant 9 : index
    %c1_56 = arith.constant 1 : index
    %c0_57 = arith.constant 0 : index
    %38 = vector.load %arg1[%c0_54, %c9_55, %c1_56, %c0_57] : memref<1x18x18x4xbf16, #tpu.memory_space<vmem>>, vector<1x8x16x4xbf16>
    %39 = vector.shape_cast %38 : vector<1x8x16x4xbf16> to vector<128x4xbf16>
    %c0_58 = arith.constant 0 : index
    %c9_59 = arith.constant 9 : index
    %c2_60 = arith.constant 2 : index
    %c0_61 = arith.constant 0 : index
    %40 = vector.load %arg1[%c0_58, %c9_59, %c2_60, %c0_61] : memref<1x18x18x4xbf16, #tpu.memory_space<vmem>>, vector<1x8x16x4xbf16>
    %41 = vector.shape_cast %40 : vector<1x8x16x4xbf16> to vector<128x4xbf16>
    %c0_62 = arith.constant 0 : index
    %c10 = arith.constant 10 : index
    %c0_63 = arith.constant 0 : index
    %c0_64 = arith.constant 0 : index
    %42 = vector.load %arg1[%c0_62, %c10, %c0_63, %c0_64] : memref<1x18x18x4xbf16, #tpu.memory_space<vmem>>, vector<1x8x16x4xbf16>
    %43 = vector.shape_cast %42 : vector<1x8x16x4xbf16> to vector<128x4xbf16>
    %c0_65 = arith.constant 0 : index
    %c10_66 = arith.constant 10 : index
    %c1_67 = arith.constant 1 : index
    %c0_68 = arith.constant 0 : index
    %44 = vector.load %arg1[%c0_65, %c10_66, %c1_67, %c0_68] : memref<1x18x18x4xbf16, #tpu.memory_space<vmem>>, vector<1x8x16x4xbf16>
    %45 = vector.shape_cast %44 : vector<1x8x16x4xbf16> to vector<128x4xbf16>
    %c0_69 = arith.constant 0 : index
    %c10_70 = arith.constant 10 : index
    %c2_71 = arith.constant 2 : index
    %c0_72 = arith.constant 0 : index
    %46 = vector.load %arg1[%c0_69, %c10_70, %c2_71, %c0_72] : memref<1x18x18x4xbf16, #tpu.memory_space<vmem>>, vector<1x8x16x4xbf16>
    %47 = vector.shape_cast %46 : vector<1x8x16x4xbf16> to vector<128x4xbf16>
    %48 = tpu.concatenate %31, %33, %35, %37, %39, %41, %43, %45, %47 in 1 : vector<128x4xbf16>, vector<128x4xbf16>, vector<128x4xbf16>, vector<128x4xbf16>, vector<128x4xbf16>, vector<128x4xbf16>, vector<128x4xbf16>, vector<128x4xbf16>, vector<128x4xbf16> -> vector<128x36xbf16>
    %c0_73 = arith.constant 0 : index
    %c0_74 = arith.constant 0 : index
    %49 = vector.load %arg2[%c0_73, %c0_74] : memref<36x32xbf16, #tpu.memory_space<vmem>>, vector<36x32xbf16>
    %cst_75 = arith.constant dense<0.000000e+00> : vector<128x32xf32>
    %50 = tpu.matmul %48, %49, %cst_75 {dimension_numbers = #tpu.dot_dimension_numbers<[1], [0], [0], [1], [0, 0, 1, 1], [], []>} : vector<128x36xbf16>, vector<36x32xbf16>, vector<128x32xf32> -> vector<128x32xf32>
    %c0_76 = arith.constant 0 : index
    %c0_77 = arith.constant 0 : index
    %51 = vector.load %arg3[%c0_76, %c0_77] : memref<1x32xf32, #tpu.memory_space<vmem>>, vector<1x32xf32>
    %52 = vector.broadcast %51 : vector<1x32xf32> to vector<128x32xf32>
    %53 = arith.addf %50, %52 : vector<128x32xf32>
    %cst_78 = arith.constant 0.000000e+00 : f32
    %54 = vector.broadcast %cst_78 : f32 to vector<128x32xf32>
    %55 = arith.maximumf %53, %54 : vector<128x32xf32>
    %cst_79 = arith.constant dense<0.000000e+00> : vector<32xf32>
    %56 = vector.multi_reduction <add>, %55, %cst_79 [0] : vector<128x32xf32> to vector<32xf32>
    %57 = vector.shape_cast %56 : vector<32xf32> to vector<1x32xf32>
    %58 = arith.addf %29, %57 : vector<1x32xf32>
    %cst_80 = arith.constant 3.906250e-03 : f32
    %59 = vector.broadcast %cst_80 : f32 to vector<1x32xf32>
    %60 = arith.mulf %58, %59 : vector<1x32xf32>
    %c0_81 = arith.constant 0 : index
    %c0_82 = arith.constant 0 : index
    %61 = vector.load %arg4[%c0_81, %c0_82] : memref<32x128xf32, #tpu.memory_space<vmem>>, vector<32x128xf32>
    %cst_83 = arith.constant dense<0.000000e+00> : vector<1x128xf32>
    %62 = tpu.matmul %60, %61, %cst_83 {dimension_numbers = #tpu.dot_dimension_numbers<[1], [0], [0], [1], [0, 0, 1, 1], [], []>} : vector<1x32xf32>, vector<32x128xf32>, vector<1x128xf32> -> vector<1x128xf32>
    %c0_84 = arith.constant 0 : index
    %c0_85 = arith.constant 0 : index
    %63 = vector.load %arg5[%c0_84, %c0_85] : memref<1x128xf32, #tpu.memory_space<vmem>>, vector<1x128xf32>
    %64 = arith.addf %62, %63 : vector<1x128xf32>
    %65 = vector.shape_cast %64 : vector<1x128xf32> to vector<1x1x128xf32>
    %c0_86 = arith.constant 0 : index
    %c0_87 = arith.constant 0 : index
    %c0_88 = arith.constant 0 : index
    %66 = vector.load %arg7[%c0_86, %c0_87, %c0_88] : memref<1x1x128xf32, #tpu.memory_space<vmem>>, vector<1x1x128xf32>
    tpu.vector_store %arg7[%c0_86, %c0_87, %c0_88], %65 {strides = array<i32>} : memref<1x1x128xf32, #tpu.memory_space<vmem>>, vector<1x1x128xf32>,
    %c0_89 = arith.constant 0 : index
    %c0_90 = arith.constant 0 : index
    %c0_91 = arith.constant 0 : index
    %67 = vector.load %arg6[%c0_89, %c0_90, %c0_91] : memref<1x1x128xf32, #tpu.memory_space<vmem>>, vector<1x1x128xf32>
    %68 = vector.shape_cast %67 : vector<1x1x128xf32> to vector<1x128xf32>
    %cst_92 = arith.constant 0.000000e+00 : f32
    %69 = vector.broadcast %cst_92 : f32 to vector<1x128xf32>
    %70 = arith.maximumf %64, %69 : vector<1x128xf32>
    %71 = arith.mulf %64, %68 : vector<1x128xf32>
    %72 = arith.subf %70, %71 : vector<1x128xf32>
    %73 = math.absf %64 : vector<1x128xf32>
    %cst_93 = arith.constant 0.000000e+00 : f32
    %74 = vector.broadcast %cst_93 : f32 to vector<1x128xf32>
    %75 = arith.subf %74, %73 : vector<1x128xf32>
    %76 = math.exp %75 : vector<1x128xf32>
    %77 = math.log1p %76 : vector<1x128xf32>
    %78 = arith.addf %72, %77 : vector<1x128xf32>
    %79 = tpu.iota {dimensions = array<i32: 1>} : vector<1x128xi32>
    %c3_i32 = arith.constant 3 : i32
    %80 = vector.broadcast %c3_i32 : i32 to vector<1x128xi32>
    %81 = arith.cmpi slt, %79, %80 : vector<1x128xi32>
    %cst_94 = arith.constant 0.000000e+00 : f32
    %82 = vector.broadcast %cst_94 : f32 to vector<1x128xf32>
    %83 = arith.select %81, %78, %82 : vector<1x128xi1>, vector<1x128xf32>
    %cst_95 = arith.constant dense<0.000000e+00> : vector<1xf32>
    %84 = vector.multi_reduction <add>, %83, %cst_95 [1] : vector<1x128xf32> to vector<1xf32>
    %85 = vector.shape_cast %84 : vector<1xf32> to vector<1x1xf32>
    %cst_96 = arith.constant 0.333333343 : f32
    %86 = vector.broadcast %cst_96 : f32 to vector<1x1xf32>
    %87 = arith.mulf %85, %86 : vector<1x1xf32>
    %88 = vector.shape_cast %87 : vector<1x1xf32> to vector<1x1x1xf32>
    %c0_97 = arith.constant 0 : index
    %c0_98 = arith.constant 0 : index
    %c0_99 = arith.constant 0 : index
    %89 = vector.load %arg8[%c0_97, %c0_98, %c0_99] : memref<1x1x1xf32, #tpu.memory_space<vmem>>, vector<1x1x1xf32>
    tpu.vector_store %arg8[%c0_97, %c0_98, %c0_99], %88 {strides = array<i32>} : memref<1x1x1xf32, #tpu.memory_space<vmem>>, vector<1x1x1xf32>,
    return
  }
  func.func @transform_0(%arg0: i32) -> (i32, i32, i32, i32) {
    %c0_i32 = arith.constant 0 : i32
    %c0_i32_0 = arith.constant 0 : i32
    %c0_i32_1 = arith.constant 0 : i32
    %c0_i32_2 = arith.constant 0 : i32
    return %arg0, %c0_i32, %c0_i32_0, %c0_i32_1 : i32, i32, i32, i32
  }
  func.func @transform_1(%arg0: i32) -> (i32, i32) {
    %c0_i32 = arith.constant 0 : i32
    %c0_i32_0 = arith.constant 0 : i32
    %c0_i32_1 = arith.constant 0 : i32
    return %c0_i32, %c0_i32_0 : i32, i32
  }
  func.func @transform_2(%arg0: i32) -> (i32, i32) {
    %c0_i32 = arith.constant 0 : i32
    %c0_i32_0 = arith.constant 0 : i32
    %c0_i32_1 = arith.constant 0 : i32
    return %c0_i32, %c0_i32_0 : i32, i32
  }
  func.func @transform_3(%arg0: i32) -> (i32, i32) {
    %c0_i32 = arith.constant 0 : i32
    %c0_i32_0 = arith.constant 0 : i32
    %c0_i32_1 = arith.constant 0 : i32
    return %c0_i32, %c0_i32_0 : i32, i32
  }
  func.func @transform_4(%arg0: i32) -> (i32, i32) {
    %c0_i32 = arith.constant 0 : i32
    %c0_i32_0 = arith.constant 0 : i32
    %c0_i32_1 = arith.constant 0 : i32
    return %c0_i32, %c0_i32_0 : i32, i32
  }
  func.func @transform_5(%arg0: i32) -> (i32, i32, i32) {
    %c0_i32 = arith.constant 0 : i32
    %c0_i32_0 = arith.constant 0 : i32
    %c0_i32_1 = arith.constant 0 : i32
    return %arg0, %c0_i32, %c0_i32_0 : i32, i32, i32
  }
  func.func @transform_6(%arg0: i32) -> (i32, i32, i32) {
    %c0_i32 = arith.constant 0 : i32
    %c0_i32_0 = arith.constant 0 : i32
    %c0_i32_1 = arith.constant 0 : i32
    return %arg0, %c0_i32, %c0_i32_0 : i32, i32, i32
  }
  func.func @transform_7(%arg0: i32) -> (i32, i32, i32) {
    %c0_i32 = arith.constant 0 : i32
    %c0_i32_0 = arith.constant 0 : i32
    %c0_i32_1 = arith.constant 0 : i32
    return %arg0, %c0_i32, %c0_i32_0 : i32, i32, i32
  }
}

</mosaic_0001>

<bundles_post_ra>
// kernel: net_forward.1
= control target key start
LH: loop header
LB: loop body
LE: loop exit
PB: predicated region body
PF: predicated region fallthrough
CT: control target
= control target key end

     0   :  { %13 = vsyncpa [#allocation3], 0  ;;  %s5823_s0 = inlined_call_operand.vmem [shape: bf16[2,18,18,4], index: 0, kind: input, shape index: {}]   ;;  %s5824_s1 = inlined_call_operand.vmem [shape: bf16[36,32], index: 1, kind: input, shape index: {}]   ;;  %s5825_s2 = inlined_call_operand.vmem [shape: f32[1,32], index: 2, kind: input, shape index: {}]   ;;  %s5826_s3 = inlined_call_operand.vmem [shape: f32[32,128], index: 3, kind: input, shape index: {}]   ;;  %s5827_s4 = inlined_call_operand.vmem [shape: f32[1,128], index: 4, kind: input, shape index: {}]   ;;  %s5828_s5 = inlined_call_operand.vmem [shape: f32[2,1,128], index: 5, kind: input, shape index: {}]   ;;  %s5829_s6 = inlined_call_operand.hbm [shape: f32[2,1,128], index: 6, kind: output, shape index: {0}]   ;;  %s5830_s7 = inlined_call_operand.vmem [shape: f32[2,1,1], index: 7, kind: output, shape index: {1}]  }
   0x1   :  { %15 = vsyncpa [#allocation3 + $0x1], 0  ;;  %s4232_s24 = smov 0   ;;  %s4234_s25 = smov 0  }
   0x2   :  { %s4236_s26 = smov 0   ;;  %s4238_s27 = smov 0  }
   0x3 LB: > { %s4253_s28 = sadd.s32 4294967295, %s4182_s27   ;;  %s3579_s29 = sadd.s32 4294967294, %s4182_s27   ;;  %s4182_s27 = sphi %s4238_s27, %s5840_s27   ;;  %s4178_s26 = sphi %s4236_s26, %s5839_s26   ;;  %s4174_s25 = sphi %s4234_s25, %s5838_s25   ;;  %s4170_s24 = sphi %s4232_s24, %s5837_s24  }
   0x4   : > { %s4257_s30 = sadd.s32 1, %s4182_s27   ;;  %s164_s8 = sadd.s32 1, %s4178_s26 }
   0x5   : > { %s161_s9 = ssub.s32 %s4182_s27, %s4257_s30  ;;  %p174_p0 = scmp.ne.s32.totalorder %s4178_s26, %s4174_s25 }
   0x6   : > { %p162_p1 = scmp.eq.s32.totalorder %s161_s9, 0  ;;  %p175_p2 = scmp.eq.s32.totalorder %s4253_s28, 1 }
   0x7   : > { %p180_p3 = scmp.ne.s32.totalorder %s4174_s25, %s4170_s24  ;;  %p181_p4 = scmp.eq.s32.totalorder %s3579_s29, 1 }
   0x8   : > { %s4268_s10 = scalar_select %p162_p1, %s4178_s26, %s164_s8  }
   0x9   : > { %p4270_p5 = por %p175_p2, %p174_p0  ;;  %p4274_p6 = por %p181_p4, %p180_p3 }
   0xa   : > { %p3582_p7 = scmp.ge.s32.totalorder %s4182_s27, 1  ;;  %p251_p8 = scmp.lt.s32.totalorder %s4182_s27, 3 }
   0xc   : > { %p252_p9 = pnand %p3582_p7, %p251_p8 }
   0xd   : > { %p288_p10 = scmp.lt.s32.totalorder (!%p252_p9), %s4253_s28, 1  ;;  %s4184_s18 = smov (!%p252_p9), 12  }
   0xe   : > { %255 = sbr.rel (%p252_p9) target bundleno = 949 (0x3b5), region = 44  ;;  %s4185_s19 = smov (!%p252_p9), 8  }
   0xf   : > { %s4186_s20 = smov (!%p252_p9), 4   ;;  %s4187_s21 = smov (!%p252_p9), 16  }
  0x10   : > { %s4188_s22 = smov (!%p252_p9), 20   ;;  %s4189_s23 = smov (!%p252_p9), 24  }
  0x11   : > { %s4190_s29 = smov (!%p252_p9), 28   ;;  %s4191_s8 = smov (!%p252_p9), 32  }
  0x12   : > { %s281_s16 = sand.u32 (!%p252_p9), 1, %s4174_s25  }
  0x13   : > { %s4282_s13 = scalar_select %p288_p10, %s4253_s28, 1  ;;  %vm551_vm0 = vcmask 1042432   ;;  %vm552_vm1 = vcmask 1046532   ;;  %vm324_vm3 = vsmask.f32 3328  ;;  %vm1588_vm6 = vcmask 31744  }
  0x14   : > { %vm4290_vm2 = vmor %vm551_vm0, %vm552_vm1  ;;  %vm325_vm4 = vsmask.f32 7440  ;;  %vm1613_vm7 = vcmask 64512   ;;  %vm1630_vm8 = vcmask 97280   ;;  %vm1647_vm9 = vcmask 130048   ;;  %s3478_s15 = scalar_lea.sflag [#allocation3], %s281_s16 }
  0x15   : > { %s4067_s14 = smul.u32 216, %s4282_s13  ;;  %vm4310_vm5 = vmor %vm324_vm3, %vm325_vm4  ;;  %vm1664_vm10 = vcmask 162816   ;;  %vm1773_vm11 = vcmask 1041408   ;;  %vm1681_vm12 = vcmask 195584   ;;  %vm1698_vm13 = vcmask 228352  }
  0x16   : > { %vm1715_vm14 = vcmask 261120   ;;  %vm1756_vm15 = vcmask 293888  }
  0x17   : > { %s4288_s17 = scalar_lea.vmem %s5823_s0, %s4067_s14 }
  0x18   : > { %v301_v1 = vld [vmem:[%s4288_s17 + $0x4] sm:$0xf]  ;;  %v316_v2 = vld [vmem:[%s4288_s17 + $0x8] sm:$0x1]  ;;  %v519_v3 = vld [vmem:[%s4288_s17] sm:$0xe] }
  0x19   : > { %v3584_v4 = vrot.slane %v519_v3, 9  ;;  %v556_v5 = vrot.slane %v301_v1, 5  ;;  %v559_v6 = vrot.slane %v316_v2, 5  ;;  %v300_v7 = vld [vmem:[%s4288_s17] sm:$0xf]  ;;  %v337_v8 = vshll.u32 %v301_v1, 16 }
  0x1a   : > { %v328_v9 = vshrl.u32 %v300_v7, 16  ;;  %v331_v10 = vshll.u32 %v300_v7, 16  ;;  %v341_v11 = vshrl.u32 %v301_v1, 16  ;;  %v347_v12 = vshll.u32 %v316_v2, 16  ;;  %v3785_v13 = vld [vmem:[%s4288_s17 + $0x64] sm:$0xf] }
  0x1b   : > { %v557_v14 = vsel %vm4290_vm2, %v3584_v4, %v556_v5  ;;  %v558_v15 = vrot.slane %v556_v5, 4  ;;  %v339_v16 = vrot.slane %v337_v8, 5  ;;  %v3800_v17 = vld [vmem:[%s4288_s17 + $0x68] sm:$0x1]  ;;  %v3808_v18 = vld [vmem:[%s4288_s17 + $0x60] sm:$0xe] }
  0x1c   : > { %v1292_v19 = vunpack.c.l.b16 %v557_v14  ;;  %v330_v20 = vrot.slane %v328_v9, 4  ;;  %v333_v21 = vrot.slane %v331_v10, 5  ;;  %v343_v22 = vrot.slane %v341_v11, 4  ;;  %v3784_v23 = vld [vmem:[%s4288_s17 + $0x60] sm:$0xf]  ;;  %v4019_v24 = vld [vmem:[%s4288_s17 + $0xc] sm:$0xff] }
  0x1d   : > { %v560_v25 = vsel %vm4290_vm2, %v558_v15, %v559_v6  ;;  %v349_v26 = vrot.slane %v347_v12, 5  ;;  %v3816_v27 = vrot.slane %v3808_v18, 9  ;;  %v2131_v28 = vrot.slane %v3785_v13, 5  ;;  %1364 = vrot.lane.b32.xlu2 %v4019_v24, %s4184_s18  ;;  %v3824_v46 = vld [vmem:[%s4288_s17 + $0x6c] sm:$0xf] }
  0x1e   : > { %v1293_v29 = vunpack.c.l.b16 %v560_v25  ;;  %v334_v30 = vor.u32 %v333_v21, %v330_v20  ;;  %v344_v31 = vor.u32 %v343_v22, %v339_v16  ;;  %v2134_v32 = vrot.slane %v3800_v17, 5  ;;  %v4325_v51 = vld [vmem:[%s4288_s17 + $0x70] sm:$0xf]  ;;  %v4329_v60 = vld [vmem:[%s4288_s17 + $0x74] sm:$0x1]  ;;  %v4017_v0 = vld [vmem:[%s4288_s17 + $0x48] sm:$0xff] }
  0x1f   : > { %v2132_v34 = vsel %vm4290_vm2, %v3816_v27, %v2131_v28  ;;  %v2133_v35 = vrot.slane %v2131_v28, 4  ;;  %v1906_v36 = vshrl.u32 %v3784_v23, 16  ;;  %v1909_v37 = vshll.u32 %v3784_v23, 16  ;;  %v4045_v52 = vld [vmem:[%s4288_s17 + $0x6c] sm:$0xff] }
  0x20   : > { %v1308_v38 = vpack.c.b16 %v1293_v29, %v1292_v19  ;;  %v335_v39 = vrot.slane %v334_v30, 4  ;;  %v345_v40 = vrot.slane %v344_v31, 4  ;;  %v2867_v41 = vunpack.c.l.b16 %v2132_v34  ;;  %v3592_v3 = vld [vmem:[%s4288_s17 + $0xc] sm:$0xf]  ;;  %v4335_v8 = vld [vmem:[%s4288_s17 + $0x10] sm:$0xf] }
  0x21   : > { %v2135_v42 = vsel %vm4290_vm2, %v2133_v35, %v2134_v32  ;;  %v1908_v43 = vrot.slane %v1906_v36, 4  ;;  %v1911_v44 = vrot.slane %v1909_v37, 5  ;;  %v1915_v45 = vshll.u32 %v3785_v13, 16  ;;  %v3848_v22 = vld [vmem:[%s4288_s17 + $0x6c] sm:$0xe] }
  0x22   : > { %1316 = vrot.lane.b32.xlu1 %v1308_v38, %s4185_s19  ;;  %v340_v47 = vsel %vm4310_vm5, %v335_v39, %v339_v16  ;;  %v350_v48 = vsel %vm4310_vm5, %v345_v40, %v349_v26  ;;  %v2868_v49 = vunpack.c.l.b16 %v2135_v42  ;;  %v1919_v50 = vshrl.u32 %v3785_v13, 16  ;;  %v4343_v16 = vld [vmem:[%s4288_s17 + $0x14] sm:$0x1]  ;;  %v3616_v40 = vld [vmem:[%s4288_s17 + $0xc] sm:$0xe] }
  0x23   : > { %v1252_v53 = vunpack.c.l.b16 %v340_v47  ;;  %v1253_v54 = vunpack.c.l.b16 %v350_v48  ;;  %v1912_v55 = vor.u32 %v1911_v44, %v1908_v43  ;;  %v1917_v56 = vrot.slane %v1915_v45, 5 }
  0x24   : > { %v2883_v57 = vpack.c.b16 %v2868_v49, %v2867_v41  ;;  %v1921_v58 = vrot.slane %v1919_v50, 4  ;;  %v1925_v59 = vshll.u32 %v3800_v17, 16  ;;  %v2211_v61 = vshrl.u32 %v3824_v46, 16  ;;  %v3864_v49 = vld [vmem:[%s4288_s17 + $0x78] sm:$0xf] }
  0x25   : > { %v1268_v62 = vpack.c.b16 %v1253_v54, %v1252_v53  ;;  %v1913_v63 = vrot.slane %v1912_v55, 4  ;;  %v2214_v1 = vshll.u32 %v3824_v46, 16  ;;  %v2220_v2 = vshll.u32 %v4325_v51, 16  ;;  %2939 = vrot.lane.b32.xlu2 %v4045_v52, %s4184_s18 }
  0x26   : > { %v1922_v4 = vor.u32 %v1921_v58, %v1917_v56  ;;  %v1927_v5 = vrot.slane %v1925_v59, 5  ;;  %v2213_v6 = vrot.slane %v2211_v61, 4  ;;  %v2224_v7 = vshrl.u32 %v4325_v51, 16  ;;  %v4368_v58 = vld [vmem:[%s4288_s17 + $0x7c] sm:$0xf] }
  0x27   : > { %1276 = vrot.lane.b32.xlu0 %v1268_v62, %s4186_s20  ;;  %v1918_v9 = vsel %vm4310_vm5, %v1913_v63, %v1917_v56  ;;  %v2216_v10 = vrot.slane %v2214_v1, 5  ;;  %v2222_v11 = vrot.slane %v2220_v2, 5  ;;  %v2230_v12 = vshll.u32 %v4329_v60, 16 }
  0x28   : > { %v1923_v13 = vrot.slane %v1922_v4, 4  ;;  %v2827_v14 = vunpack.c.l.b16 %v1918_v9  ;;  %v2226_v15 = vrot.slane %v2224_v7, 4  ;;  %v636_v17 = vshrl.u32 %v3592_v3, 16  ;;  %v4378_v4 = vld [vmem:[%s4288_s17 + $0x80] sm:$0x1] }
  0x29   : > { %v2217_v18 = vor.u32 %v2216_v10, %v2213_v6  ;;  %v2232_v19 = vrot.slane %v2230_v12, 5  ;;  %v639_v20 = vshll.u32 %v3592_v3, 16  ;;  %v645_v21 = vshll.u32 %v4335_v8, 16  ;;  %v4383_v10 = vld [vmem:[%s4288_s17 + $0x1c] sm:$0xf] }
  0x2a   : > { %2891 = vrot.lane.b32.xlu1 %v2883_v57, %s4185_s19  ;;  %v1928_v23 = vsel %vm4310_vm5, %v1923_v13, %v1927_v5  ;;  %v2227_v24 = vor.u32 %v2226_v15, %v2222_v11  ;;  %v638_v25 = vrot.slane %v636_v17, 4  ;;  %v649_v26 = vshrl.u32 %v4335_v8, 16  ;;  %v3632_v5 = vld [vmem:[%s4288_s17 + $0x18] sm:$0xf] }
  0x2b   : > { %v2828_v27 = vunpack.c.l.b16 %v1928_v23  ;;  %v2218_v28 = vrot.slane %v2217_v18, 4  ;;  %v641_v29 = vrot.slane %v639_v20, 5  ;;  %v647_v30 = vrot.slane %v645_v21, 5  ;;  %v4027_v15 = vld [vmem:[%s4288_s17 + $0x18] sm:$0xff]  ;;  %v4391_v20 = vld [vmem:[%s4288_s17 + $0x20] sm:$0x1] }
  0x2c   : > { %v2228_v31 = vrot.slane %v2227_v24, 4  ;;  %v651_v32 = vrot.slane %v649_v26, 4  ;;  %v655_v34 = vshll.u32 %v4343_v16, 16  ;;  %v3856_v35 = vrot.slane %v3848_v22, 9 }
  0x2d   : > { %v2843_v36 = vpack.c.b16 %v2828_v27, %v2827_v14  ;;  %v2223_v37 = vsel %vm4310_vm5, %v2218_v28, %v2222_v11  ;;  %v642_v38 = vor.u32 %v641_v29, %v638_v25  ;;  %v2436_v39 = vrot.slane %v4325_v51, 5  ;;  %v302_v25 = vld [vmem:[%s4288_s17 + $0xc] sm:$0xf] }
  0x2e   : > { %v2233_v41 = vsel %vm4310_vm5, %v2228_v31, %v2232_v19  ;;  %v2955_v42 = vunpack.c.l.b16 %v2223_v37  ;;  %v652_v43 = vor.u32 %v651_v32, %v647_v30  ;;  %v657_v44 = vrot.slane %v655_v34, 5 }
  0x2f   : > { %2851 = vrot.lane.b32.xlu0 %v2843_v36, %s4186_s20  ;;  %v2956_v45 = vunpack.c.l.b16 %v2233_v41  ;;  %v643_v46 = vrot.slane %v642_v38, 4  ;;  %v2437_v47 = vsel %vm4290_vm2, %v3856_v35, %v2436_v39  ;;  %v2438_v48 = vrot.slane %v2436_v39, 4 }
  0x30   : > { %v653_v50 = vrot.slane %v652_v43, 4  ;;  %v2439_v51 = vrot.slane %v4329_v60, 5  ;;  %v2995_v52 = vunpack.c.l.b16 %v2437_v47  ;;  %v3624_v53 = vrot.slane %v3616_v40, 9  ;;  %v4407_v47 = vld [vmem:[%s4288_s17 + $0x14] sm:$0x1] }
  0x31   : > { %v2971_v54 = vpack.c.b16 %v2956_v45, %v2955_v42  ;;  %v648_v55 = vsel %vm4310_vm5, %v643_v46, %v647_v30  ;;  %v861_v56 = vrot.slane %v4335_v8, 5  ;;  %v864_v57 = vrot.slane %v4343_v16, 5  ;;  %v4398_v30 = vld [vmem:[%s4288_s17 + $0x10] sm:$0xf] }
  0x32   : > { %v658_v59 = vsel %vm4310_vm5, %v653_v50, %v657_v44  ;;  %v1380_v61 = vunpack.c.l.b16 %v648_v55  ;;  %v2440_v60 = vsel %vm4290_vm2, %v2438_v48, %v2439_v51  ;;  %v2516_v62 = vshrl.u32 %v3864_v49, 16 }
  0x33   : > { %2979 = vrot.lane.b32.xlu1 %v2971_v54, %s4187_s21  ;;  %v1381_v63 = vunpack.c.l.b16 %v658_v59  ;;  %v2996_v1 = vunpack.c.l.b16 %v2440_v60  ;;  %v862_v2 = vsel %vm4290_vm2, %v3624_v53, %v861_v56  ;;  %v863_v3 = vrot.slane %v861_v56, 4  ;;  %v4053_v56 = vld [vmem:[%s4288_s17 + $0x78] sm:$0xff] }
  0x34   : > { %v1420_v6 = vunpack.c.l.b16 %v862_v2  ;;  %v2518_v7 = vrot.slane %v2516_v62, 4  ;;  %v2519_v8 = vshll.u32 %v3864_v49, 16  ;;  %v2525_v9 = vshll.u32 %v4368_v58, 16  ;;  %v3888_v49 = vld [vmem:[%s4288_s17 + $0x78] sm:$0xe] }
  0x35   : > { %v1396_v11 = vpack.c.b16 %v1381_v63, %v1380_v61  ;;  %v3011_v12 = vpack.c.b16 %v2996_v1, %v2995_v52  ;;  %v865_v13 = vsel %vm4290_vm2, %v863_v3, %v864_v57  ;;  %v2529_v14 = vshrl.u32 %v4368_v58, 16  ;;  %v3656_v1 = vld [vmem:[%s4288_s17 + $0x18] sm:$0xe] }
  0x36   : > { %v1421_v16 = vunpack.c.l.b16 %v865_v13  ;;  %v2521_v17 = vrot.slane %v2519_v8, 5  ;;  %v2527_v18 = vrot.slane %v2525_v9, 5  ;;  %v2535_v19 = vshll.u32 %v4378_v4, 16 }
  0x37   : > { %1404 = vrot.lane.b32.xlu0 %v1396_v11, %s4187_s21  ;;  %v2531_v21 = vrot.slane %v2529_v14, 4  ;;  %v941_v22 = vshrl.u32 %v3632_v5, 16  ;;  %v944_v23 = vshll.u32 %v3632_v5, 16  ;;  %v950_v24 = vshll.u32 %v4383_v10, 16 }
  0x38   : > { %v1436_v26 = vpack.c.b16 %v1421_v16, %v1420_v6  ;;  %v2522_v27 = vor.u32 %v2521_v17, %v2518_v7  ;;  %v2537_v28 = vrot.slane %v2535_v19, 5  ;;  %v954_v29 = vshrl.u32 %v4383_v10, 16  ;;  %v3787_v19 = vld [vmem:[%s4288_s17 + $0x70] sm:$0xf] }
  0x39   : > { %v2532_v31 = vor.u32 %v2531_v21, %v2527_v18  ;;  %v943_v32 = vrot.slane %v941_v22, 4  ;;  %v946_v34 = vrot.slane %v944_v23, 5  ;;  %v952_v35 = vrot.slane %v950_v24, 5  ;;  %v3809_v21 = vld [vmem:[%s4288_s17 + $0x6c] sm:$0xe] }
  0x3a   : > { %1444 = vrot.lane.b32.xlu2 %v1436_v26, %s4188_s22  ;;  %v2523_v36 = vrot.slane %v2522_v27, 4  ;;  %v956_v37 = vrot.slane %v954_v29, 4  ;;  %v960_v38 = vshll.u32 %v4391_v20, 16  ;;  %v352_v39 = vshrl.u32 %v302_v25, 16 }
  0x3b   : > { %1492 = vrot.lane.b32.xlu1 %v4027_v15, %s4189_s23  ;;  %v2533_v40 = vrot.slane %v2532_v31, 4  ;;  %v947_v41 = vor.u32 %v946_v34, %v943_v32  ;;  %v355_v42 = vshll.u32 %v302_v25, 16  ;;  %v361_v43 = vshll.u32 %v4398_v30, 16  ;;  %v520_v25 = vld [vmem:[%s4288_s17 + $0xc] sm:$0xe] }
  0x3c   : > { %v2528_v44 = vsel %vm4310_vm5, %v2523_v36, %v2527_v18  ;;  %v957_v45 = vor.u32 %v956_v37, %v952_v35  ;;  %v962_v46 = vrot.slane %v960_v38, 5  ;;  %v354_v48 = vrot.slane %v352_v39, 4 }
  0x3d   : > { %v2538_v50 = vsel %vm4310_vm5, %v2533_v40, %v2537_v28  ;;  %v3083_v51 = vunpack.c.l.b16 %v2528_v44  ;;  %v948_v52 = vrot.slane %v947_v41, 4  ;;  %v357_v53 = vrot.slane %v355_v42, 5  ;;  %v3786_v40 = vld [vmem:[%s4288_s17 + $0x6c] sm:$0xf] }
  0x3e   : > { %v3084_v54 = vunpack.c.l.b16 %v2538_v50  ;;  %v958_v55 = vrot.slane %v957_v45, 4  ;;  %v363_v57 = vrot.slane %v361_v43, 5  ;;  %v365_v59 = vshrl.u32 %v4398_v30, 16 }
  0x3f   : > { %3019 = vrot.lane.b32.xlu0 %v3011_v12, %s4188_s22  ;;  %v953_v61 = vsel %vm4310_vm5, %v948_v52, %v952_v35  ;;  %v358_v60 = vor.u32 %v357_v53, %v354_v48  ;;  %v371_v62 = vshll.u32 %v4407_v47, 16  ;;  %v3896_v63 = vrot.slane %v3888_v49, 9 }
  0x40   : > { %v3099_v2 = vpack.c.b16 %v3084_v54, %v3083_v51  ;;  %v963_v3 = vsel %vm4310_vm5, %v958_v55, %v962_v46  ;;  %v1508_v5 = vunpack.c.l.b16 %v953_v61  ;;  %v367_v6 = vrot.slane %v365_v59, 4 }
  0x41   : > { %v1509_v7 = vunpack.c.l.b16 %v963_v3  ;;  %v359_v8 = vrot.slane %v358_v60, 4  ;;  %v373_v9 = vrot.slane %v371_v62, 5  ;;  %v2741_v11 = vrot.slane %v4368_v58, 5  ;;  %v3595_v60 = vld [vmem:[%s4288_s17 + $0x1c] sm:$0xf] }
  0x42   : > { %3067 = vrot.lane.b32.xlu2 %v4053_v56, %s4189_s23  ;;  %v368_v12 = vor.u32 %v367_v6, %v363_v57  ;;  %v2744_v13 = vrot.slane %v4378_v4, 5  ;;  %v3664_v14 = vrot.slane %v3656_v1, 9  ;;  %v1166_v15 = vrot.slane %v4383_v10, 5  ;;  %v3801_v10 = vld [vmem:[%s4288_s17 + $0x74] sm:$0x1] }
  0x43   : > { %3107 = vrot.lane.b32.xlu1 %v3099_v2, %s4190_s29  ;;  %v1524_v16 = vpack.c.b16 %v1509_v7, %v1508_v5  ;;  %v364_v17 = vsel %vm4310_vm5, %v359_v8, %v363_v57  ;;  %v2742_v58 = vsel %vm4290_vm2, %v3896_v63, %v2741_v11  ;;  %v2743_v18 = vrot.slane %v2741_v11, 4  ;;  %v3594_v57 = vld [vmem:[%s4288_s17 + $0x18] sm:$0xf]  ;;  %v3609_v7 = vld [vmem:[%s4288_s17 + $0x20] sm:$0x1] }
  0x44   : > { %v369_v22 = vrot.slane %v368_v12, 4  ;;  %v1254_v23 = vunpack.c.l.b16 %v364_v17  ;;  %v3123_v4 = vunpack.c.l.b16 %v2742_v58  ;;  %v1167_v24 = vsel %vm4290_vm2, %v3664_v14, %v1166_v15 }
  0x45   : > { %v2745_v26 = vsel %vm4290_vm2, %v2743_v18, %v2744_v13  ;;  %v1168_v27 = vrot.slane %v1166_v15, 4  ;;  %v1169_v28 = vrot.slane %v4391_v20, 5  ;;  %v1548_v29 = vunpack.c.l.b16 %v1167_v24  ;;  %v3849_v15 = vld [vmem:[%s4288_s17 + $0x78] sm:$0xe] }
  0x46   : > { %v374_v31 = vsel %vm4310_vm5, %v369_v22, %v373_v9  ;;  %v3124_v32 = vunpack.c.l.b16 %v2745_v26  ;;  %v3817_v34 = vrot.slane %v3809_v21, 9  ;;  %v2138_v35 = vrot.slane %v3787_v19, 5  ;;  %v4461_v9 = vld [vmem:[%s4288_s17 + $0x7c] sm:$0xf] }
  0x47   : > { %1532 = vrot.lane.b32.xlu0 %v1524_v16, %s4190_s29  ;;  %v1255_v36 = vunpack.c.l.b16 %v374_v31  ;;  %v1170_v37 = vsel %vm4290_vm2, %v1168_v27, %v1169_v28  ;;  %v2141_v38 = vrot.slane %v3801_v10, 5  ;;  %v3585_v39 = vrot.slane %v520_v25, 9 }
  0x48   : > { %v3139_v41 = vpack.c.b16 %v3124_v32, %v3123_v4  ;;  %v1549_v42 = vunpack.c.l.b16 %v1170_v37  ;;  %v2139_v20 = vsel %vm4290_vm2, %v3817_v34, %v2138_v35  ;;  %v2140_v43 = vrot.slane %v2138_v35, 4  ;;  %v3841_v4 = vld [vmem:[%s4288_s17 + $0x80] sm:$0x1]  ;;  %v3617_v32 = vld [vmem:[%s4288_s17 + $0x18] sm:$0xe] }
  0x49   : > { %v1269_v44 = vpack.c.b16 %v1255_v36, %v1254_v23  ;;  %v2869_v45 = vunpack.c.l.b16 %v2139_v20  ;;  %v563_v46 = vrot.slane %v4398_v30, 5  ;;  %v566_v48 = vrot.slane %v4407_v47, 5 }
  0x4a   : > { %v1564_v49 = vpack.c.b16 %v1549_v42, %v1548_v29  ;;  %v2142_v50 = vsel %vm4290_vm2, %v2140_v43, %v2141_v38  ;;  %v1930_v51 = vshrl.u32 %v3786_v40, 16  ;;  %v1933_v52 = vshll.u32 %v3786_v40, 16 }
  0x4b   : > { %1278 = vrot.lane.b32.xlu1 %v1269_v44, %s4186_s20  ;;  %v2870_v53 = vunpack.c.l.b16 %v2142_v50  ;;  %v564_v54 = vsel %vm4290_vm2, %v3585_v39, %v563_v46  ;;  %v565_v55 = vrot.slane %v563_v46, 4  ;;  %v1939_v56 = vshll.u32 %v3787_v19, 16 }
  0x4c   : > { %1572 = vrot.lane.b32.xlu2 %v1564_v49, %s4191_s8  ;;  %v1294_v30 = vunpack.c.l.b16 %v564_v54  ;;  %v1932_v47 = vrot.slane %v1930_v51, 4  ;;  %v1935_v59 = vrot.slane %v1933_v52, 5  ;;  %v1943_v61 = vshrl.u32 %v3787_v19, 16 }
  0x4d   : > { %v2884_v62 = vpack.c.b16 %v2870_v53, %v2869_v45  ;;  %v567_v63 = vsel %vm4290_vm2, %v565_v55, %v566_v48  ;;  %v1941_v1 = vrot.slane %v1939_v56, 5  ;;  %v1949_v2 = vshll.u32 %v3801_v10, 16  ;;  %v3826_v45 = vld [vmem:[%s4288_s17 + $0x78] sm:$0xf] }
  0x4e   : > { %v1295_v3 = vunpack.c.l.b16 %v567_v63  ;;  %v1936_v5 = vor.u32 %v1935_v59, %v1932_v47  ;;  %v1945_v6 = vrot.slane %v1943_v61, 4  ;;  %v660_v8 = vshrl.u32 %v3594_v57, 16  ;;  %v3634_v47 = vld [vmem:[%s4288_s17 + $0x24] sm:$0xf]  ;;  %v4046_v61 = vld [vmem:[%s4288_s17 + $0x78] sm:$0xff] }
  0x4f   : > { %3147 = vrot.lane.b32.xlu0 %v3139_v41, %s4191_s8  ;;  %v1951_v11 = vrot.slane %v1949_v2, 5  ;;  %v663_v12 = vshll.u32 %v3594_v57, 16  ;;  %v669_v13 = vshll.u32 %v3595_v60, 16  ;;  %v673_v14 = vshrl.u32 %v3595_v60, 16  ;;  %v4020_v2 = vld [vmem:[%s4288_s17 + $0x18] sm:$0xff] }
  0x50   : > { %v1309_v16 = vpack.c.b16 %v1295_v3, %v1294_v30  ;;  %v1937_v17 = vrot.slane %v1936_v5, 4  ;;  %v1946_v58 = vor.u32 %v1945_v6, %v1941_v1  ;;  %v662_v18 = vrot.slane %v660_v8, 4  ;;  %v3649_v8 = vld [vmem:[%s4288_s17 + $0x2c] sm:$0x1] }
  0x51   : > { %v665_v19 = vrot.slane %v663_v12, 5  ;;  %v671_v21 = vrot.slane %v669_v13, 5  ;;  %v675_v22 = vrot.slane %v673_v14, 4  ;;  %v679_v23 = vshll.u32 %v3609_v7, 16 }
  0x52   : > { %v1942_v24 = vsel %vm4310_vm5, %v1937_v17, %v1941_v1  ;;  %v1947_v10 = vrot.slane %v1946_v58, 4  ;;  %v3857_v25 = vrot.slane %v3849_v15, 9  ;;  %v2443_v26 = vrot.slane %v4461_v9, 5  ;;  %v3635_v1 = vld [vmem:[%s4288_s17 + $0x28] sm:$0xf] }
  0x53   : > { %2893 = vrot.lane.b32.xlu1 %v2884_v62, %s4185_s19  ;;  %v2829_v27 = vunpack.c.l.b16 %v1942_v24  ;;  %v666_v28 = vor.u32 %v665_v19, %v662_v18  ;;  %v676_v29 = vor.u32 %v675_v22, %v671_v21  ;;  %v681_v31 = vrot.slane %v679_v23, 5  ;;  %v3889_v15 = vld [vmem:[%s4288_s17 + $0x84] sm:$0xe]  ;;  %v4498_v18 = vld [vmem:[%s4288_s17 + $0x88] sm:$0xf] }
  0x54   : > { %v1952_v34 = vsel %vm4310_vm5, %v1947_v10, %v1951_v11  ;;  %v2444_v35 = vsel %vm4290_vm2, %v3857_v25, %v2443_v26  ;;  %v2445_v36 = vrot.slane %v2443_v26, 4  ;;  %v2446_v37 = vrot.slane %v3841_v4, 5  ;;  %v4501_v19 = vld [vmem:[%s4288_s17 + $0x8c] sm:$0x1]  ;;  %v3657_v24 = vld [vmem:[%s4288_s17 + $0x24] sm:$0xe] }
  0x55   : > { %v2830_v38 = vunpack.c.l.b16 %v1952_v34  ;;  %v667_v39 = vrot.slane %v666_v28, 4  ;;  %v677_v40 = vrot.slane %v676_v29, 4  ;;  %v2997_v41 = vunpack.c.l.b16 %v2444_v35 }
  0x56   : > { %v2447_v42 = vsel %vm4290_vm2, %v2445_v36, %v2446_v37  ;;  %v3625_v20 = vrot.slane %v3617_v32, 9  ;;  %v868_v43 = vrot.slane %v3595_v60, 5  ;;  %v871_v44 = vrot.slane %v3609_v7, 5 }
  0x57   : > { %1318 = vrot.lane.b32.xlu0 %v1309_v16, %s4185_s19  ;;  %v2844_v46 = vpack.c.b16 %v2830_v38, %v2829_v27  ;;  %v672_v48 = vsel %vm4310_vm5, %v667_v39, %v671_v21  ;;  %v682_v49 = vsel %vm4310_vm5, %v677_v40, %v681_v31  ;;  %v2998_v50 = vunpack.c.l.b16 %v2447_v42 }
  0x58   : > { %v1382_v51 = vunpack.c.l.b16 %v672_v48  ;;  %v1383_v52 = vunpack.c.l.b16 %v682_v49  ;;  %v869_v53 = vsel %vm4290_vm2, %v3625_v20, %v868_v43  ;;  %v870_v54 = vrot.slane %v868_v43, 4 }
  0x59   : > { %2853 = vrot.lane.b32.xlu2 %v2844_v46, %s4186_s20  ;;  %v3012_v55 = vpack.c.b16 %v2998_v50, %v2997_v41  ;;  %v1422_v56 = vunpack.c.l.b16 %v869_v53  ;;  %v2235_v57 = vshrl.u32 %v3826_v45, 16  ;;  %v2238_v30 = vshll.u32 %v3826_v45, 16  ;;  %v3866_v50 = vld [vmem:[%s4288_s17 + $0x84] sm:$0xf] }
  0x5a   : > { %v1397_v59 = vpack.c.b16 %v1383_v52, %v1382_v51  ;;  %v872_v60 = vsel %vm4290_vm2, %v870_v54, %v871_v44  ;;  %v2244_v62 = vshll.u32 %v4461_v9, 16  ;;  %v2248_v63 = vshrl.u32 %v4461_v9, 16 }
  0x5b   : > { %v1423_v3 = vunpack.c.l.b16 %v872_v60  ;;  %v2237_v5 = vrot.slane %v2235_v57, 4  ;;  %v2240_v6 = vrot.slane %v2238_v30, 5  ;;  %v2254_v7 = vshll.u32 %v3841_v4, 16  ;;  %v521_v60 = vld [vmem:[%s4288_s17 + $0x18] sm:$0xe] }
  0x5c   : > { %1406 = vrot.lane.b32.xlu1 %v1397_v59, %s4187_s21  ;;  %v2246_v11 = vrot.slane %v2244_v62, 5  ;;  %v2250_v12 = vrot.slane %v2248_v63, 4  ;;  %v965_v13 = vshrl.u32 %v3634_v47, 16  ;;  %v968_v14 = vshll.u32 %v3634_v47, 16 }
  0x5d   : > { %v1437_v16 = vpack.c.b16 %v1423_v3, %v1422_v56  ;;  %v2241_v17 = vor.u32 %v2240_v6, %v2237_v5  ;;  %v2256_v9 = vrot.slane %v2254_v7, 5  ;;  %v974_v58 = vshll.u32 %v3635_v1, 16  ;;  %v4532_v3 = vld [vmem:[%s4288_s17 + $0x1c] sm:$0xf]  ;;  %v4535_v5 = vld [vmem:[%s4288_s17 + $0x20] sm:$0x1] }
  0x5e   : > { %v2251_v21 = vor.u32 %v2250_v12, %v2246_v11  ;;  %v967_v22 = vrot.slane %v965_v13, 4  ;;  %v970_v23 = vrot.slane %v968_v14, 5  ;;  %v978_v4 = vshrl.u32 %v3635_v1, 16  ;;  %v3788_v12 = vld [vmem:[%s4288_s17 + $0x78] sm:$0xf] }
  0x5f   : > { %2941 = vrot.lane.b32.xlu0 %v4046_v61, %s4184_s18  ;;  %v2242_v10 = vrot.slane %v2241_v17, 4  ;;  %v976_v25 = vrot.slane %v974_v58, 5  ;;  %v984_v26 = vshll.u32 %v3649_v8, 16  ;;  %v3897_v27 = vrot.slane %v3889_v15, 9  ;;  %v4540_v13 = vld [vmem:[%s4288_s17 + $0x7c] sm:$0xf] }
  0x60   : > { %v2252_v28 = vrot.slane %v2251_v21, 4  ;;  %v971_v29 = vor.u32 %v970_v23, %v967_v22  ;;  %v980_v31 = vrot.slane %v978_v4, 4  ;;  %v2748_v32 = vrot.slane %v4498_v18, 5 }
  0x61   : > { %1366 = vrot.lane.b32.xlu2 %v4020_v2, %s4184_s18  ;;  %v2247_v34 = vsel %vm4310_vm5, %v2242_v10, %v2246_v11  ;;  %v986_v35 = vrot.slane %v984_v26, 5  ;;  %v2751_v36 = vrot.slane %v4501_v19, 5  ;;  %v3665_v37 = vrot.slane %v3657_v24, 9  ;;  %v4028_v10 = vld [vmem:[%s4288_s17 + $0x24] sm:$0xff] }
  0x62   : > { %v2257_v38 = vsel %vm4310_vm5, %v2252_v28, %v2256_v9  ;;  %v2957_v39 = vunpack.c.l.b16 %v2247_v34  ;;  %v972_v40 = vrot.slane %v971_v29, 4  ;;  %v981_v41 = vor.u32 %v980_v31, %v976_v25  ;;  %v4054_v9 = vld [vmem:[%s4288_s17 + $0x84] sm:$0xff]  ;;  %v304_v29 = vld [vmem:[%s4288_s17 + $0x18] sm:$0xf]  ;;  %v4553_v34 = vld [vmem:[%s4288_s17 + $0x80] sm:$0x1] }
  0x63   : > { %v2958_v42 = vunpack.c.l.b16 %v2257_v38  ;;  %v2749_v20 = vsel %vm4290_vm2, %v3897_v27, %v2748_v32  ;;  %v2750_v43 = vrot.slane %v2748_v32, 4  ;;  %v1173_v44 = vrot.slane %v3635_v1, 5 }
  0x64   : > { %3021 = vrot.lane.b32.xlu1 %v3012_v55, %s4188_s22  ;;  %v977_v45 = vsel %vm4310_vm5, %v972_v40, %v976_v25  ;;  %v982_v46 = vrot.slane %v981_v41, 4  ;;  %v3125_v48 = vunpack.c.l.b16 %v2749_v20  ;;  %v1176_v49 = vrot.slane %v3649_v8, 5 }
  0x65   : > { %v2972_v51 = vpack.c.b16 %v2958_v42, %v2957_v39  ;;  %v1510_v52 = vunpack.c.l.b16 %v977_v45  ;;  %v2752_v53 = vsel %vm4290_vm2, %v2750_v43, %v2751_v36  ;;  %v1174_v54 = vsel %vm4290_vm2, %v3665_v37, %v1173_v44 }
  0x66   : > { %v987_v55 = vsel %vm4310_vm5, %v982_v46, %v986_v35  ;;  %v3126_v56 = vunpack.c.l.b16 %v2752_v53  ;;  %v1175_v57 = vrot.slane %v1173_v44, 4  ;;  %v2540_v47 = vshrl.u32 %v3866_v50, 16  ;;  %v3810_v53 = vld [vmem:[%s4288_s17 + $0x78] sm:$0xe] }
  0x67   : > { %1446 = vrot.lane.b32.xlu0 %v1437_v16, %s4188_s22  ;;  %v1511_v30 = vunpack.c.l.b16 %v987_v55  ;;  %v2543_v59 = vshll.u32 %v3866_v50, 16  ;;  %v2549_v61 = vshll.u32 %v4498_v18, 16  ;;  %v1550_v63 = vunpack.c.l.b16 %v1174_v54 }
  0x68   : > { %v1177_v62 = vsel %vm4290_vm2, %v1175_v57, %v1176_v49  ;;  %v2553_v1 = vshrl.u32 %v4498_v18, 16  ;;  %v2559_v2 = vshll.u32 %v4501_v19, 16  ;;  %v3140_v7 = vpack.c.b16 %v3126_v56, %v3125_v48 }
  0x69   : > { %2981 = vrot.lane.b32.xlu2 %v2972_v51, %s4187_s21  ;;  %v1525_v6 = vpack.c.b16 %v1511_v30, %v1510_v52  ;;  %v2542_v8 = vrot.slane %v2540_v47, 4  ;;  %v2545_v11 = vrot.slane %v2543_v59, 5  ;;  %v1551_v14 = vunpack.c.l.b16 %v1177_v62  ;;  %v4567_v30 = vld [vmem:[%s4288_s17 + $0x28] sm:$0xf]  ;;  %v3618_v62 = vld [vmem:[%s4288_s17 + $0x24] sm:$0xe] }
  0x6a   : > { %v2551_v15 = vrot.slane %v2549_v61, 5  ;;  %v2555_v16 = vrot.slane %v2553_v1, 4  ;;  %v3586_v17 = vrot.slane %v521_v60, 9  ;;  %v2561_v18 = vrot.slane %v2559_v2, 5 }
  0x6b   : > { %v2546_v58 = vor.u32 %v2545_v11, %v2542_v8  ;;  %v570_v19 = vrot.slane %v4532_v3, 5  ;;  %v573_v21 = vrot.slane %v4535_v5, 5  ;;  %v1954_v23 = vshrl.u32 %v3788_v12, 16 }
  0x6c   : > { %1534 = vrot.lane.b32.xlu1 %v1525_v6, %s4190_s29  ;;  %v2556_v22 = vor.u32 %v2555_v16, %v2551_v15  ;;  %v1957_v4 = vshll.u32 %v3788_v12, 16  ;;  %v1963_v24 = vshll.u32 %v4540_v13, 16  ;;  %v1967_v28 = vshrl.u32 %v4540_v13, 16 }
  0x6d   : > { %v2547_v25 = vrot.slane %v2546_v58, 4  ;;  %v571_v26 = vsel %vm4290_vm2, %v3586_v17, %v570_v19  ;;  %v572_v27 = vrot.slane %v570_v19, 4  ;;  %v1565_v31 = vpack.c.b16 %v1551_v14, %v1550_v63 }
  0x6e   : > { %v2557_v32 = vrot.slane %v2556_v22, 4  ;;  %v1956_v35 = vrot.slane %v1954_v23, 4  ;;  %v1959_v36 = vrot.slane %v1957_v4, 5  ;;  %v1965_v39 = vrot.slane %v1963_v24, 5  ;;  %v3829_v23 = vld [vmem:[%s4288_s17 + $0x88] sm:$0xf] }
  0x6f   : > { %3069 = vrot.lane.b32.xlu0 %v4054_v9, %s4189_s23  ;;  %v2552_v37 = vsel %vm4310_vm5, %v2547_v25, %v2551_v15  ;;  %v574_v38 = vsel %vm4290_vm2, %v572_v27, %v573_v21  ;;  %v1969_v40 = vrot.slane %v1967_v28, 4  ;;  %v1296_v20 = vunpack.c.l.b16 %v571_v26  ;;  %v3842_v28 = vld [vmem:[%s4288_s17 + $0x8c] sm:$0x1] }
  0x70   : > { %v2562_v41 = vsel %vm4310_vm5, %v2557_v32, %v2561_v18  ;;  %v3085_v42 = vunpack.c.l.b16 %v2552_v37  ;;  %v1960_v43 = vor.u32 %v1959_v36, %v1956_v35  ;;  %v1973_v46 = vshll.u32 %v4553_v34, 16  ;;  %v3828_v18 = vld [vmem:[%s4288_s17 + $0x84] sm:$0xf] }
  0x71   : > { %1494 = vrot.lane.b32.xlu2 %v4028_v10, %s4189_s23  ;;  %v3086_v44 = vunpack.c.l.b16 %v2562_v41  ;;  %v1970_v45 = vor.u32 %v1969_v40, %v1965_v39  ;;  %v376_v48 = vshrl.u32 %v304_v29, 16  ;;  %v1297_v49 = vunpack.c.l.b16 %v574_v38  ;;  %v3596_v37 = vld [vmem:[%s4288_s17 + $0x24] sm:$0xf] }
  0x72   : > { %v1961_v50 = vrot.slane %v1960_v43, 4  ;;  %v379_v51 = vshll.u32 %v304_v29, 16  ;;  %v385_v52 = vshll.u32 %v4532_v3, 16  ;;  %v1975_v56 = vrot.slane %v1973_v46, 5 }
  0x73   : > { %v3100_v54 = vpack.c.b16 %v3086_v44, %v3085_v42  ;;  %v1971_v55 = vrot.slane %v1970_v45, 4  ;;  %v378_v57 = vrot.slane %v376_v48, 4  ;;  %v389_v60 = vshrl.u32 %v4532_v3, 16  ;;  %v4581_v3 = vld [vmem:[%s4288_s17 + $0x2c] sm:$0x1] }
  0x74   : > { %3149 = vrot.lane.b32.xlu1 %v3140_v7, %s4191_s8  ;;  %v1966_v47 = vsel %vm4310_vm5, %v1961_v50, %v1965_v39  ;;  %v381_v59 = vrot.slane %v379_v51, 5  ;;  %v387_v61 = vrot.slane %v385_v52, 5  ;;  %v395_v2 = vshll.u32 %v4535_v5, 16  ;;  %v3850_v50 = vld [vmem:[%s4288_s17 + $0x84] sm:$0xe] }
  0x75   : > { %v1976_v63 = vsel %vm4310_vm5, %v1971_v55, %v1975_v56  ;;  %v2831_v1 = vunpack.c.l.b16 %v1966_v47  ;;  %v3818_v6 = vrot.slane %v3810_v53, 9  ;;  %v391_v7 = vrot.slane %v389_v60, 4  ;;  %v4047_v51 = vld [vmem:[%s4288_s17 + $0x84] sm:$0xff] }
  0x76   : > { %v2832_v8 = vunpack.c.l.b16 %v1976_v63  ;;  %v382_v11 = vor.u32 %v381_v59, %v378_v57  ;;  %v2145_v12 = vrot.slane %v4540_v13, 5  ;;  %v2148_v14 = vrot.slane %v4553_v34, 5 }
  0x77   : > { %1574 = vrot.lane.b32.xlu0 %v1565_v31, %s4191_s8  ;;  %v3626_v15 = vrot.slane %v3618_v62, 9  ;;  %v875_v16 = vrot.slane %v4567_v30, 5  ;;  %v1310_v17 = vpack.c.b16 %v1297_v49, %v1296_v20  ;;  %v392_v5 = vor.u32 %v391_v7, %v387_v61  ;;  %v4608_v56 = vpop.permute.xlu2 %1364 }
  0x78   : > { %v383_v9 = vrot.slane %v382_v11, 4  ;;  %v397_v58 = vrot.slane %v395_v2, 5  ;;  %v2845_v19 = vpack.c.b16 %v2832_v8, %v2831_v1  ;;  %v2146_v13 = vsel %vm4290_vm2, %v3818_v6, %v2145_v12  ;;  %v4021_v2 = vld [vmem:[%s4288_s17 + $0x24] sm:$0xff] }
  0x79   : > { %3109 = vrot.lane.b32.xlu2 %v3100_v54, %s4190_s29  ;;  %v2147_v21 = vrot.slane %v2145_v12, 4  ;;  %v877_v22 = vrot.slane %v875_v16, 4  ;;  %v393_v24 = vrot.slane %v392_v5, 4  ;;  %v876_v10 = vsel %vm4290_vm2, %v3626_v15, %v875_v16  ;;  %v4622_v5 = vld [vmem:[%s4288_s17 + $0xa0] sm:$0xf] }
  0x7a   : > { %v388_v4 = vsel %vm4310_vm5, %v383_v9, %v387_v61  ;;  %v878_v25 = vrot.slane %v4581_v3, 5  ;;  %v2259_v29 = vshrl.u32 %v3828_v18, 16  ;;  %v2262_v31 = vshll.u32 %v3828_v18, 16 }
  0x7b   : > { %v1256_v26 = vunpack.c.l.b16 %v388_v4  ;;  %v2149_v27 = vsel %vm4290_vm2, %v2147_v21, %v2148_v14  ;;  %v398_v32 = vsel %vm4310_vm5, %v393_v24, %v397_v58  ;;  %v2871_v34 = vunpack.c.l.b16 %v2146_v13 }
  0x7c   : > { %1320 = vrot.lane.b32.xlu1 %v1310_v17, %s4185_s19  ;;  %v879_v35 = vsel %vm4290_vm2, %v877_v22, %v878_v25  ;;  %v2268_v36 = vshll.u32 %v3829_v23, 16  ;;  %v1257_v38 = vunpack.c.l.b16 %v398_v32  ;;  %v1424_v39 = vunpack.c.l.b16 %v876_v10  ;;  %v4635_v25 = vld [vmem:[%s4288_s17 + $0xa4] sm:$0x1] }
  0x7d   : > { %v2261_v40 = vrot.slane %v2259_v29, 4  ;;  %v2264_v41 = vrot.slane %v2262_v31, 5  ;;  %v2872_v42 = vunpack.c.l.b16 %v2149_v27  ;;  %v2272_v43 = vshrl.u32 %v3829_v23, 16 }
  0x7e   : > { %v2270_v20 = vrot.slane %v2268_v36, 5  ;;  %v2278_v44 = vshll.u32 %v3842_v28, 16  ;;  %v1270_v45 = vpack.c.b16 %v1257_v38, %v1256_v26  ;;  %v1425_v46 = vunpack.c.l.b16 %v879_v35  ;;  %v4644_v35 = vld [vmem:[%s4288_s17 + $0x34] sm:$0xf] }
  0x7f   : > { %2855 = vrot.lane.b32.xlu0 %v2845_v19, %s4186_s20  ;;  %v2265_v48 = vor.u32 %v2264_v41, %v2261_v40  ;;  %v684_v49 = vshrl.u32 %v3596_v37, 16  ;;  %v2274_v52 = vrot.slane %v2272_v43, 4  ;;  %v687_v54 = vshll.u32 %v3596_v37, 16  ;;  %v4646_v40 = vpop.permute.xlu2 %2939 }
  0x80   : > { %v2280_v53 = vrot.slane %v2278_v44, 5  ;;  %v693_v55 = vshll.u32 %v4567_v30, 16  ;;  %v697_v59 = vshrl.u32 %v4567_v30, 16  ;;  %v703_v61 = vshll.u32 %v4581_v3, 16  ;;  %v3794_v30 = vld [vmem:[%s4288_s17 + $0x9c] sm:$0xf] }
  0x81   : > { %1280 = vrot.lane.b32.xlu2 %v1270_v45, %s4186_s20  ;;  %v2266_v57 = vrot.slane %v2265_v48, 4  ;;  %v686_v47 = vrot.slane %v684_v49, 4  ;;  %v2275_v60 = vor.u32 %v2274_v52, %v2270_v20  ;;  %v689_v62 = vrot.slane %v687_v54, 5 }
  0x82   : > { %v695_v63 = vrot.slane %v693_v55, 5  ;;  %v3858_v1 = vrot.slane %v3850_v50, 9  ;;  %v699_v8 = vrot.slane %v697_v59, 4  ;;  %v2450_v11 = vrot.slane %v3829_v23, 5  ;;  %v310_v50 = vld [vmem:[%s4288_s17 + $0x3c] sm:$0xf] }
  0x83   : > { %v2271_v6 = vsel %vm4310_vm5, %v2266_v57, %v2270_v20  ;;  %v2885_v7 = vpack.c.b16 %v2872_v42, %v2871_v34  ;;  %v2276_v12 = vrot.slane %v2275_v60, 4  ;;  %v690_v14 = vor.u32 %v689_v62, %v686_v47  ;;  %v4651_v20 = vld [vmem:[%s4288_s17 + $0x38] sm:$0x1]  ;;  %v4658_v55 = vld [vmem:[%s4288_s17 + $0x40] sm:$0xf]  ;;  %v4055_v60 = vld [vmem:[%s4288_s17 + $0x90] sm:$0xff] }
  0x84   : > { %2943 = vrot.lane.b32.xlu1 %v4047_v51, %s4184_s18  ;;  %v2453_v15 = vrot.slane %v3842_v28, 5  ;;  %v700_v16 = vor.u32 %v699_v8, %v695_v63  ;;  %v705_v3 = vrot.slane %v703_v61, 5  ;;  %v4619_v17 = vsel %vm4290_vm2, %v3858_v1, %v2450_v11  ;;  %v3636_v28 = vld [vmem:[%s4288_s17 + $0x30] sm:$0xf] }
  0x85   : > { %v2452_v9 = vrot.slane %v2450_v11, 4  ;;  %v1438_v58 = vpack.c.b16 %v1425_v46, %v1424_v39  ;;  %v2281_v18 = vsel %vm4310_vm5, %v2276_v12, %v2280_v53  ;;  %v2959_v19 = vunpack.c.l.b16 %v2271_v6 }
  0x86   : > { %v691_v13 = vrot.slane %v690_v14, 4  ;;  %v2960_v21 = vunpack.c.l.b16 %v2281_v18  ;;  %v701_v22 = vrot.slane %v700_v16, 4  ;;  %v2026_v4 = vshrl.u32 %v3794_v30, 16  ;;  %v3658_v14 = vld [vmem:[%s4288_s17 + $0x30] sm:$0xe] }
  0x87   : > { %1368 = vrot.lane.b32.xlu0 %v4021_v2, %s4184_s18  ;;  %v4629_v23 = vsel %vm4290_vm2, %v2452_v9, %v2453_v15  ;;  %v2999_v10 = vunpack.c.l.b16 %v4619_v17  ;;  %v2029_v26 = vshll.u32 %v3794_v30, 16  ;;  %v2035_v27 = vshll.u32 %v4622_v5, 16 }
  0x88   : > { %v696_v24 = vsel %vm4310_vm5, %v691_v13, %v695_v63  ;;  %v706_v29 = vsel %vm4310_vm5, %v701_v22, %v705_v3  ;;  %v3000_v32 = vunpack.c.l.b16 %v4629_v23  ;;  %v2028_v34 = vrot.slane %v2026_v4, 4  ;;  %v4029_v13 = vld [vmem:[%s4288_s17 + $0x30] sm:$0xff] }
  0x89   : > { %2895 = vrot.lane.b32.xlu2 %v2885_v7, %s4185_s19  ;;  %v1384_v31 = vunpack.c.l.b16 %v696_v24  ;;  %v2973_v36 = vpack.c.b16 %v2960_v21, %v2959_v19  ;;  %v1385_v37 = vunpack.c.l.b16 %v706_v29  ;;  %v2031_v38 = vrot.slane %v2029_v26, 5  ;;  %v4666_v7 = vld [vmem:[%s4288_s17 + $0x44] sm:$0x1] }
  0x8a   : > { %v2037_v39 = vrot.slane %v2035_v27, 5  ;;  %v2039_v41 = vshrl.u32 %v4622_v5, 16  ;;  %v2045_v42 = vshll.u32 %v4635_v25, 16  ;;  %v989_v43 = vshrl.u32 %v3636_v28, 16 }
  0x8b   : > { %v992_v44 = vshll.u32 %v3636_v28, 16  ;;  %v1398_v45 = vpack.c.b16 %v1385_v37, %v1384_v31  ;;  %v2032_v46 = vor.u32 %v2031_v38, %v2028_v34  ;;  %v998_v48 = vshll.u32 %v4644_v35, 16 }
  0x8c   : > { %1448 = vrot.lane.b32.xlu1 %v1438_v58, %s4188_s22  ;;  %v1002_v49 = vshrl.u32 %v4644_v35, 16  ;;  %v2041_v51 = vrot.slane %v2039_v41, 4  ;;  %v2047_v52 = vrot.slane %v2045_v42, 5  ;;  %v991_v53 = vrot.slane %v989_v43, 4  ;;  %v4011_v41 = vld [vmem:[%s4288_s17] sm:$0xff] }
  0x8d   : > { %v994_v54 = vrot.slane %v992_v44, 5  ;;  %v2033_v57 = vrot.slane %v2032_v46, 4  ;;  %v1000_v47 = vrot.slane %v998_v48, 5  ;;  %v1008_v61 = vshll.u32 %v4651_v20, 16 }
  0x8e   : > { %v1004_v59 = vrot.slane %v1002_v49, 4  ;;  %v2042_v62 = vor.u32 %v2041_v51, %v2037_v39  ;;  %v448_v1 = vshrl.u32 %v310_v50, 16  ;;  %v451_v2 = vshll.u32 %v310_v50, 16 }
  0x8f   : > { %2983 = vrot.lane.b32.xlu0 %v2973_v36, %s4187_s21  ;;  %v995_v63 = vor.u32 %v994_v54, %v991_v53  ;;  %v2038_v6 = vsel %vm4310_vm5, %v2033_v57, %v2037_v39  ;;  %v1010_v11 = vrot.slane %v1008_v61, 5  ;;  %v457_v12 = vshll.u32 %v4658_v55, 16  ;;  %v524_v39 = vld [vmem:[%s4288_s17 + $0x3c] sm:$0xe] }
  0x90   : > { %v1005_v8 = vor.u32 %v1004_v59, %v1000_v47  ;;  %v2043_v15 = vrot.slane %v2042_v62, 4  ;;  %v2837_v30 = vunpack.c.l.b16 %v2038_v6  ;;  %v450_v3 = vrot.slane %v448_v1, 4  ;;  %v3869_v59 = vld [vmem:[%s4288_s17 + $0x94] sm:$0xf] }
  0x91   : > { %1408 = vrot.lane.b32.xlu2 %v1398_v45, %s4187_s21  ;;  %v996_v16 = vrot.slane %v995_v63, 4  ;;  %v453_v58 = vrot.slane %v451_v2, 5  ;;  %v459_v18 = vrot.slane %v457_v12, 5  ;;  %v461_v19 = vshrl.u32 %v4658_v55, 16  ;;  %v3882_v2 = vld [vmem:[%s4288_s17 + $0x98] sm:$0x1] }
  0x92   : > { %v1006_v9 = vrot.slane %v1005_v8, 4  ;;  %v2048_v21 = vsel %vm4310_vm5, %v2043_v15, %v2047_v52  ;;  %v467_v23 = vshll.u32 %v4666_v7, 16  ;;  %v3666_v4 = vrot.slane %v3658_v14, 9 }
  0x93   : > { %v1001_v22 = vsel %vm4310_vm5, %v996_v16, %v1000_v47  ;;  %v2838_v26 = vunpack.c.l.b16 %v2048_v21  ;;  %v454_v29 = vor.u32 %v453_v58, %v450_v3  ;;  %v3013_v31 = vpack.c.b16 %v3000_v32, %v2999_v10  ;;  %v3868_v32 = vld [vmem:[%s4288_s17 + $0x90] sm:$0xf] }
  0x94   : > { %3071 = vrot.lane.b32.xlu1 %v4055_v60, %s4189_s23  ;;  %v1317_v24 = vpop.permute.xlu1 %1316  ;;  %v1011_v27 = vsel %vm4310_vm5, %v1006_v9, %v1010_v11  ;;  %v1512_v28 = vunpack.c.l.b16 %v1001_v22  ;;  %v4683_v34 = vpop.permute.xlu2 %1444  ;;  %v463_v37 = vrot.slane %v461_v19, 4  ;;  %v1180_v38 = vrot.slane %v4644_v35, 5  ;;  %v3890_v16 = vld [vmem:[%s4288_s17 + $0x90] sm:$0xe]  ;;  %v4037_v9 = vld [vmem:[%s4288_s17 + $0x60] sm:$0xff] }
  0x95   : > { %v1513_v36 = vunpack.c.l.b16 %v1011_v27  ;;  %v455_v42 = vrot.slane %v454_v29, 4  ;;  %v469_v43 = vrot.slane %v467_v23, 5  ;;  %v1183_v44 = vrot.slane %v4651_v20, 5  ;;  %v3813_v19 = vld [vmem:[%s4288_s17 + $0x9c] sm:$0xe] }
  0x96   : > { %v2848_v45 = vpack.c.b16 %v2838_v26, %v2837_v30  ;;  %v464_v46 = vor.u32 %v463_v37, %v459_v18  ;;  %v1181_v17 = vsel %vm4290_vm2, %v3666_v4, %v1180_v38  ;;  %v1182_v10 = vrot.slane %v1180_v38, 4  ;;  %v1736_v4 = vld [vmem:[%s5824_s1 + $0x10] sm:$0x3] }
  0x97   : > { %1496 = vrot.lane.b32.xlu0 %v4029_v13, %s4189_s23  ;;  %v1526_v48 = vpack.c.b16 %v1513_v36, %v1512_v28  ;;  %v460_v35 = vsel %vm4310_vm5, %v455_v42, %v459_v18  ;;  %v3589_v49 = vrot.slane %v524_v39, 9  ;;  %v1552_v52 = vunpack.c.l.b16 %v1181_v17 }
  0x98   : > { %v465_v50 = vrot.slane %v464_v46, 4  ;;  %v1184_v51 = vsel %vm4290_vm2, %v1182_v10, %v1183_v44  ;;  %v591_v53 = vrot.slane %v4658_v55, 5  ;;  %v1262_v57 = vunpack.c.l.b16 %v460_v35 }
  0x99   : > { %3023 = vrot.lane.b32.xlu2 %v3013_v31, %s4188_s22  ;;  %v1277_v20 = vpop.permute.xlu0 %1276  ;;  %v594_v47 = vrot.slane %v4666_v7, 5  ;;  %v2564_v61 = vshrl.u32 %v3868_v32, 16  ;;  %v1553_v62 = vunpack.c.l.b16 %v1184_v51  ;;  %v2567_v14 = vshll.u32 %v3868_v32, 16  ;;  %v3834_v51 = vld [vmem:[%s4288_s17 + $0xa8] sm:$0xf] }
  0x9a   : > { %v1591_v54 = vsel %vm1588_vm6, %v4011_v41, %v1277_v20  ;;  %v470_v60 = vsel %vm4310_vm5, %v465_v50, %v469_v43  ;;  %v592_v63 = vsel %vm4290_vm2, %v3589_v49, %v591_v53  ;;  %v593_v1 = vrot.slane %v591_v53, 4 }
  0x9b   : > { %v1615_v55 = vsel %vm1613_vm7, %v1591_v54, %v1317_v24  ;;  %v1263_v8 = vunpack.c.l.b16 %v470_v60  ;;  %v1302_v11 = vunpack.c.l.b16 %v592_v63  ;;  %v2566_v7 = vrot.slane %v2564_v61, 4  ;;  %v4024_v60 = vld [vmem:[%s4288_s17 + $0x48] sm:$0xff]  ;;  %v4747_v63 = vld [vmem:[%s4288_s17 + $0xb0] sm:$0x1] }
  0x9c   : > { %2861 = vrot.lane.b32.xlu1 %v2848_v45, %s4186_s20  ;;  %v2892_v6 = vpop.permute.xlu1 %2891  ;;  %v595_v12 = vsel %vm4290_vm2, %v593_v1, %v594_v47  ;;  %v2573_v15 = vshll.u32 %v3869_v59, 16  ;;  %v2577_v30 = vshrl.u32 %v3869_v59, 16  ;;  %v2583_v18 = vshll.u32 %v3882_v2, 16  ;;  %v4715_v13 = vpop.permute.xlu2 %3067 }
  0x9d   : > { %v1273_v3 = vpack.c.b16 %v1263_v8, %v1262_v57  ;;  %v1303_v58 = vunpack.c.l.b16 %v595_v12  ;;  %v2569_v21 = vrot.slane %v2567_v14, 5  ;;  %v1566_v24 = vpack.c.b16 %v1553_v62, %v1552_v52  ;;  %v4740_v57 = vld [vmem:[%s4288_s17 + $0xac] sm:$0xf] }
  0x9e   : > { %v2575_v22 = vrot.slane %v2573_v15, 5  ;;  %v2579_v23 = vrot.slane %v2577_v30, 4  ;;  %v1632_v27 = vsel %vm1630_vm8, %v1615_v55, %v4608_v56  ;;  %v3898_v28 = vrot.slane %v3890_v16, 9  ;;  %v4036_v55 = vld [vmem:[%s5824_s1 + $0x8] sm:$0xff] }
  0x9f   : > { %1536 = vrot.lane.b32.xlu0 %v1526_v48, %s4190_s29  ;;  %v1313_v26 = vpack.c.b16 %v1303_v58, %v1302_v11  ;;  %v2570_v31 = vor.u32 %v2569_v21, %v2566_v7  ;;  %v2585_v37 = vrot.slane %v2583_v18, 5  ;;  %v2755_v38 = vrot.slane %v3869_v59, 5  ;;  %v3602_v15 = vld [vmem:[%s4288_s17 + $0x48] sm:$0xf]  ;;  %v4763_v58 = vld [vmem:[%s4288_s17 + $0x4c] sm:$0xf] }
  0xa0   : > { %v2580_v36 = vor.u32 %v2579_v23, %v2575_v22  ;;  %v2758_v41 = vrot.slane %v3882_v2, 5  ;;  %v1750_v42 = vunpack.c.l.b16 %v1736_v4  ;;  %v3821_v43 = vrot.slane %v3813_v19, 9 }
  0xa1   : > { %1286 = vrot.lane.b32.xlu2 %v1273_v3, %s4186_s20  ;;  %v2852_v29 = vpop.permute.xlu0 %2851  ;;  %v2571_v45 = vrot.slane %v2570_v31, 4  ;;  %v2756_v56 = vsel %vm4290_vm2, %v3898_v28, %v2755_v38  ;;  %v2757_v10 = vrot.slane %v2755_v38, 4  ;;  %v2166_v20 = vrot.slane %v4622_v5, 5  ;;  %v4035_v28 = vld [vmem:[%s5824_s1] sm:$0xff] }
  0xa2   : > { %v3165_v39 = vsel %vm1588_vm6, %v4037_v9, %v2852_v29  ;;  %v2581_v46 = vrot.slane %v2580_v36, 4  ;;  %v1753_v32 = vpack.c.b16 %v1750_v42, %v1750_v42  ;;  %v2169_v50 = vrot.slane %v4635_v25, 5 }
  0xa3   : > { %v3188_v44 = vsel %vm1613_vm7, %v3165_v39, %v2892_v6  ;;  %v2576_v35 = vsel %vm4310_vm5, %v2571_v45, %v2575_v22  ;;  %v2759_v53 = vsel %vm4290_vm2, %v2757_v10, %v2758_v41  ;;  %v3127_v54 = vunpack.c.l.b16 %v2756_v56 }
  0xa4   : > { %1576 = vrot.lane.b32.xlu1 %v1566_v24, %s4191_s8  ;;  %v3204_v17 = vsel %vm1630_vm8, %v3188_v44, %v4646_v40  ;;  %v2586_v49 = vsel %vm4310_vm5, %v2581_v46, %v2585_v37  ;;  %v3087_v52 = vunpack.c.l.b16 %v2576_v35  ;;  %v3128_v47 = vunpack.c.l.b16 %v2759_v53  ;;  %v3853_v46 = vld [vmem:[%s4288_s17 + $0xa8] sm:$0xe] }
  0xa5   : > { %v2980_v48 = vpop.permute.xlu1 %2979  ;;  %v3088_v40 = vunpack.c.l.b16 %v2586_v49  ;;  %v1775_v59 = vsel %vm1773_vm11, %v1753_v32, 0  ;;  %v2167_v61 = vsel %vm4290_vm2, %v3821_v43, %v2166_v20  ;;  %v2168_v5 = vrot.slane %v2166_v20, 4 }
  0xa6   : > { %1782 = vmatpush.bf16.msra.mxu0 %v1775_v59  ;;  %v2877_v62 = vunpack.c.l.b16 %v2167_v61  ;;  %v2331_v1 = vshrl.u32 %v3834_v51, 16  ;;  %v2334_v2 = vshll.u32 %v3834_v51, 16  ;;  %3320 = vmatpush.bf16.msra.mxu1 %v1775_v59  ;;  %v3220_v6 = vsel %vm1647_vm9, %v3204_v17, %v2980_v48  ;;  %v4753_v11 = vpop.permute.xlu2 %1572 }
  0xa7   : > { %1326 = vrot.lane.b32.xlu0 %v1313_v26, %s4185_s19  ;;  %v3101_v25 = vpack.c.b16 %v3088_v40, %v3087_v52  ;;  %v2170_v7 = vsel %vm4290_vm2, %v2168_v5, %v2169_v50  ;;  %v2340_v12 = vshll.u32 %v4740_v57, 16  ;;  %v2344_v14 = vshrl.u32 %v4740_v57, 16  ;;  %4061 = vmatpush.bf16.msra.mxu3 %v1775_v59  ;;  %v4770_v26 = vld [vmem:[%s4288_s17 + $0x50] sm:$0x1]  ;;  %v3874_v50 = vld [vmem:[%s4288_s17 + $0xb4] sm:$0xf] }
  0xa8   : > { %4064 = vmatpush.bf16.msra.mxu2 %v1775_v59  ;;  %v2878_v16 = vunpack.c.l.b16 %v2170_v7  ;;  %v2333_v3 = vrot.slane %v2331_v1, 4  ;;  %v2336_v9 = vrot.slane %v2334_v2, 5  ;;  %v3141_v18 = vpack.c.b16 %v3128_v47, %v3127_v54  ;;  %v4038_v52 = vld [vmem:[%s4288_s17 + $0x6c] sm:$0xff]  ;;  %v4798_v7 = vld [vmem:[%s4288_s17 + $0xb8] sm:$0xf] }
  0xa9   : > { %v1405_v8 = vpop.permute.xlu0 %1404  ;;  %3111 = vrot.lane.b32.xlu2 %v3101_v25, %s4190_s29  ;;  %v2342_v19 = vrot.slane %v2340_v12, 5  ;;  %v2346_v21 = vrot.slane %v2344_v14, 4  ;;  %v2350_v22 = vshll.u32 %v4747_v63, 16  ;;  %v759_v37 = vshll.u32 %v3602_v15, 16 }
  0xaa   : > { %v1649_v30 = vsel %vm1647_vm9, %v1632_v27, %v1405_v8  ;;  %v2888_v4 = vpack.c.b16 %v2878_v16, %v2877_v62  ;;  %v2337_v24 = vor.u32 %v2336_v9, %v2333_v3  ;;  %1783 = vmatpush.bf16.msra.mxu0 %v4036_v55  ;;  %v756_v27 = vshrl.u32 %v3602_v15, 16  ;;  %3321 = vmatpush.bf16.msra.mxu1 %v4036_v55  ;;  %v3621_v16 = vld [vmem:[%s4288_s17 + $0x48] sm:$0xe] }
  0xab   : > { %v1666_v23 = vsel %vm1664_vm10, %v1649_v30, %v4683_v34  ;;  %v2347_v31 = vor.u32 %v2346_v21, %v2342_v19  ;;  %v2352_v36 = vrot.slane %v2350_v22, 5  ;;  %v765_v38 = vshll.u32 %v4763_v58, 16  ;;  %4062 = vmatpush.bf16.msra.mxu3 %v4036_v55  ;;  %v4050_v30 = vld [vmem:[%s4288_s17 + $0xa8] sm:$0xff] }
  0xac   : > { %1374 = vrot.lane.b32.xlu1 %v4024_v60, %s4184_s18  ;;  %v2338_v34 = vrot.slane %v2337_v24, 4  ;;  %v758_v39 = vrot.slane %v756_v27, 4  ;;  %v769_v41 = vshrl.u32 %v4763_v58, 16  ;;  %4065 = vmatpush.bf16.msra.mxu2 %v4036_v55  ;;  %v761_v43 = vrot.slane %v759_v37, 5 }
  0xad   : > { %v1493_v29 = vpop.permute.xlu1 %1492  ;;  %v2348_v42 = vrot.slane %v2347_v31, 4  ;;  %v767_v44 = vrot.slane %v765_v38, 5  ;;  %v775_v45 = vshll.u32 %v4770_v26, 16  ;;  %v3861_v54 = vrot.slane %v3853_v46, 9 }
  0xae   : > { %v1683_v56 = vsel %vm1681_vm12, %v1666_v23, %v1493_v29  ;;  %v2343_v17 = vsel %vm4310_vm5, %v2338_v34, %v2342_v19  ;;  %v771_v10 = vrot.slane %v769_v41, 4  ;;  %1784 = vmatpush.bf16.msra.mxu0 %v4035_v28  ;;  %v762_v49 = vor.u32 %v761_v43, %v758_v39  ;;  %3322 = vmatpush.bf16.msra.mxu1 %v4035_v28  ;;  %v3642_v41 = vld [vmem:[%s4288_s17 + $0x54] sm:$0xf] }
  0xaf   : > { %3151 = vrot.lane.b32.xlu0 %v3141_v18, %s4191_s8  ;;  %v2353_v48 = vsel %vm4310_vm5, %v2348_v42, %v2352_v36  ;;  %v2965_v35 = vunpack.c.l.b16 %v2343_v17  ;;  %v777_v20 = vrot.slane %v775_v45, 5  ;;  %4063 = vmatpush.bf16.msra.mxu3 %v4035_v28  ;;  %v2471_v61 = vrot.slane %v4740_v57, 5  ;;  %v4801_v57 = vld [vmem:[%s4288_s17 + $0xbc] sm:$0x1]  ;;  %v4825_v42 = vld [vmem:[%s4288_s17 + $0x58] sm:$0xf] }
  0xb0   : > { %v2966_v40 = vunpack.c.l.b16 %v2353_v48  ;;  %v772_v53 = vor.u32 %v771_v10, %v767_v44  ;;  %4066 = vmatpush.bf16.msra.mxu2 %v4035_v28  ;;  %v763_v59 = vrot.slane %v762_v49, 4  ;;  %v2474_v5 = vrot.slane %v4747_v63, 5  ;;  %v4032_v28 = vld [vmem:[%s4288_s17 + $0x54] sm:$0xff]  ;;  %v4837_v48 = vld [vmem:[%s4288_s17 + $0x5c] sm:$0x1] }
  0xb1   : > { %v3020_v32 = vpop.permute.xlu0 %3019  ;;  %2901 = vrot.lane.b32.xlu2 %v2888_v4, %s4185_s19  ;;  %v2636_v1 = vshrl.u32 %v3874_v50, 16  ;;  %v2473_v8 = vrot.slane %v2471_v61, 4  ;;  %v2639_v63 = vshll.u32 %v3874_v50, 16  ;;  %v2645_v22 = vshll.u32 %v4798_v7, 16 }
  0xb2   : > { %v3236_v51 = vsel %vm1664_vm10, %v3220_v6, %v3020_v32  ;;  %v2976_v25 = vpack.c.b16 %v2966_v40, %v2965_v35  ;;  %v773_v62 = vrot.slane %v772_v53, 4  ;;  %v768_v55 = vsel %vm4310_vm5, %v763_v59, %v767_v44 }
  0xb3   : > { %v2854_v47 = vpop.permute.xlu2 %2853  ;;  %v3252_v60 = vsel %vm1681_vm12, %v3236_v51, %v4715_v13  ;;  %v2472_v6 = vsel %vm4290_vm2, %v3861_v54, %v2471_v61  ;;  %v1390_v15 = vunpack.c.l.b16 %v768_v55  ;;  %v2475_v9 = vsel %vm4290_vm2, %v2473_v8, %v2474_v5  ;;  %v306_v51 = vld [vmem:[%s4288_s17 + $0x24] sm:$0xf] }
  0xb4   : > { %v4804_v12 = vsel %vm1588_vm6, %v4038_v52, %v2854_v47  ;;  %2989 = vrot.lane.b32.xlu1 %v2976_v25, %s4187_s21  ;;  %v778_v14 = vsel %vm4310_vm5, %v773_v62, %v777_v20  ;;  %v2638_v18 = vrot.slane %v2636_v1, 4  ;;  %v2641_v19 = vrot.slane %v2639_v63, 5  ;;  %v4851_v62 = vld [vmem:[%s4288_s17 + $0x28] sm:$0xf]  ;;  %v4854_v63 = vld [vmem:[%s4288_s17 + $0x2c] sm:$0x1] }
  0xb5   : > { %v3108_v2 = vpop.permute.xlu1 %3107  ;;  %v1391_v3 = vunpack.c.l.b16 %v778_v14  ;;  %v3005_v21 = vunpack.c.l.b16 %v2472_v6  ;;  %v2649_v23 = vshrl.u32 %v4798_v7, 16  ;;  %v2655_v4 = vshll.u32 %v4801_v57, 16 }
  0xb6   : > { %v4808_v13 = vsel %vm1698_vm13, %v3252_v60, %v3108_v2  ;;  %v2642_v29 = vor.u32 %v2641_v19, %v2638_v18  ;;  %v3629_v31 = vrot.slane %v3621_v16, 9  ;;  %v896_v36 = vrot.slane %v4763_v58, 5 }
  0xb7   : > { %v1401_v24 = vpack.c.b16 %v1391_v3, %v1390_v15  ;;  %v3006_v38 = vunpack.c.l.b16 %v2475_v9  ;;  %v2647_v34 = vrot.slane %v2645_v22, 5  ;;  %v2651_v39 = vrot.slane %v2649_v23, 4  ;;  %v3893_v15 = vld [vmem:[%s4288_s17 + $0xb4] sm:$0xe] }
  0xb8   : > { %v2643_v58 = vrot.slane %v2642_v29, 4  ;;  %v2657_v45 = vrot.slane %v2655_v4, 5  ;;  %v897_v46 = vsel %vm4290_vm2, %v3629_v31, %v896_v36  ;;  %v898_v17 = vrot.slane %v896_v36, 4 }
  0xb9   : > { %v1533_v27 = vpop.permute.xlu0 %1532  ;;  %2949 = vrot.lane.b32.xlu2 %v4050_v30, %s4184_s18  ;;  %1414 = vrot.lane.b32.xlu0 %v1401_v24, %s4187_s21  ;;  %v899_v10 = vrot.slane %v4770_v26, 5  ;;  %v1430_v32 = vunpack.c.l.b16 %v897_v46  ;;  %v1061_v20 = vshrl.u32 %v3642_v41, 16  ;;  %v1070_v50 = vshll.u32 %v4825_v42, 16  ;;  %v4012_v30 = vld [vmem:[%s4288_s17 + $0xc] sm:$0xff] }
  0xba   : > { %v1700_v37 = vsel %vm1698_vm13, %v1683_v56, %v1533_v27  ;;  %v2652_v56 = vor.u32 %v2651_v39, %v2647_v34  ;;  %v2648_v49 = vsel %vm4310_vm5, %v2643_v58, %v2647_v34  ;;  %v3016_v52 = vpack.c.b16 %v3006_v38, %v3005_v21  ;;  %v4878_v58 = vld [vmem:[%s4288_s17 + $0x88] sm:$0xf] }
  0xbb   : > { %v4828_v43 = vpop.permute.xlu2 %1366  ;;  %v1717_v44 = vsel %vm1715_vm14, %v1700_v37, %v4753_v11  ;;  %v1064_v11 = vshll.u32 %v3642_v41, 16  ;;  %v3093_v53 = vunpack.c.l.b16 %v2648_v49  ;;  %v900_v26 = vsel %vm4290_vm2, %v898_v17, %v899_v10 }
  0xbc   : > { %3776 = vmatmul.msk.bf16.vlgmr.msra.gmra.mxu0 %vm1756_vm15, %v1717_v44  ;;  %1502 = vrot.lane.b32.xlu1 %v4032_v28, %s4189_s23  ;;  %v2653_v40 = vrot.slane %v2652_v56, 4  ;;  %v1431_v54 = vunpack.c.l.b16 %v900_v26  ;;  %v1063_v47 = vrot.slane %v1061_v20, 4  ;;  %v1072_v61 = vrot.slane %v1070_v50, 5 }
  0xbd   : > { %v1279_v35 = vpop.permute.xlu1 %1278  ;;  %v1066_v59 = vrot.slane %v1064_v11, 5  ;;  %v1074_v25 = vshrl.u32 %v4825_v42, 16  ;;  %v1080_v60 = vshll.u32 %v4837_v48, 16  ;;  %v400_v1 = vshrl.u32 %v306_v51, 16 }
  0xbe   : > { %v2658_v5 = vsel %vm4310_vm5, %v2653_v40, %v2657_v45  ;;  %v1441_v6 = vpack.c.b16 %v1431_v54, %v1430_v32  ;;  %v403_v14 = vshll.u32 %v306_v51, 16  ;;  %v409_v4 = vshll.u32 %v4851_v62, 16  ;;  %v3811_v45 = vld [vmem:[%s4288_s17 + $0x84] sm:$0xe]  ;;  %v4890_v51 = vld [vmem:[%s4288_s17 + $0x8c] sm:$0x1] }
  0xbf   : > { %v3094_v55 = vunpack.c.l.b16 %v2658_v5  ;;  %v1067_v8 = vor.u32 %v1066_v59, %v1063_v47  ;;  %v1076_v3 = vrot.slane %v1074_v25, 4  ;;  %v1082_v9 = vrot.slane %v1080_v60, 5  ;;  %v3661_v59 = vld [vmem:[%s4288_s17 + $0x54] sm:$0xe] }
  0xc0   : > { %v402_v18 = vrot.slane %v400_v1, 4  ;;  %v405_v23 = vrot.slane %v403_v14, 5  ;;  %v419_v27 = vshll.u32 %v4854_v63, 16  ;;  %v3901_v28 = vrot.slane %v3893_v15, 9  ;;  %v522_v1 = vld [vmem:[%s4288_s17 + $0x24] sm:$0xe] }
  0xc1   : > { %v3148_v2 = vpop.permute.xlu0 %3147  ;;  %3029 = vrot.lane.b32.xlu0 %v3016_v52, %s4188_s22  ;;  %v3104_v21 = vpack.c.b16 %v3094_v55, %v3093_v53  ;;  %v1068_v22 = vrot.slane %v1067_v8, 4  ;;  %1454 = vrot.lane.b32.xlu2 %v1441_v6, %s4188_s22  ;;  %v1077_v24 = vor.u32 %v1076_v3, %v1072_v61  ;;  %v411_v37 = vrot.slane %v409_v4, 5 }
  0xc2   : > { %v3284_v16 = vsel %vm1715_vm14, %v4808_v13, %v3148_v2  ;;  %v413_v13 = vshrl.u32 %v4851_v62, 16  ;;  %v406_v36 = vor.u32 %v405_v23, %v402_v18  ;;  %v2776_v38 = vrot.slane %v4798_v7, 5 }
  0xc3   : > { %v4861_v19 = vpop.permute.xlu2 %2981  ;;  %4000 = vmatmul.msk.bf16.vlgmr.msra.gmra.mxu1 %vm1756_vm15, %v3284_v16  ;;  %v1073_v31 = vsel %vm4310_vm5, %v1068_v22, %v1072_v61  ;;  %v1594_v34 = vsel %vm1588_vm6, %v4012_v30, %v1279_v35  ;;  %v1078_v41 = vrot.slane %v1077_v24, 4  ;;  %v421_v35 = vrot.slane %v419_v27, 5  ;;  %v3598_v22 = vld [vmem:[%s4288_s17 + $0x30] sm:$0xf]  ;;  %v4918_v27 = vld [vmem:[%s4288_s17 + $0x34] sm:$0xf] }
  0xc4   : > { %3117 = vrot.lane.b32.xlu1 %v3104_v21, %s4190_s29  ;;  %v415_v44 = vrot.slane %v413_v13, 4  ;;  %v1518_v46 = vunpack.c.l.b16 %v1073_v31  ;;  %v407_v56 = vrot.slane %v406_v36, 4  ;;  %v2777_v17 = vsel %vm4290_vm2, %v3901_v28, %v2776_v38 }
  0xc5   : > { %v2894_v29 = vpop.permute.xlu1 %2893  ;;  %v2778_v7 = vrot.slane %v2776_v38, 4  ;;  %v1083_v10 = vsel %vm4310_vm5, %v1078_v41, %v1082_v9  ;;  %v2779_v49 = vrot.slane %v4801_v57, 5  ;;  %v3819_v52 = vrot.slane %v3811_v45, 9 }
  0xc6   : > { %v4875_v39 = vsel %vm1613_vm7, %v4804_v12, %v2894_v29  ;;  %v416_v32 = vor.u32 %v415_v44, %v411_v37  ;;  %v4058_v12 = vld [vmem:[%s4288_s17 + $0xb4] sm:$0xff]  ;;  %v1519_v20 = vunpack.c.l.b16 %v1083_v10  ;;  %v412_v50 = vsel %vm4310_vm5, %v407_v56, %v411_v37  ;;  %v3790_v56 = vld [vmem:[%s4288_s17 + $0x84] sm:$0xf] }
  0xc7   : > { %v2152_v40 = vrot.slane %v4878_v58, 5  ;;  %v2780_v54 = vsel %vm4290_vm2, %v2778_v7, %v2779_v49  ;;  %v3133_v47 = vunpack.c.l.b16 %v2777_v17  ;;  %v1258_v5 = vunpack.c.l.b16 %v412_v50  ;;  %v4928_v44 = vld [vmem:[%s4288_s17 + $0x38] sm:$0x1] }
  0xc8   : > { %v417_v26 = vrot.slane %v416_v32, 4  ;;  %v1529_v57 = vpack.c.b16 %v1519_v20, %v1518_v46  ;;  %v3134_v25 = vunpack.c.l.b16 %v2780_v54  ;;  %v2155_v8 = vrot.slane %v4890_v51, 5 }
  0xc9   : > { %v1319_v11 = vpop.permute.xlu0 %1318  ;;  %v2153_v60 = vsel %vm4290_vm2, %v3819_v52, %v2152_v40  ;;  %3077 = vrot.lane.b32.xlu2 %v4058_v12, %s4189_s23  ;;  %v2154_v6 = vrot.slane %v2152_v40, 4  ;;  %v3669_v30 = vrot.slane %v3661_v59, 9  ;;  %v1201_v16 = vrot.slane %v4825_v42, 5  ;;  %v4945_v59 = vld [vmem:[%s4288_s17 + $0x94] sm:$0xf] }
  0xca   : > { %v1617_v53 = vsel %vm1613_vm7, %v1594_v34, %v1319_v11  ;;  %v422_v2 = vsel %vm4310_vm5, %v417_v26, %v421_v35  ;;  %1542 = vrot.lane.b32.xlu0 %v1529_v57, %s4190_s29  ;;  %v2873_v15 = vunpack.c.l.b16 %v2153_v60  ;;  %v1204_v18 = vrot.slane %v4837_v48, 5  ;;  %v3851_v57 = vld [vmem:[%s4288_s17 + $0x90] sm:$0xe] }
  0xcb   : > { %v4897_v61 = vpop.permute.xlu2 %1494  ;;  %v1634_v55 = vsel %vm1630_vm8, %v1617_v53, %v4828_v43  ;;  %v1259_v14 = vunpack.c.l.b16 %v422_v2  ;;  %v2156_v9 = vsel %vm4290_vm2, %v2154_v6, %v2155_v8  ;;  %v3587_v21 = vrot.slane %v522_v1, 9 }
  0xcc   : > { %v577_v43 = vrot.slane %v4851_v62, 5  ;;  %v3144_v4 = vpack.c.b16 %v3134_v25, %v3133_v47  ;;  %v2874_v24 = vunpack.c.l.b16 %v2156_v9  ;;  %v1202_v13 = vsel %vm4290_vm2, %v3669_v30, %v1201_v16 }
  0xcd   : > { %v1271_v23 = vpack.c.b16 %v1259_v14, %v1258_v5  ;;  %v1203_v28 = vrot.slane %v1201_v16, 4  ;;  %v1558_v36 = vunpack.c.l.b16 %v1202_v13  ;;  %v580_v37 = vrot.slane %v4854_v63, 5 }
  0xce   : > { %v1407_v3 = vpop.permute.xlu1 %1406  ;;  %v578_v48 = vsel %vm4290_vm2, %v3587_v21, %v577_v43  ;;  %v579_v29 = vrot.slane %v577_v43, 4  ;;  %v2886_v31 = vpack.c.b16 %v2874_v24, %v2873_v15  ;;  %v708_v38 = vshrl.u32 %v3598_v22, 16  ;;  %v4957_v43 = vld [vmem:[%s4288_s17 + $0x98] sm:$0x1]  ;;  %v3619_v24 = vld [vmem:[%s4288_s17 + $0x30] sm:$0xe] }
  0xcf   : > { %v1651_v42 = vsel %vm1647_vm9, %v1634_v55, %v1407_v3  ;;  %1282 = vrot.lane.b32.xlu1 %v1271_v23, %s4186_s20  ;;  %v1205_v34 = vsel %vm4290_vm2, %v1203_v28, %v1204_v18  ;;  %v1298_v41 = vunpack.c.l.b16 %v578_v48  ;;  %v711_v45 = vshll.u32 %v3598_v22, 16 }
  0xd0   : > { %v717_v46 = vshll.u32 %v4918_v27, 16  ;;  %v1559_v10 = vunpack.c.l.b16 %v1205_v34  ;;  %v581_v63 = vsel %vm4290_vm2, %v579_v29, %v580_v37  ;;  %v710_v32 = vrot.slane %v708_v38, 4  ;;  %v312_v37 = vld [vmem:[%s4288_s17 + $0x48] sm:$0xf] }
  0xd1   : > { %v2942_v62 = vpop.permute.xlu0 %2941  ;;  %v1299_v35 = vunpack.c.l.b16 %v581_v63  ;;  %v713_v12 = vrot.slane %v711_v45, 5  ;;  %v721_v20 = vshrl.u32 %v4918_v27, 16  ;;  %v727_v50 = vshll.u32 %v4928_v44, 16 }
  0xd2   : > { %v3206_v17 = vsel %vm1630_vm8, %v4875_v39, %v2942_v62  ;;  %v719_v49 = vrot.slane %v717_v46, 5  ;;  %3157 = vrot.lane.b32.xlu0 %v3144_v4, %s4191_s8  ;;  %v1569_v11 = vpack.c.b16 %v1559_v10, %v1558_v36  ;;  %v1978_v39 = vshrl.u32 %v3790_v56, 16 }
  0xd3   : > { %v4934_v7 = vpop.permute.xlu2 %3109  ;;  %v1981_v52 = vshll.u32 %v3790_v56, 16  ;;  %v3222_v53 = vsel %vm1647_vm9, %v3206_v17, %v4861_v19  ;;  %v714_v26 = vor.u32 %v713_v12, %v710_v32  ;;  %v723_v54 = vrot.slane %v721_v20, 4  ;;  %v4048_v32 = vld [vmem:[%s4288_s17 + $0x90] sm:$0xff] }
  0xd4   : > { %v1987_v47 = vshll.u32 %v4878_v58, 16  ;;  %1582 = vrot.lane.b32.xlu2 %v1569_v11, %s4191_s8  ;;  %v1311_v5 = vpack.c.b16 %v1299_v35, %v1298_v41  ;;  %v729_v25 = vrot.slane %v727_v50, 5  ;;  %v1980_v60 = vrot.slane %v1978_v39, 4 }
  0xd5   : > { %v1983_v1 = vrot.slane %v1981_v52, 5  ;;  %v715_v2 = vrot.slane %v714_v26, 4  ;;  %v724_v55 = vor.u32 %v723_v54, %v719_v49  ;;  %v1991_v8 = vshrl.u32 %v4878_v58, 16  ;;  %v4986_v52 = vld [vmem:[%s4288_s17 + $0x4c] sm:$0xf] }
  0xd6   : > { %v3022_v40 = vpop.permute.xlu1 %3021  ;;  %v1989_v6 = vrot.slane %v1987_v47, 5  ;;  %v1997_v15 = vshll.u32 %v4890_v51, 16  ;;  %v3859_v30 = vrot.slane %v3851_v57, 9  ;;  %v2457_v16 = vrot.slane %v4945_v59, 5 }
  0xd7   : > { %2897 = vrot.lane.b32.xlu1 %v2886_v31, %s4185_s19  ;;  %v1984_v14 = vor.u32 %v1983_v1, %v1980_v60  ;;  %v720_v9 = vsel %vm4310_vm5, %v715_v2, %v719_v49  ;;  %v725_v18 = vrot.slane %v724_v55, 4  ;;  %v1993_v21 = vrot.slane %v1991_v8, 4 }
  0xd8   : > { %v3238_v58 = vsel %vm1664_vm10, %v3222_v53, %v3022_v40  ;;  %v1386_v23 = vunpack.c.l.b16 %v720_v9  ;;  %v1999_v51 = vrot.slane %v1997_v15, 5  ;;  %v2458_v48 = vsel %vm4290_vm2, %v3859_v30, %v2457_v16 }
  0xd9   : > { %v1447_v19 = vpop.permute.xlu0 %1446  ;;  %v1985_v4 = vrot.slane %v1984_v14, 4  ;;  %v730_v13 = vsel %vm4310_vm5, %v725_v18, %v729_v25  ;;  %v2459_v31 = vrot.slane %v2457_v16, 4  ;;  %v2460_v36 = vrot.slane %v4957_v43, 5 }
  0xda   : > { %v1668_v3 = vsel %vm1664_vm10, %v1651_v42, %v1447_v19  ;;  %v1994_v42 = vor.u32 %v1993_v21, %v1989_v6  ;;  %1322 = vrot.lane.b32.xlu0 %v1311_v5, %s4185_s19  ;;  %v1387_v29 = vunpack.c.l.b16 %v730_v13  ;;  %v3001_v45 = vunpack.c.l.b16 %v2458_v48  ;;  %v3870_v21 = vld [vmem:[%s4288_s17 + $0x9c] sm:$0xf]  ;;  %v4022_v48 = vld [vmem:[%s4288_s17 + $0x30] sm:$0xff] }
  0xdb   : > { %v4960_v22 = vpop.permute.xlu2 %1280  ;;  %v1685_v28 = vsel %vm1681_vm12, %v1668_v3, %v4897_v61  ;;  %v1990_v62 = vsel %vm4310_vm5, %v1985_v4, %v1989_v6  ;;  %v3627_v61 = vrot.slane %v3619_v24, 9  ;;  %v2461_v17 = vsel %vm4290_vm2, %v2459_v31, %v2460_v36  ;;  %v5015_v36 = vld [vmem:[%s4288_s17 + $0xa0] sm:$0xf] }
  0xdc   : > { %v1995_v38 = vrot.slane %v1994_v42, 4  ;;  %v2833_v34 = vunpack.c.l.b16 %v1990_v62  ;;  %v1399_v46 = vpack.c.b16 %v1387_v29, %v1386_v23  ;;  %v882_v10 = vrot.slane %v4918_v27, 5  ;;  %v4989_v27 = vld [vmem:[%s4288_s17 + $0x50] sm:$0x1] }
  0xdd   : > { %v3002_v35 = vunpack.c.l.b16 %v2461_v17  ;;  %v885_v12 = vrot.slane %v4928_v44, 5  ;;  %v472_v49 = vshrl.u32 %v312_v37, 16  ;;  %v475_v40 = vshll.u32 %v312_v37, 16  ;;  %v3830_v44 = vld [vmem:[%s4288_s17 + $0x90] sm:$0xf] }
  0xde   : > { %v1535_v41 = vpop.permute.xlu1 %1534  ;;  %v2000_v63 = vsel %vm4310_vm5, %v1995_v38, %v1999_v51  ;;  %v883_v50 = vsel %vm4290_vm2, %v3627_v61, %v882_v10  ;;  %v884_v39 = vrot.slane %v882_v10, 4  ;;  %v481_v55 = vshll.u32 %v4986_v52, 16 }
  0xdf   : > { %v1702_v56 = vsel %vm1698_vm13, %v1685_v28, %v1535_v41  ;;  %1410 = vrot.lane.b32.xlu1 %v1399_v46, %s4187_s21  ;;  %v2834_v20 = vunpack.c.l.b16 %v2000_v63  ;;  %v3014_v26 = vpack.c.b16 %v3002_v35, %v3001_v45  ;;  %v1426_v54 = vunpack.c.l.b16 %v883_v50 }
  0xe0   : > { %v474_v47 = vrot.slane %v472_v49, 4  ;;  %v886_v25 = vsel %vm4290_vm2, %v884_v39, %v885_v12  ;;  %v477_v1 = vrot.slane %v475_v40, 5  ;;  %v485_v6 = vshrl.u32 %v4986_v52, 16  ;;  %v3796_v39 = vld [vmem:[%s4288_s17 + $0xa8] sm:$0xf] }
  0xe1   : > { %v3070_v11 = vpop.permute.xlu0 %3069  ;;  %v2846_v57 = vpack.c.b16 %v2834_v20, %v2833_v34  ;;  %v1427_v2 = vunpack.c.l.b16 %v886_v25  ;;  %v491_v8 = vshll.u32 %v4989_v27, 16  ;;  %v2283_v14 = vshrl.u32 %v3830_v44, 16 }
  0xe2   : > { %v3254_v53 = vsel %vm1681_vm12, %v3238_v58, %v3070_v11  ;;  %2945 = vrot.lane.b32.xlu0 %v4048_v32, %s4184_s18  ;;  %v478_v19 = vor.u32 %v477_v1, %v474_v47  ;;  %v2286_v15 = vshll.u32 %v3830_v44, 16  ;;  %v2292_v30 = vshll.u32 %v4945_v59, 16  ;;  %v3797_v47 = vld [vmem:[%s4288_s17 + $0xac] sm:$0xf] }
  0xe3   : > { %v4993_v5 = vpop.permute.xlu2 %2895  ;;  %v3270_v60 = vsel %vm1698_vm13, %v3254_v53, %v4934_v7  ;;  %2857 = vrot.lane.b32.xlu2 %v2846_v57, %s4186_s20  ;;  %v1439_v7 = vpack.c.b16 %v1427_v2, %v1426_v54  ;;  %v483_v3 = vrot.slane %v481_v55, 5  ;;  %v487_v9 = vrot.slane %v485_v6, 4  ;;  %v4056_v2 = vld [vmem:[%s4288_s17 + $0x9c] sm:$0xff] }
  0xe4   : > { %v493_v18 = vrot.slane %v491_v8, 5  ;;  %v479_v23 = vrot.slane %v478_v19, 4  ;;  %v2285_v4 = vrot.slane %v2283_v14, 4  ;;  %v2288_v51 = vrot.slane %v2286_v15, 5 }
  0xe5   : > { %v488_v24 = vor.u32 %v487_v9, %v483_v3  ;;  %v2294_v13 = vrot.slane %v2292_v30, 5  ;;  %v2296_v42 = vshrl.u32 %v4945_v59, 16  ;;  %v2302_v28 = vshll.u32 %v4957_v43, 16  ;;  %v5019_v59 = vld [vmem:[%s4288_s17 + $0xa4] sm:$0x1] }
  0xe6   : > { %v3150_v16 = vpop.permute.xlu1 %3149  ;;  %v484_v62 = vsel %vm4310_vm5, %v479_v23, %v483_v3  ;;  %v2289_v31 = vor.u32 %v2288_v51, %v2285_v4  ;;  %v2588_v37 = vshrl.u32 %v3870_v21, 16  ;;  %v2591_v38 = vshll.u32 %v3870_v21, 16  ;;  %v3806_v30 = vld [vmem:[%s4288_s17 + $0xb0] sm:$0x1]  ;;  %v3814_v3 = vld [vmem:[%s4288_s17 + $0xa8] sm:$0xe] }
  0xe7   : > { %v3286_v58 = vsel %vm1715_vm14, %v3270_v60, %v3150_v16  ;;  %3025 = vrot.lane.b32.xlu1 %v3014_v26, %s4188_s22  ;;  %v489_v34 = vrot.slane %v488_v24, 4  ;;  %v1264_v41 = vunpack.c.l.b16 %v484_v62  ;;  %v2298_v61 = vrot.slane %v2296_v42, 4  ;;  %v4013_v21 = vld [vmem:[%s4288_s17 + $0x18] sm:$0xff] }
  0xe8   : > { %4001 = vmatmul.msk.bf16.gmra.mxu1 %vm1756_vm15, %v3286_v58  ;;  %v2290_v46 = vrot.slane %v2289_v31, 4  ;;  %v2304_v17 = vrot.slane %v2302_v28, 5  ;;  %v2590_v10 = vrot.slane %v2588_v37, 4  ;;  %v2593_v63 = vrot.slane %v2591_v38, 5 }
  0xe9   : > { %v1575_v29 = vpop.permute.xlu0 %1574  ;;  %v494_v32 = vsel %vm4310_vm5, %v489_v34, %v493_v18  ;;  %v2299_v35 = vor.u32 %v2298_v61, %v2294_v13  ;;  %v2597_v12 = vshll.u32 %v5015_v36, 16  ;;  %v2607_v50 = vshll.u32 %v5019_v59, 16  ;;  %v3639_v61 = vld [vmem:[%s4288_s17 + $0x40] sm:$0xf] }
  0xea   : > { %v1719_v45 = vsel %vm1715_vm14, %v1702_v56, %v1575_v29  ;;  %v2601_v56 = vshrl.u32 %v5015_v36, 16  ;;  %1450 = vrot.lane.b32.xlu0 %v1439_v7, %s4188_s22  ;;  %v1265_v49 = vunpack.c.l.b16 %v494_v32  ;;  %v2295_v20 = vsel %vm4310_vm5, %v2290_v46, %v2294_v13  ;;  %v3638_v13 = vld [vmem:[%s4288_s17 + $0x3c] sm:$0xf] }
  0xeb   : > { %v5021_v43 = vpop.permute.xlu2 %1408  ;;  %3777 = vmatmul.msk.bf16.gmra.mxu0 %vm1756_vm15, %v1719_v45  ;;  %1370 = vrot.lane.b32.xlu2 %v4022_v48, %s4184_s18  ;;  %v2594_v11 = vor.u32 %v2593_v63, %v2590_v10  ;;  %v2300_v40 = vrot.slane %v2299_v35, 4  ;;  %v2599_v26 = vrot.slane %v2597_v12, 5  ;;  %v2961_v57 = vunpack.c.l.b16 %v2295_v20  ;;  %v4039_v12 = vld [vmem:[%s4288_s17 + $0x78] sm:$0xff] }
  0xec   : > { %v2603_v54 = vrot.slane %v2601_v56, 4  ;;  %v1274_v44 = vpack.c.b16 %v1265_v49, %v1264_v41  ;;  %v2609_v60 = vrot.slane %v2607_v50, 5  ;;  %v2050_v6 = vshrl.u32 %v3796_v39, 16  ;;  %v4030_v50 = vld [vmem:[%s4288_s17 + $0x3c] sm:$0xff] }
  0xed   : > { %v2595_v25 = vrot.slane %v2594_v11, 4  ;;  %v2305_v1 = vsel %vm4310_vm5, %v2300_v40, %v2304_v17  ;;  %v2053_v8 = vshll.u32 %v3796_v39, 16  ;;  %v2059_v16 = vshll.u32 %v3797_v47, 16 }
  0xee   : > { %v5034_v53 = vpop.permute.xlu1 %1320  ;;  %v2604_v55 = vor.u32 %v2603_v54, %v2599_v26  ;;  %v2962_v19 = vunpack.c.l.b16 %v2305_v1  ;;  %v2063_v7 = vshrl.u32 %v3797_v47, 16  ;;  %v2052_v18 = vrot.slane %v2050_v6, 4 }
  0xef   : > { %1288 = vrot.lane.b32.xlu1 %v1274_v44, %s4186_s20  ;;  %v2600_v15 = vsel %vm4310_vm5, %v2595_v25, %v2599_v26  ;;  %v2055_v51 = vrot.slane %v2053_v8, 5  ;;  %v2061_v24 = vrot.slane %v2059_v16, 5  ;;  %v2069_v48 = vshll.u32 %v3806_v30, 16  ;;  %v3651_v26 = vld [vmem:[%s4288_s17 + $0x44] sm:$0x1] }
  0xf0   : > { %v2605_v9 = vrot.slane %v2604_v55, 4  ;;  %v2974_v58 = vpack.c.b16 %v2962_v19, %v2961_v57  ;;  %v3089_v4 = vunpack.c.l.b16 %v2600_v15  ;;  %v2065_v28 = vrot.slane %v2063_v7, 4  ;;  %v525_v7 = vld [vmem:[%s4288_s17 + $0x48] sm:$0xe] }
  0xf1   : > { %v2856_v14 = vpop.permute.xlu0 %2855  ;;  %v3822_v29 = vrot.slane %v3814_v3, 9  ;;  %v2056_v31 = vor.u32 %v2055_v51, %v2052_v18  ;;  %v2173_v37 = vrot.slane %v3797_v47, 5  ;;  %v2176_v38 = vrot.slane %v3806_v30, 5 }
  0xf2   : > { %v2610_v42 = vsel %vm4310_vm5, %v2605_v9, %v2609_v60  ;;  %3073 = vrot.lane.b32.xlu0 %v4056_v2, %s4189_s23  ;;  %v2066_v41 = vor.u32 %v2065_v28, %v2061_v24  ;;  %v2071_v45 = vrot.slane %v2069_v48, 5  ;;  %v1013_v46 = vshrl.u32 %v3638_v13, 16  ;;  %v3659_v60 = vld [vmem:[%s4288_s17 + $0x3c] sm:$0xe] }
  0xf3   : > { %v5046_v23 = vpop.permute.xlu2 %3023  ;;  %2985 = vrot.lane.b32.xlu2 %v2974_v58, %s4187_s21  ;;  %v3090_v62 = vunpack.c.l.b16 %v2610_v42  ;;  %v1016_v17 = vshll.u32 %v3638_v13, 16  ;;  %v1597_v10 = vsel %vm1588_vm6, %v4013_v21, %v4960_v22  ;;  %v2057_v32 = vrot.slane %v2056_v31, 4 }
  0xf4   : > { %v2174_v35 = vsel %vm4290_vm2, %v3822_v29, %v2173_v37  ;;  %v2067_v56 = vrot.slane %v2066_v41, 4  ;;  %v2175_v49 = vrot.slane %v2173_v37, 4  ;;  %v1015_v11 = vrot.slane %v1013_v46, 4  ;;  %v5086_v37 = vld [vmem:[%s4288_s17 + $0x58] sm:$0xf] }
  0xf5   : > { %v3102_v63 = vpack.c.b16 %v3090_v62, %v3089_v4  ;;  %v2879_v20 = vunpack.c.l.b16 %v2174_v35  ;;  %v2062_v39 = vsel %vm4310_vm5, %v2057_v32, %v2061_v24  ;;  %v1018_v22 = vrot.slane %v1016_v17, 5  ;;  %v5095_v46 = vld [vmem:[%s4288_s17 + $0x5c] sm:$0x1]  ;;  %v3622_v17 = vld [vmem:[%s4288_s17 + $0x54] sm:$0xe] }
  0xf6   : > { %v5053_v34 = vpop.permute.xlu1 %2943  ;;  %v1022_v54 = vshll.u32 %v3639_v61, 16  ;;  %v1026_v47 = vshrl.u32 %v3639_v61, 16  ;;  %v2072_v44 = vsel %vm4310_vm5, %v2067_v56, %v2071_v45  ;;  %v2839_v57 = vunpack.c.l.b16 %v2062_v39  ;;  %v3891_v35 = vld [vmem:[%s4288_s17 + $0x9c] sm:$0xe] }
  0xf7   : > { %3113 = vrot.lane.b32.xlu1 %v3102_v63, %s4190_s29  ;;  %v2177_v25 = vsel %vm4290_vm2, %v2175_v49, %v2176_v38  ;;  %v2840_v1 = vunpack.c.l.b16 %v2072_v44  ;;  %v1019_v6 = vor.u32 %v1018_v22, %v1015_v11  ;;  %v1619_v19 = vsel %vm1613_vm7, %v1597_v10, %v5034_v53  ;;  %v4051_v22 = vld [vmem:[%s4288_s17 + $0xb4] sm:$0xff] }
  0xf8   : > { %v2880_v55 = vunpack.c.l.b16 %v2177_v25  ;;  %v1024_v8 = vrot.slane %v1022_v54, 5  ;;  %v3171_v15 = vsel %vm1588_vm6, %v4039_v12, %v2856_v14  ;;  %v1028_v30 = vrot.slane %v1026_v47, 4 }
  0xf9   : > { %v1369_v40 = vpop.permute.xlu0 %1368  ;;  %v1032_v16 = vshll.u32 %v3651_v26, 16  ;;  %v2849_v3 = vpack.c.b16 %v2840_v1, %v2839_v57  ;;  %v1020_v18 = vrot.slane %v1019_v6, 4  ;;  %v3667_v21 = vrot.slane %v3659_v60, 9 }
  0xfa   : > { %v2889_v9 = vpack.c.b16 %v2880_v55, %v2879_v20  ;;  %v1029_v58 = vor.u32 %v1028_v30, %v1024_v8  ;;  %v1187_v24 = vrot.slane %v3639_v61, 5  ;;  %v1190_v13 = vrot.slane %v3651_v26, 5  ;;  %v5122_v55 = vld [vmem:[%s4288_s17 + $0xb8] sm:$0xf]  ;;  %v5134_v30 = vld [vmem:[%s4288_s17 + $0xbc] sm:$0x1] }
  0xfb   : > { %v5071_v2 = vpop.permute.xlu2 %1286  ;;  %1498 = vrot.lane.b32.xlu2 %v4030_v50, %s4189_s23  ;;  %v1034_v4 = vrot.slane %v1032_v16, 5  ;;  %2863 = vrot.lane.b32.xlu0 %v2849_v3, %s4186_s20  ;;  %v1636_v53 = vsel %vm1630_vm8, %v1619_v19, %v1369_v40  ;;  %v1025_v14 = vsel %vm4310_vm5, %v1020_v18, %v1024_v8  ;;  %v3590_v42 = vrot.slane %v525_v7, 9 }
  0xfc   : > { %v598_v28 = vrot.slane %v4986_v52, 5  ;;  %v1030_v48 = vrot.slane %v1029_v58, 4  ;;  %v1514_v29 = vunpack.c.l.b16 %v1025_v14  ;;  %v1188_v62 = vsel %vm4290_vm2, %v3667_v21, %v1187_v24  ;;  %v3604_v58 = vld [vmem:[%s4288_s17 + $0x54] sm:$0xf] }
  0xfd   : > { %v1189_v31 = vrot.slane %v1187_v24, 4  ;;  %v1554_v38 = vunpack.c.l.b16 %v1188_v62  ;;  %v601_v52 = vrot.slane %v4989_v27, 5  ;;  %v3192_v10 = vsel %vm1613_vm7, %v3171_v15, %v4993_v5 }
  0xfe   : > { %v1449_v51 = vpop.permute.xlu1 %1448  ;;  %v599_v45 = vsel %vm4290_vm2, %v3590_v42, %v598_v28  ;;  %v600_v61 = vrot.slane %v598_v28, 4  ;;  %v1035_v63 = vsel %vm4310_vm5, %v1030_v48, %v1034_v4  ;;  %v1653_v56 = vsel %vm1647_vm9, %v1636_v53, %v5021_v43  ;;  %v3836_v43 = vld [vmem:[%s4288_s17 + $0xb4] sm:$0xf] }
  0xff   : > { %2903 = vrot.lane.b32.xlu1 %v2889_v9, %s4185_s19  ;;  %v1191_v32 = vsel %vm4290_vm2, %v1189_v31, %v1190_v13  ;;  %v1515_v12 = vunpack.c.l.b16 %v1035_v63  ;;  %v1304_v20 = vunpack.c.l.b16 %v599_v45  ;;  %v3630_v11 = vrot.slane %v3622_v17, 9  ;;  %v4025_v53 = vld [vmem:[%s4288_s17 + $0x54] sm:$0xff] }
 0x100   : > { %v1555_v27 = vunpack.c.l.b16 %v1191_v32  ;;  %v602_v49 = vsel %vm4290_vm2, %v600_v61, %v601_v52  ;;  %v903_v5 = vrot.slane %v5086_v37, 5  ;;  %v906_v50 = vrot.slane %v5095_v46, 5 }
 0x101   : > { %v5089_v41 = vpop.permute.xlu0 %2983  ;;  %v1527_v39 = vpack.c.b16 %v1515_v12, %v1514_v29  ;;  %v3899_v54 = vrot.slane %v3891_v35, 9  ;;  %v2762_v47 = vrot.slane %v5015_v36, 5  ;;  %v1305_v44 = vunpack.c.l.b16 %v602_v49 }
 0x102   : > { %v1567_v40 = vpack.c.b16 %v1555_v27, %v1554_v38  ;;  %v904_v25 = vsel %vm4290_vm2, %v3630_v11, %v903_v5  ;;  %v905_v60 = vrot.slane %v903_v5, 4  ;;  %v2765_v1 = vrot.slane %v5019_v59, 5  ;;  %v5157_v5 = vld [vmem:[%s4288_s17 + $0x64] sm:$0xf] }
 0x103   : > { %v5111_v26 = vpop.permute.xlu2 %3111  ;;  %v3208_v6 = vsel %vm1630_vm8, %v3192_v10, %v5053_v34  ;;  %1538 = vrot.lane.b32.xlu2 %v1527_v39, %s4190_s29  ;;  %v1670_v36 = vsel %vm1664_vm10, %v1653_v56, %v1449_v51  ;;  %v2763_v8 = vsel %vm4290_vm2, %v3899_v54, %v2762_v47  ;;  %v2764_v19 = vrot.slane %v2762_v47, 4  ;;  %v3662_v56 = vld [vmem:[%s4288_s17 + $0x60] sm:$0xe] }
 0x104   : > { %1578 = vrot.lane.b32.xlu0 %v1567_v40, %s4191_s8  ;;  %v907_v15 = vsel %vm4290_vm2, %v905_v60, %v906_v50  ;;  %v1432_v59 = vunpack.c.l.b16 %v904_v25  ;;  %v2355_v16 = vshrl.u32 %v3836_v43, 16  ;;  %v2358_v34 = vshll.u32 %v3836_v43, 16 }
 0x105   : > { %v1433_v3 = vunpack.c.l.b16 %v907_v15  ;;  %v2766_v9 = vsel %vm4290_vm2, %v2764_v19, %v2765_v1  ;;  %v2364_v18 = vshll.u32 %v5122_v55, 16  ;;  %v2368_v21 = vshrl.u32 %v5122_v55, 16 }
 0x106   : > { %v5116_v57 = vpop.permute.xlu1 %3071  ;;  %v1314_v4 = vpack.c.b16 %v1305_v44, %v1304_v20  ;;  %v3129_v51 = vunpack.c.l.b16 %v2763_v8  ;;  %v2357_v24 = vrot.slane %v2355_v16, 4  ;;  %v2360_v13 = vrot.slane %v2358_v34, 5 }
 0x107   : > { %2951 = vrot.lane.b32.xlu1 %v4051_v22, %s4184_s18  ;;  %v3130_v14 = vunpack.c.l.b16 %v2766_v9  ;;  %v2366_v42 = vrot.slane %v2364_v18, 5  ;;  %v2370_v28 = vrot.slane %v2368_v21, 4  ;;  %v2374_v48 = vshll.u32 %v5134_v30, 16  ;;  %v5163_v22 = vld [vmem:[%s4288_s17 + $0x68] sm:$0x1]  ;;  %v4059_v21 = vld [vmem:[%s4288_s17 + $0xc0] sm:$0xff] }
 0x108   : > { %v1442_v29 = vpack.c.b16 %v1433_v3, %v1432_v59  ;;  %v2361_v62 = vor.u32 %v2360_v13, %v2357_v24  ;;  %v780_v31 = vshrl.u32 %v3604_v58, 16  ;;  %v783_v38 = vshll.u32 %v3604_v58, 16 }
 0x109   : > { %v1497_v7 = vpop.permute.xlu0 %1496  ;;  %v2371_v45 = vor.u32 %v2370_v28, %v2366_v42  ;;  %v2376_v61 = vrot.slane %v2374_v48, 5  ;;  %v789_v52 = vshll.u32 %v5086_v37, 16  ;;  %v793_v17 = vshrl.u32 %v5086_v37, 16 }
 0x10a   : > { %v2362_v63 = vrot.slane %v2361_v62, 4  ;;  %v782_v32 = vrot.slane %v780_v31, 4  ;;  %v785_v35 = vrot.slane %v783_v38, 5  ;;  %v799_v12 = vshll.u32 %v5095_v46, 16 }
 0x10b   : > { %v3224_v27 = vsel %vm1647_vm9, %v3208_v6, %v5089_v41  ;;  %1328 = vrot.lane.b32.xlu2 %v1314_v4, %s4185_s19  ;;  %v5154_v49 = vpop.permute.xlu2 %2901  ;;  %v2372_v37 = vrot.slane %v2371_v45, 4  ;;  %v791_v20 = vrot.slane %v789_v52, 5  ;;  %v795_v11 = vrot.slane %v793_v17, 4  ;;  %v3854_v41 = vld [vmem:[%s4288_s17 + $0xb4] sm:$0xe] }
 0x10c   : > { %1376 = vrot.lane.b32.xlu0 %v4025_v53, %s4184_s18  ;;  %v1687_v50 = vsel %vm1681_vm12, %v1670_v36, %v1497_v7  ;;  %v2367_v46 = vsel %vm4310_vm5, %v2362_v63, %v2366_v42  ;;  %v786_v39 = vor.u32 %v785_v35, %v782_v32  ;;  %v801_v40 = vrot.slane %v799_v12, 5  ;;  %v5191_v42 = vld [vmem:[%s4288_s17 + $0xc8] sm:$0x1]  ;;  %v3792_v52 = vld [vmem:[%s4288_s17 + $0x90] sm:$0xf] }
 0x10d   : > { %v2377_v54 = vsel %vm4310_vm5, %v2372_v37, %v2376_v61  ;;  %v2967_v47 = vunpack.c.l.b16 %v2367_v46  ;;  %v796_v44 = vor.u32 %v795_v11, %v791_v20  ;;  %v3670_v25 = vrot.slane %v3662_v56, 9  ;;  %v5212_v12 = vld [vmem:[%s4288_s17 + $0x94] sm:$0xf]  ;;  %v5215_v11 = vld [vmem:[%s4288_s17 + $0x98] sm:$0x1] }
 0x10e   : > { %v5146_v10 = vpop.permute.xlu1 %2861  ;;  %v3142_v60 = vpack.c.b16 %v3130_v14, %v3129_v51  ;;  %v2968_v1 = vunpack.c.l.b16 %v2377_v54  ;;  %v787_v6 = vrot.slane %v786_v39, 4  ;;  %v1208_v36 = vrot.slane %v5157_v5, 5  ;;  %v5184_v51 = vld [vmem:[%s4288_s17 + $0xc4] sm:$0xf] }
 0x10f   : > { %1456 = vrot.lane.b32.xlu1 %v1442_v29, %s4188_s22  ;;  %v797_v8 = vrot.slane %v796_v44, 4  ;;  %v1211_v19 = vrot.slane %v5163_v22, 5  ;;  %v3862_v15 = vrot.slane %v3854_v41, 9  ;;  %v2478_v59 = vrot.slane %v5122_v55, 5  ;;  %v3876_v55 = vld [vmem:[%s4288_s17 + $0xc0] sm:$0xf] }
 0x110   : > { %v2977_v16 = vpack.c.b16 %v2968_v1, %v2967_v47  ;;  %v792_v34 = vsel %vm4310_vm5, %v787_v6, %v791_v20  ;;  %v1209_v7 = vsel %vm4290_vm2, %v3670_v25, %v1208_v36  ;;  %v1210_v3 = vrot.slane %v1208_v36, 4  ;;  %v3644_v36 = vld [vmem:[%s4288_s17 + $0x60] sm:$0xf] }
 0x111   : > { %v1537_v43 = vpop.permute.xlu0 %1536  ;;  %v3240_v9 = vsel %vm1664_vm10, %v3224_v27, %v5046_v23  ;;  %v802_v58 = vsel %vm4310_vm5, %v797_v8, %v801_v40  ;;  %v1392_v4 = vunpack.c.l.b16 %v792_v34  ;;  %v2479_v14 = vsel %vm4290_vm2, %v3862_v15, %v2478_v59 }
 0x112   : > { %v1704_v18 = vsel %vm1698_vm13, %v1687_v50, %v1537_v43  ;;  %v1393_v24 = vunpack.c.l.b16 %v802_v58  ;;  %v1212_v53 = vsel %vm4290_vm2, %v1210_v3, %v1211_v19  ;;  %v2480_v23 = vrot.slane %v2478_v59, 4  ;;  %v4033_v50 = vld [vmem:[%s4288_s17 + $0x60] sm:$0xff] }
 0x113   : > { %3153 = vrot.lane.b32.xlu2 %v3142_v60, %s4191_s8  ;;  %v1560_v48 = vunpack.c.l.b16 %v1209_v7  ;;  %v1561_v29 = vunpack.c.l.b16 %v1212_v53  ;;  %v2481_v62 = vrot.slane %v5134_v30, 5  ;;  %v3256_v31 = vsel %vm1681_vm12, %v3240_v9, %v5116_v57  ;;  %v5202_v17 = vpop.permute.xlu2 %2949 }
 0x114   : > { %2991 = vrot.lane.b32.xlu0 %v2977_v16, %s4187_s21  ;;  %v2660_v38 = vshrl.u32 %v3876_v55, 16  ;;  %v2663_v45 = vshll.u32 %v3876_v55, 16  ;;  %v2669_v61 = vshll.u32 %v5184_v51, 16  ;;  %v3007_v32 = vunpack.c.l.b16 %v2479_v14 }
 0x115   : > { %v2482_v30 = vsel %vm4290_vm2, %v2480_v23, %v2481_v62  ;;  %v2673_v57 = vshrl.u32 %v5184_v51, 16  ;;  %v2679_v35 = vshll.u32 %v5191_v42, 16  ;;  %v1402_v56 = vpack.c.b16 %v1393_v24, %v1392_v4 }
 0x116   : > { %v1577_v13 = vpop.permute.xlu1 %1576  ;;  %v3008_v27 = vunpack.c.l.b16 %v2482_v30  ;;  %v2662_v37 = vrot.slane %v2660_v38, 4  ;;  %v2665_v20 = vrot.slane %v2663_v45, 5  ;;  %v1570_v46 = vpack.c.b16 %v1561_v29, %v1560_v48 }
 0x117   : > { %v1721_v28 = vsel %vm1715_vm14, %v1704_v18, %v1577_v13  ;;  %3079 = vrot.lane.b32.xlu1 %v4059_v21, %s4189_s23  ;;  %v2671_v39 = vrot.slane %v2669_v61, 5  ;;  %v2675_v40 = vrot.slane %v2673_v57, 4  ;;  %v2002_v41 = vshrl.u32 %v3792_v52, 16  ;;  %v5244_v57 = vld [vmem:[%s4288_s17 + $0x34] sm:$0xf] }
 0x118   : > { %3778 = vmatmul.msk.bf16.gmra.mxu0 %vm1756_vm15, %v1721_v28  ;;  %v2666_v54 = vor.u32 %v2665_v20, %v2662_v37  ;;  %v2681_v47 = vrot.slane %v2679_v35, 5  ;;  %v2005_v43 = vshll.u32 %v3792_v52, 16  ;;  %v2011_v44 = vshll.u32 %v5212_v12, 16 }
 0x119   : > { %v5205_v63 = vpop.permute.xlu0 %1326  ;;  %v2676_v25 = vor.u32 %v2675_v40, %v2671_v39  ;;  %v2004_v60 = vrot.slane %v2002_v41, 4  ;;  %v2015_v1 = vshrl.u32 %v5212_v12, 16  ;;  %v2021_v6 = vshll.u32 %v5215_v11, 16 }
 0x11a   : > { %v3017_v8 = vpack.c.b16 %v3008_v27, %v3007_v32  ;;  %v2667_v15 = vrot.slane %v2666_v54, 4  ;;  %v2007_v59 = vrot.slane %v2005_v43, 5  ;;  %v2013_v16 = vrot.slane %v2011_v44, 5  ;;  %v3894_v54 = vld [vmem:[%s4288_s17 + $0xc0] sm:$0xe] }
 0x11b   : > { %1416 = vrot.lane.b32.xlu2 %v1402_v56, %s4187_s21  ;;  %v2677_v34 = vrot.slane %v2676_v25, 4  ;;  %v2017_v7 = vrot.slane %v2015_v1, 4  ;;  %v2023_v3 = vrot.slane %v2021_v6, 5  ;;  %v3272_v9 = vsel %vm1698_vm13, %v3256_v31, %v5111_v26  ;;  %v5231_v55 = vpop.permute.xlu2 %1454  ;;  %v308_v26 = vld [vmem:[%s4288_s17 + $0x30] sm:$0xf] }
 0x11c   : > { %1504 = vrot.lane.b32.xlu0 %v4033_v50, %s4189_s23  ;;  %v2672_v18 = vsel %vm4310_vm5, %v2667_v15, %v2671_v39  ;;  %v2008_v21 = vor.u32 %v2007_v59, %v2004_v60  ;;  %v1085_v58 = vshrl.u32 %v3644_v36, 16  ;;  %v1088_v4 = vshll.u32 %v3644_v36, 16  ;;  %v5249_v50 = vld [vmem:[%s4288_s17 + $0x38] sm:$0x1] }
 0x11d   : > { %v2682_v24 = vsel %vm4310_vm5, %v2677_v34, %v2681_v47  ;;  %v3095_v13 = vunpack.c.l.b16 %v2672_v18  ;;  %v2018_v14 = vor.u32 %v2017_v7, %v2013_v16  ;;  %v1094_v23 = vshll.u32 %v5157_v5, 16  ;;  %v4016_v18 = vld [vmem:[%s4288_s17 + $0x3c] sm:$0xff] }
 0x11e   : > { %v5222_v19 = vpop.permute.xlu1 %1374  ;;  %v3096_v28 = vunpack.c.l.b16 %v2682_v24  ;;  %v2009_v48 = vrot.slane %v2008_v21, 4  ;;  %v1087_v62 = vrot.slane %v1085_v58, 4  ;;  %v1090_v38 = vrot.slane %v1088_v4, 5 }
 0x11f   : > { %1584 = vrot.lane.b32.xlu1 %v1570_v46, %s4191_s8  ;;  %v2019_v31 = vrot.slane %v2018_v14, 4  ;;  %v1096_v45 = vrot.slane %v1094_v23, 5  ;;  %v1098_v61 = vshrl.u32 %v5157_v5, 16  ;;  %v1104_v32 = vshll.u32 %v5163_v22, 16  ;;  %v4042_v46 = vld [vmem:[%s4288_s17 + $0x9c] sm:$0xff] }
 0x120   : > { %v3105_v52 = vpack.c.b16 %v3096_v28, %v3095_v13  ;;  %v2014_v30 = vsel %vm4310_vm5, %v2009_v48, %v2013_v16  ;;  %v424_v35 = vshrl.u32 %v308_v26, 16  ;;  %v1091_v37 = vor.u32 %v1090_v38, %v1087_v62 }
 0x121   : > { %v3152_v53 = vpop.permute.xlu0 %3151  ;;  %v2024_v56 = vsel %vm4310_vm5, %v2019_v31, %v2023_v3  ;;  %v2835_v27 = vunpack.c.l.b16 %v2014_v30  ;;  %v1100_v20 = vrot.slane %v1098_v61, 4  ;;  %v1106_v39 = vrot.slane %v1104_v32, 5 }
 0x122   : > { %v3288_v29 = vsel %vm1715_vm14, %v3272_v9, %v3152_v53  ;;  %v2836_v5 = vunpack.c.l.b16 %v2024_v56  ;;  %v426_v40 = vrot.slane %v424_v35, 4  ;;  %v427_v41 = vshll.u32 %v308_v26, 16  ;;  %v3812_v9 = vld [vmem:[%s4288_s17 + $0x90] sm:$0xe]  ;;  %v3832_v53 = vld [vmem:[%s4288_s17 + $0x9c] sm:$0xf] }
 0x123   : > { %4002 = vmatmul.msk.bf16.gmra.mxu1 %vm1756_vm15, %v3288_v29  ;;  %3031 = vrot.lane.b32.xlu2 %v3017_v8, %s4188_s22  ;;  %v1092_v22 = vrot.slane %v1091_v37, 4  ;;  %v1101_v47 = vor.u32 %v1100_v20, %v1096_v45  ;;  %v433_v43 = vshll.u32 %v5244_v57, 16  ;;  %v437_v44 = vshrl.u32 %v5244_v57, 16  ;;  %v5269_v58 = vpop.permute.xlu2 %3077  ;;  %v5286_v35 = vld [vmem:[%s4288_s17 + $0xa0] sm:$0xf] }
 0x124   : > { %3119 = vrot.lane.b32.xlu0 %v3105_v52, %s4190_s29  ;;  %v2847_v25 = vpack.c.b16 %v2836_v5, %v2835_v27  ;;  %v429_v1 = vrot.slane %v427_v41, 5  ;;  %v443_v6 = vshll.u32 %v5249_v50, 16  ;;  %v3902_v59 = vrot.slane %v3894_v54, 9  ;;  %v5296_v20 = vld [vmem:[%s4288_s17 + $0xa4] sm:$0x1] }
 0x125   : > { %v1097_v36 = vsel %vm4310_vm5, %v1092_v22, %v1096_v45  ;;  %v1102_v8 = vrot.slane %v1101_v47, 4  ;;  %v435_v15 = vrot.slane %v433_v43, 5  ;;  %v3180_v16 = vsel %vm1588_vm6, %v4042_v46, %v5146_v10  ;;  %v4023_v45 = vld [vmem:[%s4288_s17 + $0x3c] sm:$0xff] }
 0x126   : > { %v5257_v60 = vpop.permute.xlu1 %2989  ;;  %v1520_v34 = vunpack.c.l.b16 %v1097_v36  ;;  %v430_v7 = vor.u32 %v429_v1, %v426_v40  ;;  %v439_v3 = vrot.slane %v437_v44, 4  ;;  %v445_v4 = vrot.slane %v443_v6, 5  ;;  %v523_v40 = vld [vmem:[%s4288_s17 + $0x30] sm:$0xe] }
 0x127   : > { %2859 = vrot.lane.b32.xlu1 %v2847_v25, %s4186_s20  ;;  %v1107_v21 = vsel %vm4310_vm5, %v1102_v8, %v1106_v39  ;;  %v2783_v24 = vrot.slane %v5184_v51, 5  ;;  %v2786_v13 = vrot.slane %v5191_v42, 5  ;;  %v2159_v26 = vrot.slane %v5212_v12, 5  ;;  %v3600_v8 = vld [vmem:[%s4288_s17 + $0x3c] sm:$0xf] }
 0x128   : > { %v1521_v10 = vunpack.c.l.b16 %v1107_v21  ;;  %v431_v14 = vrot.slane %v430_v7, 4  ;;  %v440_v23 = vor.u32 %v439_v3, %v435_v15  ;;  %v3820_v62 = vrot.slane %v3812_v9, 9  ;;  %v5318_v9 = vld [vmem:[%s4288_s17 + $0x40] sm:$0xf] }
 0x129   : > { %v2784_v48 = vsel %vm4290_vm2, %v3902_v59, %v2783_v24  ;;  %v2785_v29 = vrot.slane %v2783_v24, 4  ;;  %v2162_v31 = vrot.slane %v5215_v11, 5  ;;  %v2307_v61 = vshrl.u32 %v3832_v53, 16 }
 0x12a   : > { %v1530_v38 = vpack.c.b16 %v1521_v10, %v1520_v34  ;;  %v436_v51 = vsel %vm4310_vm5, %v431_v14, %v435_v15  ;;  %v441_v42 = vrot.slane %v440_v23, 4  ;;  %v1606_v52 = vsel %vm1588_vm6, %v4016_v18, %v5071_v2 }
 0x12b   : > { %v1415_v28 = vpop.permute.xlu0 %1414  ;;  %v1260_v12 = vunpack.c.l.b16 %v436_v51  ;;  %v2787_v30 = vsel %vm4290_vm2, %v2785_v29, %v2786_v13  ;;  %v3135_v32 = vunpack.c.l.b16 %v2784_v48  ;;  %v1625_v11 = vsel %vm1613_vm7, %v1606_v52, %v5205_v63 }
 0x12c   : > { %1544 = vrot.lane.b32.xlu2 %v1530_v38, %s4190_s29  ;;  %v446_v56 = vsel %vm4310_vm5, %v441_v42, %v445_v4  ;;  %v3136_v27 = vunpack.c.l.b16 %v2787_v30  ;;  %v2161_v2 = vrot.slane %v2159_v26, 4  ;;  %v3198_v46 = vsel %vm1613_vm7, %v3180_v16, %v5154_v49 }
 0x12d   : > { %v1642_v5 = vsel %vm1630_vm8, %v1625_v11, %v5222_v19  ;;  %v1261_v39 = vunpack.c.l.b16 %v446_v56  ;;  %v2160_v63 = vsel %vm4290_vm2, %v3820_v62, %v2159_v26  ;;  %v2309_v54 = vrot.slane %v2307_v61, 4 }
 0x12e   : > { %v5293_v37 = vpop.permute.xlu1 %1502  ;;  %v2163_v41 = vsel %vm4290_vm2, %v2161_v2, %v2162_v31  ;;  %v2310_v22 = vshll.u32 %v3832_v53, 16  ;;  %v2316_v47 = vshll.u32 %v5286_v35, 16  ;;  %v3145_v49 = vpack.c.b16 %v3136_v27, %v3135_v32  ;;  %v5314_v15 = vpop.permute.xlu2 %1582  ;;  %v3852_v32 = vld [vmem:[%s4288_s17 + $0x9c] sm:$0xe] }
 0x12f   : > { %1372 = vrot.lane.b32.xlu1 %v4023_v45, %s4184_s18  ;;  %v1272_v43 = vpack.c.b16 %v1261_v39, %v1260_v12  ;;  %v2320_v19 = vshrl.u32 %v5286_v35, 16  ;;  %v2326_v44 = vshll.u32 %v5296_v20, 16  ;;  %v3588_v6 = vrot.slane %v523_v40, 9 }
 0x130   : > { %v2312_v25 = vrot.slane %v2310_v22, 5  ;;  %v2318_v1 = vrot.slane %v2316_v47, 5  ;;  %v584_v36 = vrot.slane %v5244_v57, 5  ;;  %v2875_v59 = vunpack.c.l.b16 %v2160_v63 }
 0x131   : > { %1284 = vrot.lane.b32.xlu0 %v1272_v43, %s4186_s20  ;;  %v2876_v16 = vunpack.c.l.b16 %v2163_v41  ;;  %v2322_v7 = vrot.slane %v2320_v19, 4  ;;  %v587_v3 = vrot.slane %v5249_v50, 5  ;;  %v1659_v18 = vsel %vm1647_vm9, %v1642_v5, %v1415_v28  ;;  %v5327_v50 = vld [vmem:[%s4288_s17 + $0x44] sm:$0x1]  ;;  %v3640_v5 = vld [vmem:[%s4288_s17 + $0x48] sm:$0xf] }
 0x132   : > { %v2313_v21 = vor.u32 %v2312_v25, %v2309_v54  ;;  %v585_v57 = vsel %vm4290_vm2, %v3588_v6, %v584_v36  ;;  %v586_v4 = vrot.slane %v584_v36, 4  ;;  %v2328_v13 = vrot.slane %v2326_v44, 5 }
 0x133   : > { %v3030_v34 = vpop.permute.xlu0 %3029  ;;  %v2323_v24 = vor.u32 %v2322_v7, %v2318_v1  ;;  %v1300_v53 = vunpack.c.l.b16 %v585_v57  ;;  %v732_v10 = vshrl.u32 %v3600_v8, 16  ;;  %v735_v26 = vshll.u32 %v3600_v8, 16  ;;  %v5360_v8 = vld [vmem:[%s4288_s17 + $0x4c] sm:$0xf] }
 0x134   : > { %3159 = vrot.lane.b32.xlu2 %v3145_v49, %s4191_s8  ;;  %v2314_v14 = vrot.slane %v2313_v21, 4  ;;  %v588_v23 = vsel %vm4290_vm2, %v586_v4, %v587_v3  ;;  %v741_v28 = vshll.u32 %v5318_v9, 16  ;;  %v2887_v48 = vpack.c.b16 %v2876_v16, %v2875_v59  ;;  %v3620_v4 = vld [vmem:[%s4288_s17 + $0x3c] sm:$0xe] }
 0x135   : > { %v2324_v29 = vrot.slane %v2323_v24, 4  ;;  %v1301_v62 = vunpack.c.l.b16 %v588_v23  ;;  %v734_v38 = vrot.slane %v732_v10, 4  ;;  %v737_v42 = vrot.slane %v735_v26, 5 }
 0x136   : > { %v5330_v31 = vpop.permute.xlu1 %3117  ;;  %v2319_v51 = vsel %vm4310_vm5, %v2314_v14, %v2318_v1  ;;  %v743_v45 = vrot.slane %v741_v28, 5  ;;  %v745_v61 = vshrl.u32 %v5318_v9, 16  ;;  %v751_v30 = vshll.u32 %v5327_v50, 16 }
 0x137   : > { %v2329_v52 = vsel %vm4310_vm5, %v2324_v29, %v2328_v13  ;;  %v2963_v12 = vunpack.c.l.b16 %v2319_v51  ;;  %v1312_v56 = vpack.c.b16 %v1301_v62, %v1300_v53  ;;  %v738_v27 = vor.u32 %v737_v42, %v734_v38  ;;  %v4049_v13 = vld [vmem:[%s4288_s17 + $0x9c] sm:$0xff] }
 0x138   : > { %v2964_v11 = vunpack.c.l.b16 %v2329_v52  ;;  %v747_v2 = vrot.slane %v745_v61, 4  ;;  %v3214_v39 = vsel %vm1630_vm8, %v3198_v46, %v5202_v17  ;;  %v1676_v63 = vsel %vm1664_vm10, %v1659_v18, %v5231_v55  ;;  %v5374_v18 = vld [vmem:[%s4288_s17 + $0x50] sm:$0x1]  ;;  %v314_v52 = vld [vmem:[%s4288_s17 + $0x54] sm:$0xf] }
 0x139   : > { %2899 = vrot.lane.b32.xlu0 %v2887_v48, %s4185_s19  ;;  %v753_v40 = vrot.slane %v751_v30, 5  ;;  %v2464_v41 = vrot.slane %v5286_v35, 5  ;;  %v739_v22 = vrot.slane %v738_v27, 4  ;;  %v3860_v43 = vrot.slane %v3852_v32, 9  ;;  %v315_v32 = vld [vmem:[%s4288_s17 + $0x58] sm:$0xf] }
 0x13a   : > { %v2975_v54 = vpack.c.b16 %v2964_v11, %v2963_v12  ;;  %v748_v47 = vor.u32 %v747_v2, %v743_v45  ;;  %v2467_v25 = vrot.slane %v5296_v20, 5  ;;  %v1037_v17 = vshrl.u32 %v3640_v5, 16 }
 0x13b   : > { %v2466_v44 = vrot.slane %v2464_v41, 4  ;;  %v1040_v46 = vshll.u32 %v3640_v5, 16  ;;  %v3230_v55 = vsel %vm1647_vm9, %v3214_v39, %v5257_v60  ;;  %v1693_v1 = vsel %vm1681_vm12, %v1676_v63, %v5293_v37  ;;  %v323_v39 = vld [vmem:[%s4288_s17 + $0x5c] sm:$0x1] }
 0x13c   : > { %v1543_v19 = vpop.permute.xlu0 %1542  ;;  %2987 = vrot.lane.b32.xlu1 %v2975_v54, %s4187_s21  ;;  %1324 = vrot.lane.b32.xlu2 %v1312_v56, %s4185_s19  ;;  %v744_v35 = vsel %vm4310_vm5, %v739_v22, %v743_v45  ;;  %v749_v6 = vrot.slane %v748_v47, 4  ;;  %v3246_v20 = vsel %vm1664_vm10, %v3230_v55, %v3030_v34  ;;  %v2465_v16 = vsel %vm4290_vm2, %v3860_v43, %v2464_v41 }
 0x13d   : > { %v5346_v49 = vpop.permute.xlu2 %2857  ;;  %v1388_v36 = vunpack.c.l.b16 %v744_v35  ;;  %v1710_v60 = vsel %vm1698_vm13, %v1693_v1, %v1543_v19  ;;  %v2468_v3 = vsel %vm4290_vm2, %v2466_v44, %v2467_v25  ;;  %v1039_v21 = vrot.slane %v1037_v17, 4  ;;  %v526_v17 = vld [vmem:[%s4288_s17 + $0x54] sm:$0xe] }
 0x13e   : > { %v754_v37 = vsel %vm4310_vm5, %v749_v6, %v753_v40  ;;  %v1727_v59 = vsel %vm1715_vm14, %v1710_v60, %v5314_v15  ;;  %v1042_v57 = vrot.slane %v1040_v46, 5  ;;  %v3262_v24 = vsel %vm1681_vm12, %v3246_v20, %v5269_v58  ;;  %v4031_v15 = vld [vmem:[%s4288_s17 + $0x48] sm:$0xff] }
 0x13f   : > { %v1389_v7 = vunpack.c.l.b16 %v754_v37  ;;  %3781 = vmatmul.msk.bf16.vlgmr.msra.gmra.mxu3 %vm1756_vm15, %v1727_v59  ;;  %v1046_v53 = vshll.u32 %v5360_v8, 16  ;;  %v3003_v14 = vunpack.c.l.b16 %v2465_v16  ;;  %v1050_v26 = vshrl.u32 %v5360_v8, 16 }
 0x140   : > { %v1043_v23 = vor.u32 %v1042_v57, %v1039_v21  ;;  %v3004_v28 = vunpack.c.l.b16 %v2468_v3  ;;  %v1056_v29 = vshll.u32 %v5374_v18, 16  ;;  %v3628_v62 = vrot.slane %v3620_v4, 9 }
 0x141   : > { %v5369_v34 = vpop.permute.xlu1 %1282  ;;  %v1400_v10 = vpack.c.b16 %v1389_v7, %v1388_v36  ;;  %v1048_v48 = vrot.slane %v1046_v53, 5  ;;  %v3278_v38 = vsel %vm1698_vm13, %v3262_v24, %v5330_v31  ;;  %v1052_v45 = vrot.slane %v1050_v26, 4  ;;  %v3872_v53 = vld [vmem:[%s4288_s17 + $0xa8] sm:$0xf]  ;;  %v3884_v26 = vld [vmem:[%s4288_s17 + $0xb0] sm:$0x1] }
 0x142   : > { %v1044_v42 = vrot.slane %v1043_v23, 4  ;;  %v889_v61 = vrot.slane %v5318_v9, 5  ;;  %v1058_v12 = vrot.slane %v1056_v29, 5  ;;  %v892_v31 = vrot.slane %v5327_v50, 5  ;;  %v3873_v23 = vld [vmem:[%s4288_s17 + $0xac] sm:$0xf] }
 0x143   : > { %1412 = vrot.lane.b32.xlu0 %v1400_v10, %s4187_s21  ;;  %v1053_v56 = vor.u32 %v1052_v45, %v1048_v48  ;;  %v3015_v2 = vpack.c.b16 %v3004_v28, %v3003_v14  ;;  %v496_v63 = vshrl.u32 %v314_v52, 16  ;;  %v499_v40 = vshll.u32 %v314_v52, 16  ;;  %v4057_v45 = vld [vmem:[%s4288_s17 + $0xa8] sm:$0xff] }
 0x144   : > { %v3158_v51 = vpop.permute.xlu0 %3157  ;;  %1500 = vrot.lane.b32.xlu1 %v4031_v15, %s4189_s23  ;;  %2947 = vrot.lane.b32.xlu2 %v4049_v13, %s4184_s18  ;;  %v1049_v11 = vsel %vm4310_vm5, %v1044_v42, %v1048_v48  ;;  %v890_v9 = vsel %vm4290_vm2, %v3628_v62, %v889_v61  ;;  %v891_v27 = vrot.slane %v889_v61, 4  ;;  %v505_v22 = vshll.u32 %v315_v32, 16 }
 0x145   : > { %v5387_v58 = vpop.permute.xlu2 %1370  ;;  %v3294_v30 = vsel %vm1715_vm14, %v3278_v38, %v3158_v51  ;;  %v1428_v5 = vunpack.c.l.b16 %v890_v9  ;;  %v1054_v41 = vrot.slane %v1053_v56, 4  ;;  %v509_v47 = vshrl.u32 %v315_v32, 16  ;;  %v3892_v38 = vld [vmem:[%s4288_s17 + $0xa8] sm:$0xe] }
 0x146   : > { %4005 = vmatmul.msk.bf16.vlgmr.msra.gmra.mxu2 %vm1756_vm15, %v3294_v30  ;;  %v893_v50 = vsel %vm4290_vm2, %v891_v27, %v892_v31  ;;  %v1516_v43 = vunpack.c.l.b16 %v1049_v11  ;;  %v498_v44 = vrot.slane %v496_v63, 4  ;;  %v501_v25 = vrot.slane %v499_v40, 5 }
 0x147   : > { %v1429_v19 = vunpack.c.l.b16 %v893_v50  ;;  %v1059_v46 = vsel %vm4310_vm5, %v1054_v41, %v1058_v12  ;;  %v507_v55 = vrot.slane %v505_v22, 5  ;;  %v511_v1 = vrot.slane %v509_v47, 4 }
 0x148   : > { %v515_v35 = vshll.u32 %v323_v39, 16  ;;  %v1517_v6 = vunpack.c.l.b16 %v1059_v46  ;;  %v502_v36 = vor.u32 %v501_v25, %v498_v44  ;;  %v3591_v7 = vrot.slane %v526_v17, 9  ;;  %v3807_v25 = vld [vmem:[%s4288_s17 + $0xbc] sm:$0x1] }
 0x149   : > { %v5404_v54 = vpop.permute.xlu1 %2897  ;;  %v1440_v20 = vpack.c.b16 %v1429_v19, %v1428_v5  ;;  %v512_v37 = vor.u32 %v511_v1, %v507_v55  ;;  %v605_v3 = vrot.slane %v315_v32, 5  ;;  %v608_v13 = vrot.slane %v323_v39, 5  ;;  %v3798_v32 = vld [vmem:[%s4288_s17 + $0xb4] sm:$0xf] }
 0x14a   : > { %v517_v59 = vrot.slane %v515_v35, 5  ;;  %v1528_v21 = vpack.c.b16 %v1517_v6, %v1516_v43  ;;  %v503_v57 = vrot.slane %v502_v36, 4  ;;  %v2612_v61 = vshrl.u32 %v3872_v53, 16 }
 0x14b   : > { %3027 = vrot.lane.b32.xlu0 %v3015_v2, %s4188_s22  ;;  %v513_v4 = vrot.slane %v512_v37, 4  ;;  %v606_v24 = vsel %vm4290_vm2, %v3591_v7, %v605_v3  ;;  %v607_v15 = vrot.slane %v605_v3, 4  ;;  %v2615_v52 = vshll.u32 %v3872_v53, 16  ;;  %v3799_v2 = vld [vmem:[%s4288_s17 + $0xb8] sm:$0xf] }
 0x14c   : > { %v5412_v16 = vpop.permute.xlu0 %1322  ;;  %1452 = vrot.lane.b32.xlu2 %v1440_v20, %s4188_s22  ;;  %1540 = vrot.lane.b32.xlu1 %v1528_v21, %s4190_s29  ;;  %v508_v10 = vsel %vm4310_vm5, %v503_v57, %v507_v55  ;;  %v1306_v14 = vunpack.c.l.b16 %v606_v24  ;;  %v2621_v12 = vshll.u32 %v3873_v23, 16  ;;  %v2625_v30 = vshrl.u32 %v3873_v23, 16  ;;  %v3815_v24 = vld [vmem:[%s4288_s17 + $0xb4] sm:$0xe] }
 0x14d   : > { %v5410_v60 = vpop.permute.xlu2 %2985  ;;  %v518_v28 = vsel %vm4310_vm5, %v513_v4, %v517_v59  ;;  %v1266_v48 = vunpack.c.l.b16 %v508_v10  ;;  %v609_v29 = vsel %vm4290_vm2, %v607_v15, %v608_v13  ;;  %v2631_v31 = vshll.u32 %v3884_v26, 16 }
 0x14e   : > { %v1267_v51 = vunpack.c.l.b16 %v518_v28  ;;  %v1307_v42 = vunpack.c.l.b16 %v609_v29  ;;  %v2614_v9 = vrot.slane %v2612_v61, 4  ;;  %v3900_v27 = vrot.slane %v3892_v38, 9  ;;  %v4040_v29 = vld [vmem:[%s4288_s17 + $0x84] sm:$0xff] }
 0x14f   : > { %v2617_v39 = vrot.slane %v2615_v52, 5  ;;  %v2623_v63 = vrot.slane %v2621_v12, 5  ;;  %v2627_v40 = vrot.slane %v2625_v30, 4  ;;  %v2633_v50 = vrot.slane %v2631_v31, 5 }
 0x150   : > { %v1275_v11 = vpack.c.b16 %v1267_v51, %v1266_v48  ;;  %v1315_v56 = vpack.c.b16 %v1307_v42, %v1306_v14  ;;  %v2769_v22 = vrot.slane %v3873_v23, 5  ;;  %v2772_v47 = vrot.slane %v3884_v26, 5  ;;  %v3606_v48 = vld [vmem:[%s4288_s17 + $0x60] sm:$0xf] }
 0x151   : > { %v5427_v62 = vpop.permute.xlu1 %1410  ;;  %v2074_v43 = vshrl.u32 %v3798_v32, 16  ;;  %v2618_v19 = vor.u32 %v2617_v39, %v2614_v9  ;;  %v2628_v44 = vor.u32 %v2627_v40, %v2623_v63  ;;  %v2077_v17 = vshll.u32 %v3798_v32, 16  ;;  %v3660_v40 = vld [vmem:[%s4288_s17 + $0x48] sm:$0xe] }
 0x152   : > { %v2083_v46 = vshll.u32 %v3799_v2, 16  ;;  %v2770_v55 = vsel %vm4290_vm2, %v3900_v27, %v2769_v22  ;;  %v2771_v1 = vrot.slane %v2769_v22, 4  ;;  %v2087_v6 = vshrl.u32 %v3799_v2, 16 }
 0x153   : > { %1290 = vrot.lane.b32.xlu0 %v1275_v11, %s4186_s20  ;;  %v2076_v35 = vrot.slane %v2074_v43, 4  ;;  %v2619_v20 = vrot.slane %v2618_v19, 4  ;;  %v2629_v36 = vrot.slane %v2628_v44, 4  ;;  %v3131_v37 = vunpack.c.l.b16 %v2770_v55  ;;  %v5461_v11 = vld [vmem:[%s4288_s17 + $0x64] sm:$0xf] }
 0x154   : > { %v5435_v41 = vpop.permute.xlu0 %2945  ;;  %3075 = vrot.lane.b32.xlu2 %v4057_v45, %s4189_s23  ;;  %1330 = vrot.lane.b32.xlu1 %v1315_v56, %s4185_s19  ;;  %v2079_v59 = vrot.slane %v2077_v17, 5  ;;  %v2773_v3 = vsel %vm4290_vm2, %v2771_v1, %v2772_v47  ;;  %v2085_v21 = vrot.slane %v2083_v46, 5  ;;  %v2089_v57 = vrot.slane %v2087_v6, 4 }
 0x155   : > { %v5433_v5 = vpop.permute.xlu2 %1498  ;;  %v2093_v4 = vshll.u32 %v3807_v25, 16  ;;  %v2624_v15 = vsel %vm4310_vm5, %v2619_v20, %v2623_v63  ;;  %v2634_v13 = vsel %vm4310_vm5, %v2629_v36, %v2633_v50  ;;  %v3132_v53 = vunpack.c.l.b16 %v2773_v3  ;;  %v5470_v63 = vld [vmem:[%s4288_s17 + $0x68] sm:$0x1] }
 0x156   : > { %v2080_v10 = vor.u32 %v2079_v59, %v2076_v35  ;;  %v3091_v14 = vunpack.c.l.b16 %v2624_v15  ;;  %v3092_v23 = vunpack.c.l.b16 %v2634_v13  ;;  %v2090_v26 = vor.u32 %v2089_v57, %v2085_v21  ;;  %v5484_v59 = vld [vmem:[%s4288_s17 + $0xc4] sm:$0xf]  ;;  %v3855_v13 = vld [vmem:[%s4288_s17 + $0xc0] sm:$0xe] }
 0x157   : > { %v2095_v28 = vrot.slane %v2093_v4, 5  ;;  %v3143_v38 = vpack.c.b16 %v3132_v53, %v3131_v37  ;;  %v3823_v42 = vrot.slane %v3815_v24, 9  ;;  %v2180_v12 = vrot.slane %v3799_v2, 5  ;;  %v4014_v3 = vld [vmem:[%s4288_s17 + $0x24] sm:$0xff] }
 0x158   : > { %v2081_v51 = vrot.slane %v2080_v10, 4  ;;  %v3103_v61 = vpack.c.b16 %v3092_v23, %v3091_v14  ;;  %v2091_v52 = vrot.slane %v2090_v26, 4  ;;  %v2183_v32 = vrot.slane %v3807_v25, 5  ;;  %v5495_v23 = vld [vmem:[%s4288_s17 + $0xc8] sm:$0x1] }
 0x159   : > { %v5443_v7 = vpop.permute.xlu1 %3025  ;;  %v804_v56 = vshrl.u32 %v3606_v48, 16  ;;  %v2181_v2 = vsel %vm4290_vm2, %v3823_v42, %v2180_v12  ;;  %v2182_v39 = vrot.slane %v2180_v12, 4  ;;  %v3174_v50 = vsel %vm1588_vm6, %v4040_v29, %v5346_v49 }
 0x15a   : > { %v2086_v30 = vsel %vm4310_vm5, %v2081_v51, %v2085_v21  ;;  %v2096_v9 = vsel %vm4310_vm5, %v2091_v52, %v2095_v28  ;;  %v2881_v47 = vunpack.c.l.b16 %v2181_v2  ;;  %v807_v25 = vshll.u32 %v3606_v48, 16 }
 0x15b   : > { %3115 = vrot.lane.b32.xlu0 %v3103_v61, %s4190_s29  ;;  %v2841_v27 = vunpack.c.l.b16 %v2086_v30  ;;  %v2842_v22 = vunpack.c.l.b16 %v2096_v9  ;;  %v806_v43 = vrot.slane %v804_v56, 4  ;;  %v2184_v44 = vsel %vm4290_vm2, %v2182_v39, %v2183_v32  ;;  %v3623_v30 = vld [vmem:[%s4288_s17 + $0x60] sm:$0xe] }
 0x15c   : > { %v5454_v45 = vpop.permute.xlu0 %1450  ;;  %3155 = vrot.lane.b32.xlu1 %v3143_v38, %s4191_s8  ;;  %v813_v17 = vshll.u32 %v5461_v11, 16  ;;  %v817_v46 = vshrl.u32 %v5461_v11, 16  ;;  %v2882_v1 = vunpack.c.l.b16 %v2184_v44  ;;  %v823_v49 = vshll.u32 %v5470_v63, 16 }
 0x15d   : > { %v5458_v31 = vpop.permute.xlu2 %1538  ;;  %v2850_v55 = vpack.c.b16 %v2842_v22, %v2841_v27  ;;  %v3668_v35 = vrot.slane %v3660_v40, 9  ;;  %v809_v6 = vrot.slane %v807_v25, 5  ;;  %v1194_v37 = vrot.slane %v5360_v8, 5  ;;  %v4052_v22 = vld [vmem:[%s4288_s17 + $0xc0] sm:$0xff] }
 0x15e   : > { %v815_v20 = vrot.slane %v813_v17, 5  ;;  %v819_v36 = vrot.slane %v817_v46, 4  ;;  %v3194_v21 = vsel %vm1613_vm7, %v3174_v50, %v5404_v54  ;;  %v2890_v57 = vpack.c.b16 %v2882_v1, %v2881_v47  ;;  %v3646_v50 = vld [vmem:[%s4288_s17 + $0x6c] sm:$0xf]  ;;  %v5531_v46 = vld [vmem:[%s4288_s17 + $0x70] sm:$0xf] }
 0x15f   : > { %2865 = vrot.lane.b32.xlu2 %v2850_v55, %s4186_s20  ;;  %v825_v4 = vrot.slane %v823_v49, 5  ;;  %v1197_v24 = vrot.slane %v5374_v18, 5  ;;  %v810_v53 = vor.u32 %v809_v6, %v806_v43  ;;  %v1195_v14 = vsel %vm4290_vm2, %v3668_v35, %v1194_v37  ;;  %s295_s20 = scalar_lea.vmem %s5828_s5, %s4282_s13 }
 0x160   : > { %v820_v10 = vor.u32 %v819_v36, %v815_v20  ;;  %v1196_v8 = vrot.slane %v1194_v37, 4  ;;  %v3210_v54 = vsel %vm1630_vm8, %v3194_v21, %v5435_v41  ;;  %v1556_v26 = vunpack.c.l.b16 %v1195_v14 }
 0x161   : > { %v5475_v19 = vpop.permute.xlu1 %1288  ;;  %v2485_v48 = vrot.slane %v5484_v59, 5  ;;  %v811_v18 = vrot.slane %v810_v53, 4  ;;  %v3863_v51 = vrot.slane %v3855_v13, 9  ;;  %v1600_v42 = vsel %vm1588_vm6, %v4014_v3, %v5369_v34  ;;  %v5539_v3 = vld [vmem:[%s4288_s17 + $0x74] sm:$0x1] }
 0x162   : > { %v821_v29 = vrot.slane %v820_v10, 4  ;;  %v1198_v38 = vsel %vm4290_vm2, %v1196_v8, %v1197_v24  ;;  %v2488_v52 = vrot.slane %v5495_v23, 5  ;;  %v1621_v32 = vsel %vm1613_vm7, %v1600_v42, %v5412_v16  ;;  %v4026_v24 = vld [vmem:[%s4288_s17 + $0x60] sm:$0xff] }
 0x163   : > { %2905 = vrot.lane.b32.xlu0 %v2890_v57, %s4185_s19  ;;  %v1557_v61 = vunpack.c.l.b16 %v1198_v38  ;;  %v2487_v41 = vrot.slane %v2485_v48, 4  ;;  %v3226_v56 = vsel %vm1647_vm9, %v3210_v54, %v5410_v60  ;;  %v816_v9 = vsel %vm4310_vm5, %v811_v18, %v815_v20  ;;  %v5559_v54 = vld [vmem:[%s4288_s17 + $0xd0] sm:$0xf]  ;;  %v5563_v38 = vld [vmem:[%s4288_s17 + $0xd4] sm:$0x1] }
 0x164   : > { %v3074_v15 = vpop.permute.xlu0 %3073  ;;  %v826_v27 = vsel %vm4310_vm5, %v821_v29, %v825_v4  ;;  %v3242_v34 = vsel %vm1664_vm10, %v3226_v56, %v5443_v7  ;;  %v1394_v2 = vunpack.c.l.b16 %v816_v9  ;;  %v2486_v60 = vsel %vm4290_vm2, %v3863_v51, %v2485_v48 }
 0x165   : > { %v5499_v28 = vpop.permute.xlu2 %1328  ;;  %v1395_v39 = vunpack.c.l.b16 %v826_v27  ;;  %v1568_v40 = vpack.c.b16 %v1557_v61, %v1556_v26  ;;  %v3258_v16 = vsel %vm1681_vm12, %v3242_v34, %v3074_v15  ;;  %v2489_v47 = vsel %vm4290_vm2, %v2487_v41, %v2488_v52  ;;  %v3895_v26 = vld [vmem:[%s4288_s17 + $0xcc] sm:$0xe] }
 0x166   : > { %v3631_v43 = vrot.slane %v3623_v30, 9  ;;  %v910_v25 = vrot.slane %v5461_v11, 5  ;;  %v913_v17 = vrot.slane %v5470_v63, 5  ;;  %v1109_v55 = vshrl.u32 %v3646_v50, 16  ;;  %v3663_v34 = vld [vmem:[%s4288_s17 + $0x6c] sm:$0xe] }
 0x167   : > { %v1403_v44 = vpack.c.b16 %v1395_v39, %v1394_v2  ;;  %1580 = vrot.lane.b32.xlu2 %v1568_v40, %s4191_s8  ;;  %v1112_v1 = vshll.u32 %v3646_v50, 16  ;;  %v3009_v49 = vunpack.c.l.b16 %v2486_v60  ;;  %v3010_v35 = vunpack.c.l.b16 %v2489_v47  ;;  %v3838_v40 = vld [vmem:[%s4288_s17 + $0xc0] sm:$0xf] }
 0x168   : > { %v911_v20 = vsel %vm4290_vm2, %v3631_v43, %v910_v25  ;;  %v912_v36 = vrot.slane %v910_v25, 4  ;;  %v1638_v11 = vsel %vm1630_vm8, %v1621_v32, %v5387_v58  ;;  %v1111_v57 = vrot.slane %v1109_v55, 4  ;;  %v4060_v55 = vld [vmem:[%s4288_s17 + $0xcc] sm:$0xff] }
 0x169   : > { %v3114_v12 = vpop.permute.xlu1 %3113  ;;  %1418 = vrot.lane.b32.xlu1 %v1403_v44, %s4187_s21  ;;  %v1434_v63 = vunpack.c.l.b16 %v911_v20  ;;  %v1655_v4 = vsel %vm1647_vm9, %v1638_v11, %v5427_v62  ;;  %v1114_v13 = vrot.slane %v1112_v1, 5  ;;  %v1118_v58 = vshll.u32 %v5531_v46, 16  ;;  %v3878_v20 = vld [vmem:[%s4288_s17 + $0xcc] sm:$0xf] }
 0x16a   : > { %v3274_v7 = vsel %vm1698_vm13, %v3258_v16, %v3114_v12  ;;  %v914_v15 = vsel %vm4290_vm2, %v912_v36, %v913_v17  ;;  %v1672_v10 = vsel %vm1664_vm10, %v1655_v4, %v5454_v45  ;;  %v1122_v8 = vshrl.u32 %v5531_v46, 16 }
 0x16b   : > { %2953 = vrot.lane.b32.xlu0 %v4052_v22, %s4184_s18  ;;  %v1435_v14 = vunpack.c.l.b16 %v914_v15  ;;  %v1128_v62 = vshll.u32 %v5539_v3, 16  ;;  %v3018_v48 = vpack.c.b16 %v3010_v35, %v3009_v49  ;;  %v1115_v18 = vor.u32 %v1114_v13, %v1111_v57 }
 0x16c   : > { %v1120_v29 = vrot.slane %v1118_v58, 5  ;;  %v1124_v42 = vrot.slane %v1122_v8, 4  ;;  %v1689_v61 = vsel %vm1681_vm12, %v1672_v10, %v5433_v5  ;;  %v3903_v41 = vrot.slane %v3895_v26, 9 }
 0x16d   : > { %v3154_v6 = vpop.permute.xlu2 %3153  ;;  %v5536_v37 = vpop.permute.xlu0 %2863  ;;  %v1443_v51 = vpack.c.b16 %v1435_v14, %v1434_v63  ;;  %v1116_v45 = vrot.slane %v1115_v18, 4  ;;  %v2790_v52 = vrot.slane %v5559_v54, 5  ;;  %v1130_v30 = vrot.slane %v1128_v62, 5 }
 0x16e   : > { %v3290_v21 = vsel %vm1715_vm14, %v3274_v7, %v3154_v6  ;;  %v1125_v12 = vor.u32 %v1124_v42, %v1120_v29  ;;  %v2793_v32 = vrot.slane %v5563_v38, 5  ;;  %v1706_v39 = vsel %vm1698_vm13, %v1689_v61, %v5458_v31 }
 0x16f   : > { %4003 = vmatmul.msk.bf16.gmra.mxu1 %vm1756_vm15, %v3290_v21  ;;  %1378 = vrot.lane.b32.xlu2 %v4026_v24, %s4184_s18  ;;  %v1121_v56 = vsel %vm4310_vm5, %v1116_v45, %v1120_v29  ;;  %v2792_v5 = vrot.slane %v2790_v52, 4  ;;  %v2791_v22 = vsel %vm4290_vm2, %v3903_v41, %v2790_v52  ;;  %v3671_v44 = vrot.slane %v3663_v34, 9 }
 0x170   : > { %v1126_v2 = vrot.slane %v1125_v12, 4  ;;  %v1522_v50 = vunpack.c.l.b16 %v1121_v56  ;;  %v1215_v7 = vrot.slane %v5531_v46, 5  ;;  %v1218_v25 = vrot.slane %v5539_v3, 5 }
 0x171   : > { %v5552_v53 = vpop.permute.xlu1 %2903  ;;  %3033 = vrot.lane.b32.xlu1 %v3018_v48, %s4188_s22  ;;  %v2794_v43 = vsel %vm4290_vm2, %v2792_v5, %v2793_v32  ;;  %v2379_v17 = vshrl.u32 %v3838_v40, 16  ;;  %v3137_v1 = vunpack.c.l.b16 %v2791_v22  ;;  %v2382_v49 = vshll.u32 %v3838_v40, 16 }
 0x172   : > { %v1131_v47 = vsel %vm4310_vm5, %v1126_v2, %v1130_v30  ;;  %v2388_v35 = vshll.u32 %v5484_v59, 16  ;;  %v2392_v6 = vshrl.u32 %v5484_v59, 16  ;;  %v1216_v11 = vsel %vm4290_vm2, %v3671_v44, %v1215_v7 }
 0x173   : > { %1458 = vrot.lane.b32.xlu0 %v1443_v51, %s4188_s22  ;;  %v1523_v31 = vunpack.c.l.b16 %v1131_v47  ;;  %v1217_v63 = vrot.slane %v1215_v7, 4  ;;  %v2381_v21 = vrot.slane %v2379_v17, 4  ;;  %v3138_v57 = vunpack.c.l.b16 %v2794_v43  ;;  %v4034_v7 = vld [vmem:[%s4288_s17 + $0x6c] sm:$0xff] }
 0x174   : > { %v2384_v4 = vrot.slane %v2382_v49, 5  ;;  %v2390_v46 = vrot.slane %v2388_v35, 5  ;;  %v2394_v24 = vrot.slane %v2392_v6, 4  ;;  %v2398_v59 = vshll.u32 %v5495_v23, 16 }
 0x175   : > { %v5573_v9 = vpop.permute.xlu2 %1416  ;;  %v1531_v36 = vpack.c.b16 %v1523_v31, %v1522_v50  ;;  %v1219_v15 = vsel %vm4290_vm2, %v1217_v63, %v1218_v25  ;;  %v2684_v58 = vshrl.u32 %v3878_v20, 16  ;;  %v2687_v10 = vshll.u32 %v3878_v20, 16 }
 0x176   : > { %v1579_v27 = vpop.permute.xlu0 %1578  ;;  %v1562_v14 = vunpack.c.l.b16 %v1216_v11  ;;  %v1563_v8 = vunpack.c.l.b16 %v1219_v15  ;;  %v2385_v62 = vor.u32 %v2384_v4, %v2381_v21  ;;  %v2395_v26 = vor.u32 %v2394_v24, %v2390_v46 }
 0x177   : > { %v1723_v16 = vsel %vm1715_vm14, %v1706_v39, %v1579_v27  ;;  %v2400_v48 = vrot.slane %v2398_v59, 5  ;;  %v2686_v42 = vrot.slane %v2684_v58, 4  ;;  %v2689_v61 = vrot.slane %v2687_v10, 5 }
 0x178   : > { %3779 = vmatmul.msk.bf16.gmra.mxu0 %vm1756_vm15, %v1723_v16  ;;  %v2386_v29 = vrot.slane %v2385_v62, 4  ;;  %v2396_v51 = vrot.slane %v2395_v26, 4  ;;  %v3146_v45 = vpack.c.b16 %v3138_v57, %v3137_v1  ;;  %v2693_v41 = vshll.u32 %v5559_v54, 16  ;;  %v4015_v26 = vld [vmem:[%s4288_s17 + $0x30] sm:$0xff] }
 0x179   : > { %v5583_v60 = vpop.permute.xlu1 %2951  ;;  %1546 = vrot.lane.b32.xlu1 %v1531_v36, %s4190_s29  ;;  %v2697_v23 = vshrl.u32 %v5559_v54, 16  ;;  %v1571_v52 = vpack.c.b16 %v1563_v8, %v1562_v14  ;;  %v2690_v5 = vor.u32 %v2689_v61, %v2686_v42  ;;  %v2703_v2 = vshll.u32 %v5563_v38, 16 }
 0x17a   : > { %v2391_v12 = vsel %vm4310_vm5, %v2386_v29, %v2390_v46  ;;  %v2401_v30 = vsel %vm4310_vm5, %v2396_v51, %v2400_v48  ;;  %v2695_v27 = vrot.slane %v2693_v41, 5  ;;  %v1609_v39 = vsel %vm1588_vm6, %v4017_v0, %v5475_v19  ;;  %v4043_v19 = vld [vmem:[%s4288_s17 + $0xa8] sm:$0xff] }
 0x17b   : > { %3081 = vrot.lane.b32.xlu0 %v4060_v55, %s4189_s23  ;;  %v2969_v32 = vunpack.c.l.b16 %v2391_v12  ;;  %v2970_v56 = vunpack.c.l.b16 %v2401_v30  ;;  %v2699_v34 = vrot.slane %v2697_v23, 4  ;;  %v1627_v47 = vsel %vm1613_vm7, %v1609_v39, %v5499_v28  ;;  %v4041_v12 = vld [vmem:[%s4288_s17 + $0x90] sm:$0xff] }
 0x17c   : > { %v2691_v43 = vrot.slane %v2690_v5, 4  ;;  %v2705_v44 = vrot.slane %v2703_v2, 5  ;;  %v3183_v28 = vsel %vm1588_vm6, %v4043_v19, %v5536_v37 }
 0x17d   : > { %v5599_v3 = vpop.permute.xlu2 %3031  ;;  %v2978_v54 = vpack.c.b16 %v2970_v56, %v2969_v32  ;;  %v2700_v22 = vor.u32 %v2699_v34, %v2695_v27  ;;  %v3200_v20 = vsel %vm1613_vm7, %v3183_v28, %v5552_v53 }
 0x17e   : > { %v1377_v13 = vpop.permute.xlu0 %1376  ;;  %v2696_v17 = vsel %vm4310_vm5, %v2691_v43, %v2695_v27  ;;  %v3216_v63 = vsel %vm1630_vm8, %v3200_v20, %v5583_v60 }
 0x17f   : > { %2993 = vrot.lane.b32.xlu2 %v2978_v54, %s4187_s21  ;;  %v2701_v38 = vrot.slane %v2700_v22, 4  ;;  %v1644_v31 = vsel %vm1630_vm8, %v1627_v47, %v1377_v13 }
 0x180   : > { %v1661_v25 = vsel %vm1647_vm9, %v1644_v31, %v5573_v9  ;;  %v3097_v9 = vunpack.c.l.b16 %v2696_v17 }
 0x181   : > { %v1457_v18 = vpop.permute.xlu1 %1456  ;;  %3161 = vrot.lane.b32.xlu1 %v3146_v45, %s4191_s8  ;;  %v2706_v55 = vsel %vm4310_vm5, %v2701_v38, %v2705_v44 }
 0x182   : > { %v1678_v1 = vsel %vm1664_vm10, %v1661_v25, %v1457_v18  ;;  %v3098_v36 = vunpack.c.l.b16 %v2706_v55  ;;  %v4044_v55 = vld [vmem:[%s4288_s17 + $0xb4] sm:$0xff] }
 0x183   : > { %1586 = vrot.lane.b32.xlu0 %v1571_v52, %s4191_s8 }
 0x184   : > { %v3106_v57 = vpack.c.b16 %v3098_v36, %v3097_v9 }
 0x186   : > { %v2992_v40 = vpop.permute.xlu0 %2991  ;;  %v1545_v50 = vpop.permute.xlu2 %1544 }
 0x187   : > { %1506 = vrot.lane.b32.xlu2 %v4034_v7, %s4189_s23  ;;  %v3232_v37 = vsel %vm1647_vm9, %v3216_v63, %v2992_v40  ;;  %s3489_s23 = scalar_lea.hbm %s5829_s6, %s4253_s28  ;;  %s4140_s28 = scalar_lea.hbm %s5829_s6, 2 }
 0x188   : > { %v3248_v53 = vsel %vm1664_vm10, %v3232_v37, %v5599_v3  ;;  %s3493_s8 = sshll.u32 %s3489_s23, 4  ;;  %s3494_s8 = int_to_ptr.hbm [resolvable:$true] %s3493_s8 }
 0x189   : > { %v3080_v16 = vpop.permute.xlu1 %3079  ;;  %s4134_s9 = sshra.s32 %s3494_s8, 4  ;;  %s4135_s9 = int_to_ptr.hbm [resolvable:$true] %s4134_s9 }
 0x18a   : > { %v3264_v4 = vsel %vm1681_vm12, %v3248_v53, %v3080_v16  ;;  %s4136_s14 = scalar_lea.hbm %s4135_s9, 1  ;;  %p4141_p0 = scmp.lt.s32.totalorder %s4135_s9, %s5829_s6 }
 0x18b   : > { %p4137_p11 = scmp.ne.s32.totalorder %s4135_s9, %s4136_s14  ;;  %p4142_p1 = scmp.lt.s32.totalorder %s4140_s28, %s4136_s14 }
 0x18d   : > { %p4138_p12 = pnand %p4137_p11, %p4270_p5  ;;  %p4143_p2 = por %p4142_p1, %p4141_p0 }
 0x18e   : > { %v1505_v49 = vpop.permute.xlu0 %1504  ;;  %v3160_v35 = vpop.permute.xlu2 %3159 }
 0x18f   : > { %v1695_v6 = vsel %vm1681_vm12, %v1678_v1, %v1505_v49  ;;  %3121 = vrot.lane.b32.xlu2 %v3106_v57, %s4190_s29  ;;  %v4018_v1 = vld [vmem:[%s4288_s17 + $0x54] sm:$0xff]  ;;  %s282_s17 = scalar_lea.vmem [#allocation2], %s281_s16  ;;  %p4139_p13 = pneg %p4138_p12 }
 0x190   : > { %v1712_v33 = vsel %vm1698_vm13, %v1695_v6, %v1545_v50  ;;  %s3491_s29 = sshll.u32 %s282_s17, 4  ;;  %s3492_s29 = int_to_ptr.vmem [resolvable:$true] %s3491_s29 }
 0x191   : > { %v1585_v11 = vpop.permute.xlu1 %1584  ;;  %p4144_p3 = pnand %p4143_p2, %p4139_p13 }
 0x192   : > { %v1729_v21 = vsel %vm1715_vm14, %v1712_v33, %v1585_v11 }
 0x193   : > { %3782 = vmatmul.msk.bf16.gmra.mxu3 %vm1756_vm15, %v1729_v21 }
 0x196   : > { %v3120_v46 = vpop.permute.xlu0 %3119  ;;  %v1325_v24 = vpop.permute.xlu2 %1324 }
 0x197   : > { %v3280_v15 = vsel %vm1698_vm13, %v3264_v4, %v3120_v46 }
 0x198   : > { %v3296_v60 = vsel %vm1715_vm14, %v3280_v15, %v3160_v35 }
 0x199   : > { %4006 = vmatmul.msk.bf16.gmra.mxu2 %vm1756_vm15, %v3296_v60  ;;  %v2860_v59 = vpop.permute.xlu1 %2859 }
 0x19a   : > { %v3177_v5 = vsel %vm1588_vm6, %v4041_v12, %v2860_v59  ;;  %v5695_v12 = vld [vmem:[%s5825_s2] ss:$0 sm:$0xff] }
 0x19e   : > { %v2948_v13 = vpop.permute.xlu2 %2947 }
 0x1a1   : > { %v1373_v10 = vpop.permute.xlu1 %1372 }
 0x1a3   : > { %v1285_v58 = vpop.permute.xlu0 %1284 }
 0x1a4   : > { %v1603_v29 = vsel %vm1588_vm6, %v4015_v26, %v1285_v58 }
 0x1a5   : > { %v1623_v51 = vsel %vm1613_vm7, %v1603_v29, %v1325_v24 }
 0x1a6   : > { %v1453_v14 = vpop.permute.xlu2 %1452  ;;  %v1640_v42 = vsel %vm1630_vm8, %v1623_v51, %v1373_v10  ;;  %v3324_v10 = vpop.f32.mrf.mxu1 }
 0x1ab   : > { %v2900_v3 = vpop.permute.xlu0 %2899 }
 0x1ac   : > { %v3196_v34 = vsel %vm1613_vm7, %v3177_v5, %v2900_v3 }
 0x1ad   : > { %v3212_v39 = vsel %vm1630_vm8, %v3196_v34, %v2948_v13  ;;  %v3325_v34 = vadd.f32 %v5695_v12, %v3324_v10 }
 0x1ae   : > { %v2988_v8 = vpop.permute.xlu1 %2987  ;;  %v3076_v62 = vpop.permute.xlu2 %3075 }
 0x1af   : > { %v3228_v54 = vsel %vm1647_vm9, %v3212_v39, %v2988_v8  ;;  %v3326_v3 = vpop.f32.mrf.mxu1 }
 0x1b5   : > { %v1413_v48 = vpop.permute.xlu0 %1412 }
 0x1b6   : > { %v1501_v18 = vpop.permute.xlu1 %1500  ;;  %v1657_v45 = vsel %vm1647_vm9, %v1640_v42, %v1413_v48  ;;  %v3422_v42 = vld [vmem:[%s5826_s3 + $0x18] sm:$0xff] }
 0x1b7   : > { %v1674_v23 = vsel %vm1664_vm10, %v1657_v45, %v1453_v14  ;;  %v1786_v14 = vpop.f32.mrf.mxu0  ;;  %3439 = vmatpush.msrb.mxu2 %v3422_v42 }
 0x1b8   : > { %v1691_v52 = vsel %vm1681_vm12, %v1674_v23, %v1501_v18 }
 0x1b9   : > { %v2866_v61 = vpop.permute.xlu2 %2865 }
 0x1ba   : > { %v3186_v28 = vsel %vm1588_vm6, %v4044_v55, %v2866_v61 }
 0x1bd   : > { %v3028_v0 = vpop.permute.xlu0 %3027 }
 0x1be   : > { %v1541_v41 = vpop.permute.xlu1 %1540  ;;  %v3244_v40 = vsel %vm1664_vm10, %v3228_v54, %v3028_v0 }
 0x1bf   : > { %v1708_v30 = vsel %vm1698_vm13, %v1691_v52, %v1541_v41  ;;  %v3260_v50 = vsel %vm1681_vm12, %v3244_v40, %v3076_v62  ;;  %v1788_v8 = vpop.f32.mrf.mxu0  ;;  %v3329_v62 = vpop.f32.mrf.mxu1 }
 0x1c0   : > { %v1789_v5 = vadd.f32 %v5695_v12, %v1788_v8 }
 0x1c1   : > { %v1581_v32 = vpop.permute.xlu2 %1580 }
 0x1c2   : > { %v1725_v56 = vsel %vm1715_vm14, %v1708_v30, %v1581_v32  ;;  %v5699_v32 = vpop.f32.mrf.mxu3 }
 0x1c3   : > { %3780 = vmatmul.msk.bf16.gmra.mxu0 %vm1756_vm15, %v1725_v56  ;;  %v3327_v56 = vadd.f32 %v5695_v12, %v3326_v3 }
 0x1c5   : > { %v1291_v27 = vpop.permute.xlu0 %1290  ;;  %v3365_v40 = vmax.f32 %v3327_v56, 0.0 }
 0x1c6   : > { %v1331_v2 = vpop.permute.xlu1 %1330  ;;  %v1612_v35 = vsel %vm1588_vm6, %v4018_v1, %v1291_v27  ;;  %v1787_v27 = vadd.f32 %v5695_v12, %v1786_v14 }
 0x1c7   : > { %v1629_v20 = vsel %vm1613_vm7, %v1612_v35, %v1331_v2  ;;  %v1791_v26 = vpop.f32.mrf.mxu0  ;;  %v3331_v48 = vpop.f32.mrf.mxu1  ;;  %v3330_v2 = vadd.f32 %v5695_v12, %v3329_v62  ;;  %v3381_v55 = vsel %vm1715_vm14, %v3365_v40, 0.0 }
 0x1c8   : > { %v1792_v39 = vadd.f32 %v5695_v12, %v1791_v26 }
 0x1c9   : > { %v1379_v44 = vpop.permute.xlu2 %1378  ;;  %v5697_v30 = vpop.f32.mrf.mxu2 }
 0x1ca   : > { %v1646_v33 = vsel %vm1630_vm8, %v1629_v20, %v1379_v44  ;;  %v3366_v44 = vmax.f32 %v3330_v2, 0.0 }
 0x1cd   : > { %v3116_v22 = vpop.permute.xlu0 %3115 }
 0x1ce   : > { %v3156_v16 = vpop.permute.xlu1 %3155  ;;  %v3276_v47 = vsel %vm1698_vm13, %v3260_v50, %v3116_v22  ;;  %v3332_v50 = vadd.f32 %v5695_v12, %v3331_v48 }
 0x1cf   : > { %v3292_v43 = vsel %vm1715_vm14, %v3276_v47, %v3156_v16  ;;  %v1793_v18 = vpop.f32.mrf.mxu0  ;;  %v3334_v29 = vpop.f32.mrf.mxu1  ;;  %v1826_v16 = vmax.f32 %v1787_v27, 0.0  ;;  %v1827_v47 = vmax.f32 %v1789_v5, 0.0 }
 0x1d0   : > { %4004 = vmatmul.msk.bf16.gmra.mxu1 %vm1756_vm15, %v3292_v43  ;;  %v1794_v43 = vadd.f32 %v5695_v12, %v1793_v18  ;;  %v3367_v1 = vmax.f32 %v3332_v50, 0.0 }
 0x1d1   : > { %v1842_v35 = vsel %vm1715_vm14, %v1826_v16, 0.0 }
 0x1d2   : > { %v1829_v20 = vmax.f32 %v1794_v43, 0.0 }
 0x1d5   : > { %v2906_v38 = vpop.permute.xlu0 %2905 }
 0x1d6   : > { %v3202_v6 = vsel %vm1613_vm7, %v3186_v28, %v2906_v38  ;;  %v3364_v38 = vmax.f32 %v3325_v34, 0.0  ;;  %v1813_v28 = vpop.f32.mrf.mxu3 }
 0x1d7   : > { %v1796_v51 = vpop.f32.mrf.mxu0  ;;  %v3336_v61 = vpop.f32.mrf.mxu1 }
 0x1d9   : > { %v2994_v7 = vpop.permute.xlu2 %2993 }
 0x1db   : > { %v1419_v31 = vpop.permute.xlu1 %1418 }
 0x1dc   : > { %v1663_v21 = vsel %vm1647_vm9, %v1646_v33, %v1419_v31  ;;  %v3335_v31 = vadd.f32 %v5695_v12, %v3334_v29 }
 0x1dd   : > { %v2954_v19 = vpop.permute.xlu0 %2953 }
 0x1de   : > { %v3218_v9 = vsel %vm1630_vm8, %v3202_v6, %v2954_v19  ;;  %v1828_v19 = vmax.f32 %v1792_v39, 0.0  ;;  %v1843_v6 = vsel %vm1715_vm14, %v1827_v47, 0.0  ;;  %v3368_v33 = vmax.f32 %v3335_v31, 0.0 }
 0x1df   : > { %v3234_v63 = vsel %vm1647_vm9, %v3218_v9, %v2994_v7  ;;  %v1798_v0 = vpop.f32.mrf.mxu0  ;;  %v1797_v7 = vadd.f32 %v5695_v12, %v1796_v51  ;;  %v3350_v31 = vadd.f32 %v5695_v12, %v5697_v30 }
 0x1e0   : > { %v1799_v9 = vadd.f32 %v5695_v12, %v1798_v0  ;;  %v3387_v3 = vsel %vm1715_vm14, %v3368_v33, 0.0 }
 0x1e1   : > { %v1507_v49 = vpop.permute.xlu2 %1506 }
 0x1e3   : > { %v3034_v25 = vpop.permute.xlu1 %3033 }
 0x1e4   : > { %v3250_v37 = vsel %vm1664_vm10, %v3234_v63, %v3034_v25  ;;  %v5711_v25 = vpop.f32.mrf.mxu2 }
 0x1e5   : > { %v1459_v17 = vpop.permute.xlu0 %1458  ;;  %v3352_v30 = vadd.f32 %v5695_v12, %v5711_v25 }
 0x1e6   : > { %v1680_v57 = vsel %vm1664_vm10, %v1663_v21, %v1459_v17  ;;  %v3421_v17 = vld [vmem:[%s5826_s3 + $0x10] sm:$0xff] }
 0x1e7   : > { %v1697_v46 = vsel %vm1681_vm12, %v1680_v57, %v1507_v49  ;;  %v3337_v49 = vadd.f32 %v5695_v12, %v3336_v61  ;;  %3440 = vmatpush.msrb.mxu2 %v3421_v17  ;;  %v1830_v57 = vmax.f32 %v1797_v7, 0.0  ;;  %v1812_v17 = vadd.f32 %v5695_v12, %v5699_v32  ;;  %v3420_v32 = vld [vmem:[%s5826_s3 + $0x8] sm:$0xff] }
 0x1e9   : > { %v3122_v4 = vpop.permute.xlu2 %3121  ;;  %v1849_v18 = vsel %vm1715_vm14, %v1830_v57, 0.0  ;;  %3441 = vmatpush.msrb.mxu2 %v3420_v32 }
 0x1eb   : > { %v1547_v36 = vpop.permute.xlu1 %1546 }
 0x1ec   : > { %v1714_v60 = vsel %vm1698_vm13, %v1697_v46, %v1547_v36  ;;  %v3339_v45 = vpop.f32.mrf.mxu1  ;;  %v3380_v36 = vsel %vm1715_vm14, %v3364_v38, 0.0  ;;  %v3385_v46 = vsel %vm1715_vm14, %v3367_v1, 0.0 }
 0x1ed   : > { %v3082_v11 = vpop.permute.xlu0 %3081  ;;  %v3340_v63 = vadd.f32 %v5695_v12, %v3339_v45  ;;  %v3382_v21 = vadd.f32 %v3381_v55, %v3380_v36 }
 0x1ee   : > { %v3266_v53 = vsel %vm1681_vm12, %v3250_v37, %v3082_v11  ;;  %v3383_v11 = vsel %vm1715_vm14, %v3366_v44, 0.0  ;;  %v1845_v37 = vsel %vm1715_vm14, %v1828_v19, 0.0 }
 0x1ef   : > { %v3282_v24 = vsel %vm1698_vm13, %v3266_v53, %v3122_v4  ;;  %v1844_v4 = vadd.f32 %v1843_v6, %v1842_v35  ;;  %v3370_v8 = vmax.f32 %v3340_v63, 0.0  ;;  %v1814_v6 = vadd.f32 %v5695_v12, %v1813_v28 }
 0x1f1   : > { %v1846_v14 = vadd.f32 %v1845_v37, %v1844_v4  ;;  %v3391_v2 = vsel %vm1715_vm14, %v3370_v8, 0.0  ;;  %v1836_v37 = vmax.f32 %v1812_v17, 0.0 }
 0x1f3   : > { %v3162_v15 = vpop.permute.xlu1 %3161 }
 0x1f4   : > { %v3298_v59 = vsel %vm1715_vm14, %v3282_v24, %v3162_v15  ;;  %v3341_v23 = vpop.f32.mrf.mxu1  ;;  %v3369_v24 = vmax.f32 %v3337_v49, 0.0 }
 0x1f5   : > { %v1587_v13 = vpop.permute.xlu0 %1586  ;;  %4007 = vmatmul.msk.bf16.gmra.mxu2 %vm1756_vm15, %v3298_v59  ;;  %v1801_v41 = vpop.f32.mrf.mxu0  ;;  %v3342_v15 = vadd.f32 %v5695_v12, %v3341_v23  ;;  %v1847_v59 = vsel %vm1715_vm14, %v1829_v20, 0.0 }
 0x1f6   : > { %v1731_v58 = vsel %vm1715_vm14, %v1714_v60, %v1587_v13  ;;  %v1802_v53 = vadd.f32 %v5695_v12, %v1801_v41  ;;  %v3384_v60 = vadd.f32 %v3383_v11, %v3382_v21  ;;  %v1831_v13 = vmax.f32 %v1799_v9, 0.0  ;;  %v3419_v21 = vld [vmem:[%s5826_s3] sm:$0xff] }
 0x1f7   : > { %3783 = vmatmul.msk.bf16.gmra.mxu3 %vm1756_vm15, %v1731_v58  ;;  %v1848_v61 = vadd.f32 %v1847_v59, %v1846_v14  ;;  %v3389_v0 = vsel %vm1715_vm14, %v3369_v24, 0.0  ;;  %v3371_v45 = vmax.f32 %v3342_v15, 0.0  ;;  %v3374_v11 = vmax.f32 %v3350_v31, 0.0  ;;  %3442 = vmatpush.msrb.mxu2 %v3419_v21  ;;  %v3423_v21 = vld [vmem:[%s5827_s4] sm:$0x1] }
 0x1f8   : > { %v3386_v48 = vadd.f32 %v3385_v46, %v3384_v60  ;;  %v1832_v29 = vmax.f32 %v1802_v53, 0.0  ;;  %v1837_v53 = vmax.f32 %v1814_v6, 0.0  ;;  %v3375_v46 = vmax.f32 %v3352_v30, 0.0 }
 0x1f9   : > { %v1850_v34 = vadd.f32 %v1849_v18, %v1848_v61  ;;  %v3393_v16 = vsel %vm1715_vm14, %v3371_v45, 0.0  ;;  %v3399_v4 = vsel %vm1715_vm14, %v3374_v11, 0.0  ;;  %v1861_v24 = vsel %vm1715_vm14, %v1836_v37, 0.0 }
 0x1fa   : > { %v3388_v56 = vadd.f32 %v3387_v3, %v3386_v48  ;;  %v1853_v40 = vsel %vm1715_vm14, %v1832_v29, 0.0 }
 0x1fd   : > { %v1803_v52 = vpop.f32.mrf.mxu0 }
 0x1fe   : > { %v1804_v58 = vadd.f32 %v5695_v12, %v1803_v52  ;;  %v1851_v52 = vsel %vm1715_vm14, %v1831_v13, 0.0  ;;  %v1863_v13 = vsel %vm1715_vm14, %v1837_v53, 0.0 }
 0x200   : > { %v1833_v27 = vmax.f32 %v1804_v58, 0.0 }
 0x202   : > { %v1855_v38 = vsel %vm1715_vm14, %v1833_v27, 0.0 }
 0x216   : > { %v1816_v41 = vpop.f32.mrf.mxu3 }
 0x217   : > { %v1817_v15 = vadd.f32 %v5695_v12, %v1816_v41 }
 0x21c   : > { %v3354_v51 = vpop.f32.mrf.mxu2 }
 0x21d   : > { %v3355_v25 = vadd.f32 %v5695_v12, %v3354_v51 }
 0x21e   : > { %v1818_v33 = vpop.f32.mrf.mxu3 }
 0x21f   : > { %v3376_v14 = vmax.f32 %v3355_v25, 0.0  ;;  %v1819_v48 = vadd.f32 %v5695_v12, %v1818_v33 }
 0x221   : > { %v1839_v41 = vmax.f32 %v1819_v48, 0.0 }
 0x224   : > { %v3356_v20 = vpop.f32.mrf.mxu2 }
 0x225   : > { %v3357_v3 = vadd.f32 %v5695_v12, %v3356_v20 }
 0x227   : > { %v3377_v61 = vmax.f32 %v3357_v3, 0.0 }
 0x240   : > { %v1806_v22 = vpop.f32.mrf.mxu0 }
 0x241   : > { %v1807_v42 = vadd.f32 %v5695_v12, %v1806_v22  ;;  %v1852_v22 = vadd.f32 %v1851_v52, %v1850_v34 }
 0x243   : > { %v1834_v50 = vmax.f32 %v1807_v42, 0.0  ;;  %v1854_v19 = vadd.f32 %v1853_v40, %v1852_v22  ;;  %v3403_v42 = vsel %vm1715_vm14, %v3376_v14, 0.0 }
 0x245   : > { %v1857_v1 = vsel %vm1715_vm14, %v1834_v50, 0.0  ;;  %v1856_v49 = vadd.f32 %v1855_v38, %v1854_v19 }
 0x247   : > { %v1858_v63 = vadd.f32 %v1857_v1, %v1856_v49 }
 0x248   : > { %v1808_v62 = vpop.f32.mrf.mxu0 }
 0x249   : > { %v1809_v5 = vadd.f32 %v5695_v12, %v1808_v62 }
 0x24b   : > { %v1835_v44 = vmax.f32 %v1809_v5, 0.0  ;;  %v3405_v5 = vsel %vm1715_vm14, %v3377_v61, 0.0 }
 0x24d   : > { %v3344_v54 = vpop.f32.mrf.mxu1  ;;  %v1859_v9 = vsel %vm1715_vm14, %v1835_v44, 0.0 }
 0x24e   : > { %v3345_v26 = vadd.f32 %v5695_v12, %v3344_v54  ;;  %v3390_v54 = vadd.f32 %v3389_v0, %v3388_v56  ;;  %v1860_v57 = vadd.f32 %v1859_v9, %v1858_v63 }
 0x250   : > { %v3372_v39 = vmax.f32 %v3345_v26, 0.0  ;;  %v3392_v43 = vadd.f32 %v3391_v2, %v3390_v54  ;;  %v1862_v59 = vadd.f32 %v1861_v24, %v1860_v57  ;;  %v1838_v26 = vmax.f32 %v1817_v15, 0.0  ;;  %v3448_v15 = vld [vmem:[%s295_s20] sm:$0x1] }
 0x251   : > { %v1867_v54 = vsel %vm1715_vm14, %v1839_v41, 0.0 }
 0x252   : > { %v3395_v7 = vsel %vm1715_vm14, %v3372_v39, 0.0  ;;  %v3394_v55 = vadd.f32 %v3393_v16, %v3392_v43  ;;  %v1864_v51 = vadd.f32 %v1863_v13, %v1862_v59  ;;  %v1865_v45 = vsel %vm1715_vm14, %v1838_v26, 0.0 }
 0x254   : > { %v3396_v36 = vadd.f32 %v3395_v7, %v3394_v55  ;;  %v1866_v56 = vadd.f32 %v1865_v45, %v1864_v51 }
 0x255   : > { %v3346_v10 = vpop.f32.mrf.mxu1 }
 0x256   : > { %v3347_v23 = vadd.f32 %v5695_v12, %v3346_v10  ;;  %v3401_v10 = vsel %vm1715_vm14, %v3375_v46, 0.0  ;;  %v1868_v16 = vadd.f32 %v1867_v54, %v1866_v56 }
 0x258   : > { %v3373_v47 = vmax.f32 %v3347_v23, 0.0 }
 0x25a   : > { %v3397_v35 = vsel %vm1715_vm14, %v3373_v47, 0.0 }
 0x25b   : > { %v3398_v28 = vadd.f32 %v3397_v35, %v3396_v36 }
 0x25d   : > { %v3400_v60 = vadd.f32 %v3399_v4, %v3398_v28 }
 0x25f   : > { %v3402_v18 = vadd.f32 %v3401_v10, %v3400_v60  ;;  %v3466_v60 = vlaneseq }
 0x261   : > { %v3404_v23 = vadd.f32 %v3403_v42, %v3402_v18  ;;  %v3467_v14 = vand.u32 127, %v3466_v60 }
 0x263   : > { %v3406_v40 = vadd.f32 %v3405_v5, %v3404_v23 }
 0x278   : > { %v3359_v58 = vpop.f32.mrf.mxu2 }
 0x279   : > { %v3360_v8 = vadd.f32 %v5695_v12, %v3359_v58 }
 0x27a   : > { %v1821_v62 = vpop.f32.mrf.mxu3 }
 0x27b   : > { %v1822_v29 = vadd.f32 %v5695_v12, %v1821_v62  ;;  %v3378_v0 = vmax.f32 %v3360_v8, 0.0 }
 0x27d   : > { %v1840_v52 = vmax.f32 %v1822_v29, 0.0  ;;  %v3407_v34 = vsel %vm1715_vm14, %v3378_v0, 0.0 }
 0x27e   : > { %v3408_v43 = vadd.f32 %v3407_v34, %v3406_v40 }
 0x27f   : > { %v1869_v50 = vsel %vm1715_vm14, %v1840_v52, 0.0 }
 0x280   : > { %v3361_v27 = vpop.f32.mrf.mxu2  ;;  %v1870_v44 = vadd.f32 %v1869_v50, %v1868_v16 }
 0x281   : > { %v3362_v2 = vadd.f32 %v5695_v12, %v3361_v27 }
 0x282   : > { %v1823_v39 = vpop.f32.mrf.mxu3 }
 0x283   : > { %v1824_v22 = vadd.f32 %v5695_v12, %v1823_v39  ;;  %v3379_v47 = vmax.f32 %v3362_v2, 0.0 }
 0x285   : > { %v1841_v38 = vmax.f32 %v1824_v22, 0.0  ;;  %v3409_v31 = vsel %vm1715_vm14, %v3379_v47, 0.0 }
 0x286   : > { %v3410_v19 = vadd.f32 %v3409_v31, %v3408_v43 }
 0x287   : > { %v1871_v7 = vsel %vm1715_vm14, %v1841_v38, 0.0 }
 0x288   : > { %v1872_v17 = vadd.f32 %v1871_v7, %v1870_v44  ;;  %v3411_v55 = vrot.slane %v3410_v19, 4 }
 0x28a   : > { %v1873_v1 = vrot.slane %v1872_v17, 4  ;;  %v3412_v49 = vadd.f32 %v3411_v55, %v3410_v19 }
 0x28c   : > { %v1874_v35 = vadd.f32 %v1873_v1, %v1872_v17  ;;  %v3413_v6 = vrot.slane %v3412_v49, 2 }
 0x28e   : > { %v1875_v20 = vrot.slane %v1874_v35, 2  ;;  %v3414_v9 = vadd.f32 %v3413_v6, %v3412_v49 }
 0x290   : > { %v1876_v12 = vadd.f32 %v1875_v20, %v1874_v35  ;;  %v3415_v36 = vrot.slane %v3414_v9, 1 }
 0x292   : > { %v1877_v11 = vrot.slane %v1876_v12, 1  ;;  %v3416_v33 = vadd.f32 %v3415_v36, %v3414_v9 }
 0x294   : > { %v1878_v30 = vadd.f32 %v1877_v11, %v1876_v12 }
 0x296   : > { %v3417_v63 = vadd.f32 %v3416_v33, %v1878_v30 }
 0x298   : > { %v3418_v32 = vmul.f32 0.00390625, %v3417_v63 }
 0x29a   : > { %4008 = vmatmul.msk.f32.vlgmr.msrb.gmra.mxu2 %vm1715_vm14, %v3418_v32 }
 0x31d   : > { %v3444_v37 = vpop.f32.mrf.mxu2 }
 0x31e   : > { %v3445_v28 = vadd.f32 %v3444_v37, %v3423_v21 }
 0x320   : > { %v3452_v57 = vand.u32 2147483647, %v3445_v28  ;;  %3447 = vst [vmem:[%s282_s17] sm:$0x1] %v3445_v28  ;;  %v3449_v13 = vmax.f32 %v3445_v28, 0.0  ;;  %v3450_v58 = vmul.f32 %v3448_v15, %v3445_v28 }
 0x322   : > { %v3453_v53 = vsub.f32 0.0, %v3452_v57 }
 0x324   : > { %v3454_v4 = vmul.f32 1.442695, %v3453_v53 }
 0x326   : > { %4116 = vpow2.f32 %v3454_v4 }
 0x32c   : > { %v4117_v46 = vpop.eup %4116 }
 0x32d   : > { %v3456_v25 = vadd.f32 1.0, %v4117_v46  ;;  %v3459_v24 = vmul.f32 -0.5, %v4117_v46  ;;  %v3462_v10 = vand.u32 2147483647, %v4117_v46 }
 0x32f   : > { %4118 = vlog2.f32 %v3456_v25  ;;  %v3460_v59 = vadd.f32 1.0, %v3459_v24 }
 0x331   : > { %v3461_v62 = vmul.f32 %v4117_v46, %v3460_v59 }
 0x335   : > { %v4119_v3 = vpop.eup %4118 }
 0x336   : > { %v3458_v8 = vmul.f32 0.6931472, %v4119_v3 }
 0x337   : > { %4147 = shalt.err (!%p4144_p3)
}
 0x338   : > { %4068 = dma.vmem_to_hbm [thread:$0]  (%p4270_p5), %s3492_s29, 16, %s3494_s8, %s3478_s15   ;;  %v3451_v26 = vsub.f32 %v3449_v13, %v3450_v58  ;;  %vm3463_vm0 = vcmp.lt.f32.partialorder %v3462_v10, 0.0004427343  ;;  %vm3468_vm1 = vcmp.lt.s32.totalorder %v3467_v14, 3  ;;  %vm3470_vm2 = vcmask 1040384  }
 0x339   : > { %v3464_v48 = vsel %vm3463_vm0, %v3461_v62, %v3458_v8  ;;  %s298_s22 = scalar_lea.vmem %s5830_s7, %s4282_s13  ;;  %vm3475_vm3 = vcmask 0  }
 0x33a   : > { %v3465_v18 = vadd.f32 %v3464_v48, %v3451_v26 }
 0x33c   : > { %v3469_v29 = vsel %vm3468_vm1, %v3465_v18, 0.0 }
 0x33d   : > { %v3471_v51 = vsel %vm3470_vm2, %v3469_v29, 0.0 }
 0x33e   : > { %3472 = vadd.xlane.f32.xlu2 %v3471_v51 }
 0x3b1   : > { %v3473_v42 = vpop.xlane.xlu2 %3472 }
 0x3b2   : > { %v3474_v61 = vmul.f32 0.33333334, %v3473_v42 }
 0x3b4   : > { %3476 = vst.msk [vmem:[%s298_s22] sm:$0x1] %vm3475_vm3, %v3474_v61 }
 0x3b5 PF: > { %p4074_p4 = scmp.ge.s32.totalorder %s4182_s27, 2  ;;  %s3508_s11 = sand.u32 1, %s4170_s24  }
 0x3b6   : > { %s3509_s23 = scalar_lea.sflag [#allocation3], %s3508_s11 }
 0x3b7   : > { %p4071_p5 = pnand %p4074_p4, %p4274_p6 }
 0x3b9   : > { %p4072_p7 = pneg %p4071_p5 }
 0x3bb   : > { %4165 = dma.done.wait (%p4072_p7), %s3509_s23, 16  }
 0x3bc   : > { %4167 = vsyncadd (%p4072_p7), %s3509_s23, 4294967280  ;;  %p18_p8 = scmp.ge.s32.totalorder %s4257_s30, 4   ;;  %s5837_s24 = smov %s4174_s25 }
 0x3bd   : > { %s5838_s25 = smov %s4178_s26  ;;  %s5839_s26 = smov %s4268_s10 }
 0x3be   : > { %s5840_s27 = smov %s4257_s30  ;;  %20 = sbr.rel (!%p18_p8) target bundleno = 3 (0x3), region = 99 }
 0x3c3   :  { %3520 = vsyncpa [#allocation3], 1 }
 0x3c4   :  { %3522 = vsyncpa [#allocation3 + $0x1], 1 }

</bundles_post_ra>
